<compile_context>
chip_gen: v7x
topology: tpu7x:2x2x1
jax: 0.10.0
libtpu: 0.0.40
codegen_flags: <defaults>
</compile_context>

<pallas_src>
import math

import numpy as np
import jax
import jax.numpy as jnp
from jax.experimental import pallas as pl
from jax.experimental.pallas import tpu as pltpu

# Eval-mode BatchNorm1d with default (synthetic) stats: y = x / sqrt(1 + eps).
# TODO(synk): for real checkpoints fold per-channel running mean/var and
# affine gamma/beta into the preceding Linear instead of this global scale.
_BN_EVAL_SCALE = 1.0 / math.sqrt(1.0 + 1e-5)
_NEG_FILL = -3.0e38      # finite "-inf" so no-neighbor rows can be guarded to 0
_LANE = 128
_VMEM_LIMIT = 48 * 1024 * 1024   # explicit cap: safe on v5e/v6e (128 MiB) and v7x (64 MiB)


def _round_up(x, m):
    return ((x + m - 1) // m) * m


# ------------------------------ Pallas kernels ------------------------------

def _mlp_apply(h, w_refs, num_layers):
    """In-kernel MLP: bf16 matmuls, f32 accumulation, ReLU on hidden layers.
    Hidden activations are cast back to bf16 immediately (halves live VMEM).
    Eval-BN scale is already folded into the weights; last layer is plain
    (plain_last=True / norm=None) and stays f32 for the sentinel math."""
    for layer in range(num_layers):
        w = w_refs[2 * layer][...]                 # bf16 (Cin, Cout_pad)
        b = w_refs[2 * layer + 1][...]             # f32  (1, Cout_pad)
        h = jnp.dot(h.astype(jnp.bfloat16), w,
                    preferred_element_type=jnp.float32) + b
        if layer < num_layers - 1:
            h = jnp.maximum(h, 0.0).astype(jnp.bfloat16)
    return h                                       # f32


def make_sa_conv_kernel(num_layers, tile_m, k):
    """PointNetConv: edge MLP over concat(x_j, pos_j - pos_i) then masked max
    aggregation over the K neighbor slots, for a tile of tile_m targets.
    The edge feed arrives at its natural channel width (no HBM zero-padding);
    the unpadded contracting dim goes straight into the first jnp.dot."""
    def kernel(feat_ref, madd_ref, *refs):
        w_refs = refs[: 2 * num_layers]
        out_ref = refs[2 * num_layers]
        h = _mlp_apply(feat_ref[...], w_refs, num_layers)    # (tile_m*K, Cp) f32
        h = h + madd_ref[...]                                # additive validity mask
        c = h.shape[-1]
        red = jnp.max(h.reshape(tile_m, k, c), axis=1)       # max over neighbors
        # zero-neighbor targets and padded rows -> 0 (not -inf/NaN downstream)
        red = jnp.where(red > 0.5 * _NEG_FILL, red, 0.0)
        out_ref[...] = red.astype(out_ref.dtype)             # bf16 writeback
    return kernel


def make_global_final_kernel(l_glob, l_fin):
    """GlobalSAModule + final MLP fused.  Each grid step runs the per-point MLP
    on one graph's point tile, reduces it with a row-max, and max-accumulates
    into that graph's row of a (B_pad, Cg_pad) VMEM scratch (graph id comes
    from a scalar-prefetched table).  The last step guards empty graphs to 0
    and applies the final MLP in place (dropout is identity in eval mode)."""
    def kernel(gid_ref, x_ref, madd_ref, *refs):
        wg = refs[: 2 * l_glob]
        wf = refs[2 * l_glob: 2 * (l_glob + l_fin)]
        out_ref = refs[2 * (l_glob + l_fin)]
        acc_ref = refs[2 * (l_glob + l_fin) + 1]
        step = pl.program_id(0)

        @pl.when(step == 0)
        def _():
            acc_ref[...] = jnp.full(acc_ref.shape, _NEG_FILL, acc_ref.dtype)
            out_ref[...] = jnp.zeros(out_ref.shape, out_ref.dtype)

        h = _mlp_apply(x_ref[...], wg, l_glob)               # (tile_n, Cg_pad) f32
        h = h + madd_ref[...]                                # additive row mask
        red = jnp.max(h, axis=0, keepdims=True)              # (1, Cg_pad)
        g = gid_ref[step]                                    # graph owning this tile
        acc_ref[pl.ds(g, 1), :] = jnp.maximum(acc_ref[pl.ds(g, 1), :], red)

        @pl.when(step == pl.num_programs(0) - 1)
        def _():
            pooled = acc_ref[...]
            pooled = jnp.where(pooled > 0.5 * _NEG_FILL, pooled, 0.0)
            out_ref[...] = _mlp_apply(pooled, wf, l_fin).astype(out_ref.dtype)
    return kernel


# --------------------------- pallas_call wrappers ----------------------------

def sa_conv_pallas(feat2d, mask_add, mlp, tile_m, k, m_pad):
    """feat2d: (M_pad*K, C0) bf16 (natural width), mask_add: (M_pad*K, 1) f32
    -> (M_pad, Cout_pad) bf16."""
    c0 = feat2d.shape[1]
    flat_w = mlp['flat']
    num_layers = mlp['L']
    c_out_p = mlp['c_out_pad']
    return pl.pallas_call(
        make_sa_conv_kernel(num_layers, tile_m, k),
        out_shape=jax.ShapeDtypeStruct((m_pad, c_out_p), jnp.bfloat16),
        grid=(m_pad // tile_m,),
        in_specs=[
            # natural channel width: block last dim == full array dim (legal)
            pl.BlockSpec((tile_m * k, c0), lambda i: (i, 0)),
            pl.BlockSpec((tile_m * k, 1), lambda i: (i, 0)),
        ] + [pl.BlockSpec(a.shape, lambda i: (0, 0)) for a in flat_w],
        out_specs=pl.BlockSpec((tile_m, c_out_p), lambda i: (i, 0)),
        compiler_params=pltpu.CompilerParams(
            dimension_semantics=("parallel",),
            vmem_limit_bytes=_VMEM_LIMIT),
    )(feat2d, mask_add, *flat_w)


def global_final_pallas(gid, x_grouped, madd, glob_mlp, final_mlp, tile_n, b_pad):
    """gid: (n_tiles,) int32 (scalar prefetch), x_grouped: (n_tiles*tile_n, C0)
    bf16 grouped per graph, madd: (n_tiles*tile_n, 1) f32 -> (B_pad, Cf_pad) f32."""
    n_grouped, c0 = x_grouped.shape
    wg, wf = glob_mlp['flat'], final_mlp['flat']
    lg, lf = glob_mlp['L'], final_mlp['L']
    cg_pad = glob_mlp['c_out_pad']
    cf_pad = final_mlp['c_out_pad']
    n_tiles = n_grouped // tile_n
    grid_spec = pltpu.PrefetchScalarGridSpec(
        num_scalar_prefetch=1,
        grid=(n_tiles,),
        in_specs=[pl.BlockSpec((tile_n, c0), lambda i, g: (i, 0)),
                  pl.BlockSpec((tile_n, 1), lambda i, g: (i, 0))]
                 + [pl.BlockSpec(a.shape, lambda i, g: (0, 0)) for a in wg]
                 + [pl.BlockSpec(a.shape, lambda i, g: (0, 0)) for a in wf],
        out_specs=pl.BlockSpec((b_pad, cf_pad), lambda i, g: (0, 0)),
        scratch_shapes=[pltpu.VMEM((b_pad, cg_pad), jnp.float32)])
    return pl.pallas_call(
        make_global_final_kernel(lg, lf),
        out_shape=jax.ShapeDtypeStruct((b_pad, cf_pad), jnp.float32),
        grid_spec=grid_spec,
        compiler_params=pltpu.CompilerParams(
            # TODO(synk): on v7x, add a second "parallel" grid axis splitting the
            # point tiles across the 2 TensorCores and combine partial maxes.
            dimension_semantics=("arbitrary",),
            vmem_limit_bytes=_VMEM_LIMIT),
    )(gid, x_grouped, madd, *wg, *wf)


# ------------------------------ host-side glue -------------------------------

def fps_np(pos, batch, ratio):
    # TODO(synk): torch_geometric.fps uses a random start point per graph; we
    # deterministically start at each graph's first point.
    idx_out = []
    for b in np.unique(batch):
        idxs = np.nonzero(batch == b)[0]
        pts = pos[idxs]
        n = len(idxs)
        n_sample = int(math.ceil(ratio * n))
        selected = [0]
        min_d = np.full(n, np.inf, dtype=np.float64)
        for _ in range(n_sample - 1):
            d = np.sum((pts - pts[selected[-1]]) ** 2, axis=1)
            min_d = np.minimum(min_d, d)
            selected.append(int(np.argmax(min_d)))
        idx_out.append(idxs[np.asarray(selected)])
    return np.concatenate(idx_out)


def radius_dense_np(pos_src, batch_src, pos_dst, batch_dst, r, max_neighbors):
    """Dense analogue of torch_cluster.radius(max_num_neighbors=...)."""
    # TODO(synk): O(N^2) host loop; fine for small clouds, move to a JAX op for
    # realistic point counts.
    d2 = np.sum((pos_dst[:, None, :] - pos_src[None, :, :]) ** 2, axis=-1)
    valid = (d2 <= r * r) & (batch_dst[:, None] == batch_src[None, :])
    n_dst = valid.shape[0]
    nbr = np.zeros((n_dst, max_neighbors), dtype=np.int32)
    msk = np.zeros((n_dst, max_neighbors), dtype=np.float32)
    for i in range(n_dst):
        js = np.nonzero(valid[i])[0][:max_neighbors]
        nbr[i, : len(js)] = js
        msk[i, : len(js)] = 1.0
    return nbr, msk


def init_mlp(key, specs):
    weights = []
    for cin, cout in zip(specs[:-1], specs[1:]):
        key, kw = jax.random.split(key)
        scale = 1.0 / math.sqrt(cin)
        w = jax.random.uniform(kw, (cin, cout), jnp.float32, -1.0, 1.0) * scale
        b = jnp.zeros((1, cout), jnp.float32)
        weights.append((w, b))
    return key, weights


def prep_mlp(weights, fold_bn, first_cin_pad=None):
    """Fold eval-BN scale into hidden layers.  The FIRST layer keeps its natural
    (unpadded) contracting dim so the kernel can be fed natural-width features
    straight from HBM; hidden/output channels are padded to 128 multiples.
    Weights bf16, biases f32 (added to the f32 MXU accumulator)."""
    num_layers = len(weights)
    flat = []
    prev_cout_pad = None
    for i, (w, b) in enumerate(weights):
        w = np.asarray(jax.device_get(w), np.float32)
        b = np.asarray(jax.device_get(b), np.float32)
        if fold_bn and i < num_layers - 1:
            w = w * _BN_EVAL_SCALE
            b = b * _BN_EVAL_SCALE
        if i == 0:
            cin_p = first_cin_pad if first_cin_pad is not None else w.shape[0]
        else:
            cin_p = prev_cout_pad           # matches previous layer's padded output
        cout_p = _round_up(w.shape[1], _LANE)
        wp = np.zeros((cin_p, cout_p), np.float32)
        wp[: w.shape[0], : w.shape[1]] = w
        bp = np.zeros((1, cout_p), np.float32)
        bp[:, : b.shape[1]] = b
        flat += [jnp.asarray(wp, jnp.bfloat16), jnp.asarray(bp, jnp.float32)]
        prev_cout_pad = cout_p
    return dict(flat=flat, L=num_layers,
                c_in=weights[0][0].shape[0], c_in_pad=flat[0].shape[0],
                c_out=weights[-1][0].shape[1], c_out_pad=prev_cout_pad)


class PointNetEncoderPallas:
    """Mirrors PointNetEncoder -> PointNet (eval mode) with Pallas kernels."""

    def __init__(self, cfg, key, name='pointnet'):
        mc = cfg[name]
        self.depth = mc.get('depth', 2)
        sr = mc.get('sampling_ratio', 0.5)
        self.sampling_ratio = [sr] * self.depth if isinstance(sr, float) else sr
        nr = mc.get('neighbor_radius', 3.0)
        self.neighbor_radius = [nr] * self.depth if isinstance(nr, float) else nr
        self.max_neighbors = mc.get('max_neighbors', 64)

        self.sa_mlps = []
        for i in range(self.depth):
            key, w = init_mlp(key, mc['mlp_specs_{}'.format(i)])
            self.sa_mlps.append(prep_mlp(w, fold_bn=True))
        self.mlp_specs_glob = mc.get('mlp_specs_glob', [256 + 3, 256, 512, 1024])
        self.mlp_specs_final = mc.get('mlp_specs_final', [1024, 512, 256, 128])
        key, wg = init_mlp(key, self.mlp_specs_glob)
        self.glob_mlp = prep_mlp(wg, fold_bn=True)
        key, wf = init_mlp(key, self.mlp_specs_final)
        # final MLP is fused behind the global pool; its first layer contracts
        # over the glob MLP's padded output width.  norm=None -> no BN folding.
        self.final_mlp = prep_mlp(wf, fold_bn=False,
                                  first_cin_pad=self.glob_mlp['c_out_pad'])
        self.latent_size = self.mlp_specs_final[-1]

    def __call__(self, x, pos, batch):
        k = self.max_neighbors

        # ---- host: all fps/radius graph construction up front (no device
        # syncs between the Pallas calls below) ----
        pos_np = np.asarray(jax.device_get(pos), np.float64)
        batch_np = np.asarray(jax.device_get(batch))
        levels = []
        for i in range(self.depth):
            idx = fps_np(pos_np, batch_np, self.sampling_ratio[i])
            nbr, msk = radius_dense_np(pos_np, batch_np, pos_np[idx],
                                       batch_np[idx], self.neighbor_radius[i], k)
            rel = pos_np[nbr] - pos_np[idx][:, None, :]        # (M, K, 3)
            m = len(idx)
            # up to 128 targets/tile: amortizes per-step cost on v5e/v6e while
            # keeping the per-stage VMEM footprint well inside v7x's 64 MiB.
            tile_m = min(128, _round_up(m, 16))
            m_pad = _round_up(m, tile_m)
            nbr_p = np.zeros((m_pad, k), np.int32);  nbr_p[:m] = nbr
            rel_p = np.zeros((m_pad, k, 3), np.float32); rel_p[:m] = rel
            madd = np.full((m_pad, k), _NEG_FILL, np.float32)
            madd[:m] = np.where(msk > 0, 0.0, _NEG_FILL)       # additive mask
            levels.append(dict(
                nbr=jnp.asarray(nbr_p),
                rel=jnp.asarray(rel_p, jnp.bfloat16),
                madd=jnp.asarray(madd.reshape(m_pad * k, 1), jnp.float32),
                tile_m=tile_m, m=m, m_pad=m_pad, mlp=self.sa_mlps[i]))
            pos_np = pos_np[idx]
            batch_np = batch_np[idx]

        # per-graph grouping for the global max pool (points are already
        # contiguous per graph, so this is just padding each graph's rows up
        # to a tile multiple + a graph-id per tile for scalar prefetch).
        n_graphs = int(batch_np.max()) + 1
        counts = np.bincount(batch_np, minlength=n_graphs)
        starts = np.concatenate([[0], np.cumsum(counts)[:-1]])
        tile_n = min(256, _round_up(max(int(counts.max()), 1), 16))
        row_src, g_madd, gid = [], [], []
        for b in range(n_graphs):
            cnt, start = int(counts[b]), int(starts[b])
            ntb = max(1, -(-cnt // tile_n))
            rows = ntb * tile_n
            idxs = np.zeros(rows, np.int32)
            idxs[:cnt] = np.arange(start, start + cnt)
            mv = np.full(rows, _NEG_FILL, np.float32); mv[:cnt] = 0.0
            row_src.append(idxs); g_madd.append(mv); gid += [b] * ntb
        row_src = jnp.asarray(np.concatenate(row_src))
        g_madd = jnp.asarray(np.concatenate(g_madd)[:, None], jnp.float32)
        gid = jnp.asarray(np.asarray(gid, np.int32))
        b_pad = _round_up(n_graphs, 8)
        pos_final = jnp.asarray(pos_np, jnp.bfloat16)

        # ---- device: gathers + back-to-back Pallas stages ----
        x = x.astype(jnp.bfloat16)
        for lev in levels:
            mlp = lev['mlp']
            # TODO(synk): advanced option — move this gather into the kernel
            # (resident feature table + SMEM nbr indices) to drop the M*K edge
            # tensor from HBM entirely.
            x_j = x[lev['nbr']]                                 # (M_pad, K, F) bf16
            feat = jnp.concatenate([x_j, lev['rel']], axis=-1)  # natural width C0
            feat2d = feat.reshape(lev['m_pad'] * k, feat.shape[-1])
            out = sa_conv_pallas(feat2d, lev['madd'], mlp,
                                 lev['tile_m'], k, lev['m_pad'])
            x = out[: lev['m'], : mlp['c_out']]                 # bf16, natural width

        # GlobalSAModule + final MLP (fused).  pos/batch outputs of
        # GlobalSAModule are unused by the final MLP.
        x_cat = jnp.concatenate([x, pos_final], axis=-1)        # (N, C+3) bf16
        x_grouped = x_cat[row_src]                              # per-graph tiles
        out = global_final_pallas(gid, x_grouped, g_madd,
                                  self.glob_mlp, self.final_mlp, tile_n, b_pad)
        return out[:n_graphs, : self.final_mlp['c_out']]


# ------------------------------------ main -----------------------------------

if __name__ == "__main__":
    cfg = {
        'pointnet': {
            'depth': 2,
            'sampling_ratio': 0.5,
            'neighbor_radius': 100.0,        # covers all same-graph points
            'mlp_specs_0': [4 + 3, 16, 32],
            'mlp_specs_1': [32 + 3, 32, 64],
            'mlp_specs_glob': [64 + 3, 64, 128],
            'mlp_specs_final': [128, 64, 32],
            'dropout': 0.5,
        }
    }

    key = jax.random.PRNGKey(0)
    k_param, kx, kp = jax.random.split(key, 3)

    n_graphs, n_per = 2, 32
    n_pts = n_graphs * n_per
    f_in = 4
    x = jax.random.normal(kx, (n_pts, f_in), dtype=jnp.float32)
    pos = jax.random.uniform(kp, (n_pts, 3), dtype=jnp.float32,
                             minval=0.0, maxval=10.0)
    batch = jnp.repeat(jnp.arange(n_graphs, dtype=jnp.int32), n_per)

    model = PointNetEncoderPallas(cfg, k_param)
    out = model(x, pos, batch)
    out = jax.block_until_ready(out)

    assert out.shape == (n_graphs, model.latent_size), out.shape
    assert bool(jnp.all(jnp.isfinite(out)))
    print("KERNEL_OK")
</pallas_src>

<mosaic_0001>
module attributes {stable_mosaic.version = 11 : i64} {
  func.func @kernel(%arg0: i32, %arg1: memref<2048x7xbf16, #tpu.memory_space<vmem>>, %arg2: memref<2048x1xf32, #tpu.memory_space<vmem>>, %arg3: memref<7x128xbf16, #tpu.memory_space<vmem>>, %arg4: memref<1x128xf32, #tpu.memory_space<vmem>>, %arg5: memref<128x128xbf16, #tpu.memory_space<vmem>>, %arg6: memref<1x128xf32, #tpu.memory_space<vmem>>, %arg7: memref<32x128xbf16, #tpu.memory_space<vmem>>) attributes {dimension_semantics = [#tpu.dimension_semantics<parallel>], iteration_bounds = array<i64: 1>, scalar_prefetch = 0 : i64, scratch_operands = 0 : i64, tpu.core_type = #tpu.core_type<tc>, window_params = [{transform_indices = @transform_0, window_bounds = array<i64: 2048, 7>}, {transform_indices = @transform_1, window_bounds = array<i64: 2048, 1>}, {pipeline_mode = #tpu.pipeline_mode<synchronous>, transform_indices = @transform_2, window_bounds = array<i64: 7, 128>}, {pipeline_mode = #tpu.pipeline_mode<synchronous>, transform_indices = @transform_3, window_bounds = array<i64: 1, 128>}, {pipeline_mode = #tpu.pipeline_mode<synchronous>, transform_indices = @transform_4, window_bounds = array<i64: 128, 128>}, {pipeline_mode = #tpu.pipeline_mode<synchronous>, transform_indices = @transform_5, window_bounds = array<i64: 1, 128>}, {transform_indices = @transform_6, window_bounds = array<i64: 32, 128>}]} {
    %c0 = arith.constant 0 : index
    %c0_0 = arith.constant 0 : index
    %0 = vector.load %arg1[%c0, %c0_0] : memref<2048x7xbf16, #tpu.memory_space<vmem>>, vector<2048x7xbf16>
    %c0_1 = arith.constant 0 : index
    %c0_2 = arith.constant 0 : index
    %1 = vector.load %arg3[%c0_1, %c0_2] : memref<7x128xbf16, #tpu.memory_space<vmem>>, vector<7x128xbf16>
    %c0_3 = arith.constant 0 : index
    %c0_4 = arith.constant 0 : index
    %2 = vector.load %arg4[%c0_3, %c0_4] : memref<1x128xf32, #tpu.memory_space<vmem>>, vector<1x128xf32>
    %cst = arith.constant dense<0.000000e+00> : vector<2048x128xf32>
    %3 = tpu.matmul %0, %1, %cst {dimension_numbers = #tpu.dot_dimension_numbers<[1], [0], [0], [1], [0, 0, 1, 1], [], []>} : vector<2048x7xbf16>, vector<7x128xbf16>, vector<2048x128xf32> -> vector<2048x128xf32>
    %4 = vector.broadcast %2 : vector<1x128xf32> to vector<2048x128xf32>
    %5 = arith.addf %3, %4 : vector<2048x128xf32>
    %cst_5 = arith.constant 0.000000e+00 : f32
    %6 = vector.broadcast %cst_5 : f32 to vector<2048x128xf32>
    %7 = arith.maximumf %5, %6 : vector<2048x128xf32>
    %8 = arith.truncf %7 : vector<2048x128xf32> to vector<2048x128xbf16>
    %c0_6 = arith.constant 0 : index
    %c0_7 = arith.constant 0 : index
    %9 = vector.load %arg5[%c0_6, %c0_7] : memref<128x128xbf16, #tpu.memory_space<vmem>>, vector<128x128xbf16>
    %c0_8 = arith.constant 0 : index
    %c0_9 = arith.constant 0 : index
    %10 = vector.load %arg6[%c0_8, %c0_9] : memref<1x128xf32, #tpu.memory_space<vmem>>, vector<1x128xf32>
    %cst_10 = arith.constant dense<0.000000e+00> : vector<2048x128xf32>
    %11 = tpu.matmul %8, %9, %cst_10 {dimension_numbers = #tpu.dot_dimension_numbers<[1], [0], [0], [1], [0, 0, 1, 1], [], []>} : vector<2048x128xbf16>, vector<128x128xbf16>, vector<2048x128xf32> -> vector<2048x128xf32>
    %12 = vector.broadcast %10 : vector<1x128xf32> to vector<2048x128xf32>
    %13 = arith.addf %11, %12 : vector<2048x128xf32>
    %c0_11 = arith.constant 0 : index
    %c0_12 = arith.constant 0 : index
    %14 = vector.load %arg2[%c0_11, %c0_12] : memref<2048x1xf32, #tpu.memory_space<vmem>>, vector<2048x1xf32>
    %15 = vector.broadcast %14 : vector<2048x1xf32> to vector<2048x128xf32>
    %16 = arith.addf %13, %15 : vector<2048x128xf32>
    %17 = vector.shape_cast %16 : vector<2048x128xf32> to vector<32x64x128xf32>
    %cst_13 = arith.constant dense<0xFF800000> : vector<32x128xf32>
    %18 = vector.multi_reduction <maximumf>, %17, %cst_13 [1] : vector<32x64x128xf32> to vector<32x128xf32>
    %cst_14 = arith.constant -1.500000e+38 : f32
    %19 = vector.broadcast %cst_14 : f32 to vector<32x128xf32>
    %20 = arith.cmpf ogt, %18, %19 : vector<32x128xf32>
    %cst_15 = arith.constant 0.000000e+00 : f32
    %21 = vector.broadcast %cst_15 : f32 to vector<32x128xf32>
    %22 = arith.select %20, %18, %21 : vector<32x128xi1>, vector<32x128xf32>
    %23 = arith.truncf %22 : vector<32x128xf32> to vector<32x128xbf16>
    %c0_16 = arith.constant 0 : index
    %c0_17 = arith.constant 0 : index
    %24 = vector.load %arg7[%c0_16, %c0_17] : memref<32x128xbf16, #tpu.memory_space<vmem>>, vector<32x128xbf16>
    tpu.vector_store %arg7[%c0_16, %c0_17], %23 {strides = array<i32>} : memref<32x128xbf16, #tpu.memory_space<vmem>>, vector<32x128xbf16>,
    return
  }
  func.func @transform_0(%arg0: i32) -> (i32, i32) {
    %c0_i32 = arith.constant 0 : i32
    %c0_i32_0 = arith.constant 0 : i32
    return %arg0, %c0_i32 : i32, i32
  }
  func.func @transform_1(%arg0: i32) -> (i32, i32) {
    %c0_i32 = arith.constant 0 : i32
    %c0_i32_0 = arith.constant 0 : i32
    return %arg0, %c0_i32 : i32, i32
  }
  func.func @transform_2(%arg0: i32) -> (i32, i32) {
    %c0_i32 = arith.constant 0 : i32
    %c0_i32_0 = arith.constant 0 : i32
    %c0_i32_1 = arith.constant 0 : i32
    return %c0_i32, %c0_i32_0 : i32, i32
  }
  func.func @transform_3(%arg0: i32) -> (i32, i32) {
    %c0_i32 = arith.constant 0 : i32
    %c0_i32_0 = arith.constant 0 : i32
    %c0_i32_1 = arith.constant 0 : i32
    return %c0_i32, %c0_i32_0 : i32, i32
  }
  func.func @transform_4(%arg0: i32) -> (i32, i32) {
    %c0_i32 = arith.constant 0 : i32
    %c0_i32_0 = arith.constant 0 : i32
    %c0_i32_1 = arith.constant 0 : i32
    return %c0_i32, %c0_i32_0 : i32, i32
  }
  func.func @transform_5(%arg0: i32) -> (i32, i32) {
    %c0_i32 = arith.constant 0 : i32
    %c0_i32_0 = arith.constant 0 : i32
    %c0_i32_1 = arith.constant 0 : i32
    return %c0_i32, %c0_i32_0 : i32, i32
  }
  func.func @transform_6(%arg0: i32) -> (i32, i32) {
    %c0_i32 = arith.constant 0 : i32
    %c0_i32_0 = arith.constant 0 : i32
    return %arg0, %c0_i32 : i32, i32
  }
}

</mosaic_0001>

<bundles_post_ra>
// kernel: tpu_custom_call.1
= control target key start
LH: loop header
LB: loop body
LE: loop exit
PB: predicated region body
PF: predicated region fallthrough
CT: control target
= control target key end

     0   :  { %vm1314_vm0 = vcmask 1042432   ;;  %v7701_v2 = vmov 0   ;;  %vm1315_vm1 = vcmask 1043456   ;;  %v7702_v4 = vmov 65535   ;;  %s10506_s0 = inlined_call_operand.vmem [shape: bf16[2048,7], index: 0, kind: input, shape index: {}]   ;;  %s10507_s1 = inlined_call_operand.vmem [shape: f32[2048,1], index: 1, kind: input, shape index: {}]   ;;  %s10508_s2 = inlined_call_operand.vmem [shape: bf16[7,128], index: 2, kind: input, shape index: {}]   ;;  %s10509_s3 = inlined_call_operand.vmem [shape: f32[1,128], index: 3, kind: input, shape index: {}]   ;;  %s10510_s4 = inlined_call_operand.vmem [shape: bf16[128,128], index: 4, kind: input, shape index: {}]   ;;  %s10511_s5 = inlined_call_operand.vmem [shape: f32[1,128], index: 5, kind: input, shape index: {}]   ;;  %s10512_s6 = inlined_call_operand.hbm [shape: bf16[32,128], index: 6, kind: output, shape index: {}]  }
   0x1   :  { %v3892_v0 = vld [vmem:[%s10507_s1 + $0x10] sm:$0xff]  ;;  %v3890_v1 = vld [vmem:[%s10507_s1] sm:$0xff]  ;;  %7532 = vset.pattern.permute.xlu1 %v7701_v2  ;;  %7531 = vset.pattern.permute.xlu0 %v7701_v2  ;;  %v1316_v5 = vsel %vm1314_vm0, 4294967295, %v7702_v4  ;;  %vm929_vm2 = vcmask 56320   ;;  %v3893_v8 = vld [vmem:[%s10507_s1 + $0x18] sm:$0xff] }
   0x2   :  { %v281_v3 = vld [vmem:[%s10508_s2] sm:$0xf]  ;;  %4158 = vperm.xlu1 %7532, %v3892_v0   ;;  %4148 = vperm.xlu0 %7531, %v3890_v1   ;;  %v1317_v7 = vsel %vm1315_vm1, %v1316_v5, 0  ;;  %v3891_v10 = vld [vmem:[%s10507_s1 + $0x8] sm:$0xff]  ;;  %v7535_v13 = vld [vmem:[%s10506_s0 + $0x10] sm:$0xff]  }
   0x3   :  { %v7533_v6 = vld [vmem:[%s10506_s0] sm:$0xff]   ;;  %v1319_v9 = vand.u32 %v1317_v7, %v281_v3  ;;  %v7534_v11 = vld [vmem:[%s10506_s0 + $0x8] sm:$0xff]   ;;  %v3897_v15 = vld [vmem:[%s10507_s1 + $0x38] sm:$0xff] }
   0x4   :  { %6982 = vmatprep.mubr.msk.bf16.mxu0 %vm929_vm2, %v7533_v6  ;;  %v3895_v12 = vld [vmem:[%s10507_s1 + $0x28] sm:$0xff]  ;;  %v3894_v14 = vld [vmem:[%s10507_s1 + $0x20] sm:$0xff]  ;;  %v3896_v16 = vld [vmem:[%s10507_s1 + $0x30] sm:$0xff] }
   0x5   :  { %6980 = vmatprep.subr.bf16.mxu0 %v1319_v9  ;;  %v7536_v17 = vld [vmem:[%s10506_s0 + $0x18] sm:$0xff]   ;;  %v3899_v18 = vld [vmem:[%s10507_s1 + $0x48] sm:$0xff]  ;;  %v7537_v19 = vld [vmem:[%s10506_s0 + $0x20] sm:$0xff]  }
   0x6   :  { %4163 = vperm.xlu1 %7532, %v3893_v8   ;;  %4153 = vperm.xlu0 %7531, %v3891_v10   ;;  %v3898_v20 = vld [vmem:[%s10507_s1 + $0x40] sm:$0xff]  ;;  %v3901_v21 = vld [vmem:[%s10507_s1 + $0x58] sm:$0xff]  ;;  %v3900_v22 = vld [vmem:[%s10507_s1 + $0x50] sm:$0xff] }
   0x7   :  { %6981 = vmatpush3.bf16.msra.mxu0 %v1319_v9  ;;  %v7538_v23 = vld [vmem:[%s10506_s0 + $0x28] sm:$0xff]   ;;  %v7539_v25 = vld [vmem:[%s10506_s0 + $0x30] sm:$0xff]   ;;  %v3902_v26 = vld [vmem:[%s10507_s1 + $0x60] sm:$0xff] }
   0x8   :  { %v3903_v24 = vld [vmem:[%s10507_s1 + $0x68] sm:$0xff]  ;;  %v3905_v27 = vld [vmem:[%s10507_s1 + $0x78] sm:$0xff]  ;;  %v3904_v28 = vld [vmem:[%s10507_s1 + $0x70] sm:$0xff] }
   0x9   :  { %v7540_v29 = vld [vmem:[%s10506_s0 + $0x38] sm:$0xff]   ;;  %v3907_v30 = vld [vmem:[%s10507_s1 + $0x88] sm:$0xff]  ;;  %v7541_v31 = vld [vmem:[%s10506_s0 + $0x40] sm:$0xff]  }
   0xa   :  { %6983 = vmatmul.mubr.msk.bf16.vlgmr.msra.gmra.mrb[0].mxu0 %vm929_vm2, %v7534_v11  ;;  %4173 = vperm.xlu1 %7532, %v3895_v12   ;;  %v3906_v32 = vld [vmem:[%s10507_s1 + $0x80] sm:$0xff]  ;;  %v3909_v33 = vld [vmem:[%s10507_s1 + $0x98] sm:$0xff]  ;;  %v3908_v34 = vld [vmem:[%s10507_s1 + $0x90] sm:$0xff] }
   0xb   :  { %4168 = vperm.xlu0 %7531, %v3894_v14   ;;  %6986 = vmatprep.mubr.msk.bf16.mxu0 %vm929_vm2, %v7535_v13  ;;  %v7542_v35 = vld [vmem:[%s10506_s0 + $0x48] sm:$0xff]   ;;  %v7543_v37 = vld [vmem:[%s10506_s0 + $0x50] sm:$0xff]   ;;  %v3910_v38 = vld [vmem:[%s10507_s1 + $0xa0] sm:$0xff] }
   0xc   :  { %v3911_v36 = vld [vmem:[%s10507_s1 + $0xa8] sm:$0xff]  ;;  %v3913_v39 = vld [vmem:[%s10507_s1 + $0xb8] sm:$0xff]  ;;  %v3912_v40 = vld [vmem:[%s10507_s1 + $0xb0] sm:$0xff] }
   0xd   :  { %v7544_v41 = vld [vmem:[%s10506_s0 + $0x58] sm:$0xff]   ;;  %v3915_v42 = vld [vmem:[%s10507_s1 + $0xc8] sm:$0xff]  ;;  %v7545_v43 = vld [vmem:[%s10506_s0 + $0x60] sm:$0xff]  }
   0xe   :  { %4183 = vperm.xlu1 %7532, %v3897_v15   ;;  %v3914_v44 = vld [vmem:[%s10507_s1 + $0xc0] sm:$0xff]  ;;  %v3917_v45 = vld [vmem:[%s10507_s1 + $0xd8] sm:$0xff]  ;;  %v3916_v46 = vld [vmem:[%s10507_s1 + $0xd0] sm:$0xff] }
   0xf   :  { %4178 = vperm.xlu0 %7531, %v3896_v16   ;;  %v7546_v47 = vld [vmem:[%s10506_s0 + $0x68] sm:$0xff]   ;;  %v7547_v49 = vld [vmem:[%s10506_s0 + $0x70] sm:$0xff]   ;;  %v3918_v50 = vld [vmem:[%s10507_s1 + $0xe0] sm:$0xff] }
  0x10   :  { %v3919_v48 = vld [vmem:[%s10507_s1 + $0xe8] sm:$0xff]  ;;  %v3921_v51 = vld [vmem:[%s10507_s1 + $0xf8] sm:$0xff]  ;;  %v3920_v52 = vld [vmem:[%s10507_s1 + $0xf0] sm:$0xff] }
  0x11   :  { %v7548_v53 = vld [vmem:[%s10506_s0 + $0x78] sm:$0xff]   ;;  %v3923_v54 = vld [vmem:[%s10507_s1 + $0x108] sm:$0xff]  ;;  %v7549_v55 = vld [vmem:[%s10506_s0 + $0x80] sm:$0xff]  }
  0x12   :  { %6987 = vmatmul.mubr.msk.bf16.gmra.mrb[4].mxu0 %vm929_vm2, %v7536_v17  ;;  %4193 = vperm.xlu1 %7532, %v3899_v18   ;;  %v3922_v56 = vld [vmem:[%s10507_s1 + $0x100] sm:$0xff]  ;;  %v3925_v57 = vld [vmem:[%s10507_s1 + $0x118] sm:$0xff]  ;;  %v3924_v58 = vld [vmem:[%s10507_s1 + $0x110] sm:$0xff] }
  0x13   :  { %4188 = vperm.xlu0 %7531, %v3898_v20   ;;  %6990 = vmatprep.mubr.msk.bf16.mxu0 %vm929_vm2, %v7537_v19  ;;  %v7550_v59 = vld [vmem:[%s10506_s0 + $0x88] sm:$0xff]   ;;  %v7551_v61 = vld [vmem:[%s10506_s0 + $0x90] sm:$0xff]   ;;  %v3926_v62 = vld [vmem:[%s10507_s1 + $0x120] sm:$0xff] }
  0x14   :  { %v3927_v60 = vld [vmem:[%s10507_s1 + $0x128] sm:$0xff]  ;;  %v3929_v63 = vld [vmem:[%s10507_s1 + $0x138] sm:$0xff]  ;;  %v3928_v0 = vld [vmem:[%s10507_s1 + $0x130] sm:$0xff] }
  0x15   :  { %v7552_v1 = vld [vmem:[%s10506_s0 + $0x98] sm:$0xff]   ;;  %v3931_v2 = vld [vmem:[%s10507_s1 + $0x148] sm:$0xff]  ;;  %v7553_v3 = vld [vmem:[%s10506_s0 + $0xa0] sm:$0xff]  }
  0x16   :  { %4203 = vperm.xlu1 %7532, %v3901_v21   ;;  %v3930_v4 = vld [vmem:[%s10507_s1 + $0x140] sm:$0xff]  ;;  %v3933_v5 = vld [vmem:[%s10507_s1 + $0x158] sm:$0xff]  ;;  %v3932_v6 = vld [vmem:[%s10507_s1 + $0x150] sm:$0xff] }
  0x17   :  { %4198 = vperm.xlu0 %7531, %v3900_v22   ;;  %v7554_v7 = vld [vmem:[%s10506_s0 + $0xa8] sm:$0xff]   ;;  %v7583_v8 = vld [vmem:[%s10510_s4] sm:$0xff]   ;;  %v7555_v10 = vld [vmem:[%s10506_s0 + $0xb0] sm:$0xff]  }
  0x18   :  { %v3935_v9 = vld [vmem:[%s10507_s1 + $0x168] sm:$0xff]  ;;  %7510 = vmatprep.subr.bf16.mxu1 %v7583_v8  ;;  %v3934_v11 = vld [vmem:[%s10507_s1 + $0x160] sm:$0xff]  ;;  %7238 = vmatprep.subr.bf16.mxu0 %v7583_v8  ;;  %v3937_v13 = vld [vmem:[%s10507_s1 + $0x178] sm:$0xff] }
  0x19   :  { %7518 = vmatpush3.bf16.msra.mxu1 %v7583_v8  ;;  %7239 = vmatpush3.bf16.msra.mxu0 %v7583_v8  ;;  %v7586_v12 = vld [vmem:[%s10510_s4 + $0x8] sm:$0xff]   ;;  %v7587_v14 = vld [vmem:[%s10510_s4 + $0x10] sm:$0xff]   ;;  %v7556_v16 = vld [vmem:[%s10506_s0 + $0xb8] sm:$0xff]  }
  0x1a   :  { %6991 = vmatmul.mubr.msk.bf16.gmra.mrb[8].mxu0 %vm929_vm2, %v7538_v23  ;;  %4213 = vperm.xlu1 %7532, %v3903_v24   ;;  %v3936_v15 = vld [vmem:[%s10507_s1 + $0x170] sm:$0xff]  ;;  %v3939_v17 = vld [vmem:[%s10507_s1 + $0x188] sm:$0xff]  ;;  %v3938_v18 = vld [vmem:[%s10507_s1 + $0x180] sm:$0xff] }
  0x1b   :  { %4208 = vperm.xlu0 %7531, %v3902_v26   ;;  %6994 = vmatprep.mubr.msk.bf16.mxu0 %vm929_vm2, %v7539_v25  ;;  %v7557_v19 = vld [vmem:[%s10506_s0 + $0xc0] sm:$0xff]   ;;  %v7590_v20 = vld [vmem:[%s10510_s4 + $0x18] sm:$0xff]   ;;  %v3940_v23 = vld [vmem:[%s10507_s1 + $0x190] sm:$0xff] }
  0x1c   :  { %7511 = vmatprep.subr.bf16.mxu1 %v7586_v12  ;;  %7240 = vmatprep.subr.bf16.mxu0 %v7586_v12  ;;  %v7591_v21 = vld [vmem:[%s10510_s4 + $0x20] sm:$0xff]   ;;  %v3941_v22 = vld [vmem:[%s10507_s1 + $0x198] sm:$0xff]  ;;  %v7558_v24 = vld [vmem:[%s10506_s0 + $0xc8] sm:$0xff]  }
  0x1d   :  { %7519 = vmatpush3.bf16.msra.mxu1 %v7586_v12  ;;  %7241 = vmatpush3.bf16.msra.mxu0 %v7586_v12  ;;  %v3943_v25 = vld [vmem:[%s10507_s1 + $0x1a8] sm:$0xff]  ;;  %v3942_v26 = vld [vmem:[%s10507_s1 + $0x1a0] sm:$0xff]  ;;  %v3964_v8 = vld [vmem:[%s10507_s1 + $0x250] sm:$0xff] }
  0x1e   :  { %4223 = vperm.xlu1 %7532, %v3905_v27   ;;  %7512 = vmatprep.subr.bf16.mxu1 %v7587_v14  ;;  %v7559_v27 = vld [vmem:[%s10506_s0 + $0xd0] sm:$0xff]   ;;  %v3967_v12 = vld [vmem:[%s10507_s1 + $0x268] sm:$0xff] }
  0x1f   :  { %4218 = vperm.xlu0 %7531, %v3904_v28   ;;  %7242 = vmatprep.subr.bf16.mxu0 %v7587_v14  ;;  %v7594_v28 = vld [vmem:[%s10510_s4 + $0x28] sm:$0xff]  }
  0x21   :  { %7520 = vmatpush3.bf16.msra.mxu1 %v7587_v14  ;;  %7243 = vmatpush3.bf16.msra.mxu0 %v7587_v14  ;;  %v3966_v14 = vld [vmem:[%s10507_s1 + $0x260] sm:$0xff] }
  0x22   :  { %6995 = vmatmul.mubr.msk.bf16.gmra.mrb[12].mxu0 %vm929_vm2, %v7540_v29  ;;  %4233 = vperm.xlu1 %7532, %v3907_v30   ;;  %v3945_v29 = vld [vmem:[%s10507_s1 + $0x1b8] sm:$0xff]  ;;  %v3944_v30 = vld [vmem:[%s10507_s1 + $0x1b0] sm:$0xff] }
  0x23   :  { %4228 = vperm.xlu0 %7531, %v3906_v32   ;;  %6998 = vmatprep.mubr.msk.bf16.mxu0 %vm929_vm2, %v7541_v31  ;;  %v7595_v31 = vld [vmem:[%s10510_s4 + $0x30] sm:$0xff]   ;;  %v7560_v32 = vld [vmem:[%s10506_s0 + $0xd8] sm:$0xff]  }
  0x24   :  { %7513 = vmatprep.subr.bf16.mxu1 %v7590_v20  ;;  %7244 = vmatprep.subr.bf16.mxu0 %v7590_v20 }
  0x25   :  { %7521 = vmatpush3.bf16.msra.mxu1 %v7590_v20  ;;  %7245 = vmatpush3.bf16.msra.mxu0 %v7590_v20 }
  0x26   :  { %4243 = vperm.xlu1 %7532, %v3909_v33   ;;  %7514 = vmatprep.subr.bf16.mxu1 %v7591_v21  ;;  %v3947_v33 = vld [vmem:[%s10507_s1 + $0x1c8] sm:$0xff] }
  0x27   :  { %4238 = vperm.xlu0 %7531, %v3908_v34   ;;  %7246 = vmatprep.subr.bf16.mxu0 %v7591_v21  ;;  %v3946_v34 = vld [vmem:[%s10507_s1 + $0x1c0] sm:$0xff] }
  0x29   :  { %7522 = vmatpush3.bf16.msra.mxu1 %v7591_v21  ;;  %7247 = vmatpush3.bf16.msra.mxu0 %v7591_v21  ;;  %v7572_v21 = vld [vmem:[%s10506_s0 + $0x138] sm:$0xff]  }
  0x2a   :  { %6999 = vmatmul.mubr.msk.bf16.gmra.mrb[16].mxu0 %vm929_vm2, %v7542_v35  ;;  %4253 = vperm.xlu1 %7532, %v3911_v36   ;;  %v7561_v35 = vld [vmem:[%s10506_s0 + $0xe0] sm:$0xff]   ;;  %v7598_v36 = vld [vmem:[%s10510_s4 + $0x38] sm:$0xff]  }
  0x2b   :  { %4248 = vperm.xlu0 %7531, %v3910_v38   ;;  %7002 = vmatprep.mubr.msk.bf16.mxu0 %vm929_vm2, %v7543_v37  ;;  %v3949_v37 = vld [vmem:[%s10507_s1 + $0x1d8] sm:$0xff]  ;;  %v3948_v38 = vld [vmem:[%s10507_s1 + $0x1d0] sm:$0xff] }
  0x2c   :  { %7515 = vmatprep.subr.bf16.mxu1 %v7594_v28  ;;  %7248 = vmatprep.subr.bf16.mxu0 %v7594_v28 }
  0x2d   :  { %7523 = vmatpush3.bf16.msra.mxu1 %v7594_v28  ;;  %7249 = vmatpush3.bf16.msra.mxu0 %v7594_v28  ;;  %v3972_v28 = vld [vmem:[%s10507_s1 + $0x290] sm:$0xff] }
  0x2e   :  { %4263 = vperm.xlu1 %7532, %v3913_v39   ;;  %7516 = vmatprep.subr.bf16.mxu1 %v7595_v31  ;;  %v7562_v39 = vld [vmem:[%s10506_s0 + $0xe8] sm:$0xff]  }
  0x2f   :  { %4258 = vperm.xlu0 %7531, %v3912_v40   ;;  %7250 = vmatprep.subr.bf16.mxu0 %v7595_v31  ;;  %v3951_v40 = vld [vmem:[%s10507_s1 + $0x1e8] sm:$0xff] }
  0x31   :  { %7524 = vmatpush3.bf16.msra.mxu1 %v7595_v31  ;;  %7251 = vmatpush3.bf16.msra.mxu0 %v7595_v31  ;;  %v7574_v31 = vld [vmem:[%s10506_s0 + $0x148] sm:$0xff]  }
  0x32   :  { %7003 = vmatmul.mubr.msk.bf16.gmra.mrb[20].mxu0 %vm929_vm2, %v7544_v41  ;;  %4273 = vperm.xlu1 %7532, %v3915_v42   ;;  %v7563_v41 = vld [vmem:[%s10506_s0 + $0xf0] sm:$0xff]   ;;  %v3950_v42 = vld [vmem:[%s10507_s1 + $0x1e0] sm:$0xff] }
  0x33   :  { %4268 = vperm.xlu0 %7531, %v3914_v44   ;;  %7006 = vmatprep.mubr.msk.bf16.mxu0 %vm929_vm2, %v7545_v43  ;;  %v3953_v43 = vld [vmem:[%s10507_s1 + $0x1f8] sm:$0xff]  ;;  %v3952_v44 = vld [vmem:[%s10507_s1 + $0x1f0] sm:$0xff] }
  0x34   :  { %7517 = vmatprep.subr.bf16.mxu1 %v7598_v36  ;;  %7252 = vmatprep.subr.bf16.mxu0 %v7598_v36 }
  0x35   :  { %7525 = vmatpush3.bf16.msra.mxu1 %v7598_v36  ;;  %7253 = vmatpush3.bf16.msra.mxu0 %v7598_v36 }
  0x36   :  { %4283 = vperm.xlu1 %7532, %v3917_v45   ;;  %v7564_v45 = vld [vmem:[%s10506_s0 + $0xf8] sm:$0xff]  }
  0x37   :  { %4278 = vperm.xlu0 %7531, %v3916_v46   ;;  %v3955_v46 = vld [vmem:[%s10507_s1 + $0x208] sm:$0xff] }
  0x3a   :  { %7007 = vmatmul.mubr.msk.bf16.gmra.mrb[24].mxu0 %vm929_vm2, %v7546_v47  ;;  %4293 = vperm.xlu1 %7532, %v3919_v48   ;;  %v7565_v47 = vld [vmem:[%s10506_s0 + $0x100] sm:$0xff]  }
  0x3b   :  { %4288 = vperm.xlu0 %7531, %v3918_v50   ;;  %7010 = vmatprep.mubr.msk.bf16.mxu0 %vm929_vm2, %v7547_v49  ;;  %v3954_v48 = vld [vmem:[%s10507_s1 + $0x200] sm:$0xff] }
  0x3e   :  { %4303 = vperm.xlu1 %7532, %v3921_v51   ;;  %v3957_v51 = vld [vmem:[%s10507_s1 + $0x218] sm:$0xff] }
  0x3f   :  { %4298 = vperm.xlu0 %7531, %v3920_v52   ;;  %v3956_v52 = vld [vmem:[%s10507_s1 + $0x210] sm:$0xff] }
  0x42   :  { %7011 = vmatmul.mubr.msk.bf16.gmra.mrb[28].mxu0 %vm929_vm2, %v7548_v53  ;;  %4313 = vperm.xlu1 %7532, %v3923_v54  }
  0x43   :  { %4308 = vperm.xlu0 %7531, %v3922_v56   ;;  %7014 = vmatprep.mubr.msk.bf16.mxu0 %vm929_vm2, %v7549_v55  ;;  %v7566_v55 = vld [vmem:[%s10506_s0 + $0x108] sm:$0xff]  }
  0x44   :  { %v3959_v56 = vld [vmem:[%s10507_s1 + $0x228] sm:$0xff] }
  0x46   :  { %4323 = vperm.xlu1 %7532, %v3925_v57   ;;  %v7567_v57 = vld [vmem:[%s10506_s0 + $0x110] sm:$0xff]  }
  0x47   :  { %4318 = vperm.xlu0 %7531, %v3924_v58   ;;  %v3958_v58 = vld [vmem:[%s10507_s1 + $0x220] sm:$0xff] }
  0x4a   :  { %7015 = vmatmul.mubr.msk.bf16.gmra.mrb[32].mxu0 %vm929_vm2, %v7550_v59  ;;  %4333 = vperm.xlu1 %7532, %v3927_v60  }
  0x4b   :  { %4328 = vperm.xlu0 %7531, %v3926_v62   ;;  %7018 = vmatprep.mubr.msk.bf16.mxu0 %vm929_vm2, %v7551_v61  ;;  %v3961_v61 = vld [vmem:[%s10507_s1 + $0x238] sm:$0xff]  ;;  %v3960_v62 = vld [vmem:[%s10507_s1 + $0x230] sm:$0xff] }
  0x4e   :  { %4343 = vperm.xlu1 %7532, %v3929_v63  }
  0x4f   :  { %4338 = vperm.xlu0 %7531, %v3928_v0  }
  0x52   :  { %7019 = vmatmul.mubr.msk.bf16.gmra.mrb[36].mxu0 %vm929_vm2, %v7552_v1  ;;  %4353 = vperm.xlu1 %7532, %v3931_v2   ;;  %v7568_v1 = vld [vmem:[%s10506_s0 + $0x118] sm:$0xff]   ;;  %v3963_v2 = vld [vmem:[%s10507_s1 + $0x248] sm:$0xff] }
  0x53   :  { %4348 = vperm.xlu0 %7531, %v3930_v4   ;;  %7022 = vmatprep.mubr.msk.bf16.mxu0 %vm929_vm2, %v7553_v3  ;;  %v7569_v3 = vld [vmem:[%s10506_s0 + $0x120] sm:$0xff]  }
  0x54   :  { %v3962_v4 = vld [vmem:[%s10507_s1 + $0x240] sm:$0xff] }
  0x56   :  { %4363 = vperm.xlu1 %7532, %v3933_v5  }
  0x57   :  { %4358 = vperm.xlu0 %7531, %v3932_v6  }
  0x5a   :  { %7023 = vmatmul.mubr.msk.bf16.gmra.mrb[40].mxu0 %vm929_vm2, %v7554_v7  ;;  %4373 = vperm.xlu1 %7532, %v3935_v9   ;;  %v3965_v7 = vld [vmem:[%s10507_s1 + $0x258] sm:$0xff] }
  0x5b   :  { %4368 = vperm.xlu0 %7531, %v3934_v11   ;;  %7026 = vmatprep.mubr.msk.bf16.mxu0 %vm929_vm2, %v7555_v10  ;;  %v7570_v11 = vld [vmem:[%s10506_s0 + $0x128] sm:$0xff]  }
  0x5e   :  { %4383 = vperm.xlu1 %7532, %v3937_v13   ;;  %v7571_v13 = vld [vmem:[%s10506_s0 + $0x130] sm:$0xff]  }
  0x5f   :  { %4378 = vperm.xlu0 %7531, %v3936_v15  }
  0x62   :  { %7027 = vmatmul.mubr.msk.bf16.gmra.mrb[44].mxu0 %vm929_vm2, %v7556_v16  ;;  %4393 = vperm.xlu1 %7532, %v3939_v17   ;;  %v3969_v17 = vld [vmem:[%s10507_s1 + $0x278] sm:$0xff] }
  0x63   :  { %4388 = vperm.xlu0 %7531, %v3938_v18   ;;  %7030 = vmatprep.mubr.msk.bf16.mxu0 %vm929_vm2, %v7557_v19  ;;  %v3968_v18 = vld [vmem:[%s10507_s1 + $0x270] sm:$0xff] }
  0x66   :  { %4403 = vperm.xlu1 %7532, %v3941_v22   ;;  %v3971_v22 = vld [vmem:[%s10507_s1 + $0x288] sm:$0xff] }
  0x67   :  { %4398 = vperm.xlu0 %7531, %v3940_v23   ;;  %v7573_v23 = vld [vmem:[%s10506_s0 + $0x140] sm:$0xff]  }
  0x6a   :  { %7031 = vmatmul.mubr.msk.bf16.gmra.mrb[48].mxu0 %vm929_vm2, %v7558_v24  ;;  %4413 = vperm.xlu1 %7532, %v3943_v25   ;;  %v3970_v24 = vld [vmem:[%s10507_s1 + $0x280] sm:$0xff] }
  0x6b   :  { %4408 = vperm.xlu0 %7531, %v3942_v26   ;;  %7034 = vmatprep.mubr.msk.bf16.mxu0 %vm929_vm2, %v7559_v27  ;;  %v3973_v27 = vld [vmem:[%s10507_s1 + $0x298] sm:$0xff] }
  0x6e   :  { %4423 = vperm.xlu1 %7532, %v3945_v29  }
  0x6f   :  { %4418 = vperm.xlu0 %7531, %v3944_v30  }
  0x72   :  { %7035 = vmatmul.mubr.msk.bf16.gmra.mrb[52].mxu0 %vm929_vm2, %v7560_v32  ;;  %4433 = vperm.xlu1 %7532, %v3947_v33   ;;  %v3975_v32 = vld [vmem:[%s10507_s1 + $0x2a8] sm:$0xff]  ;;  %v7575_v33 = vld [vmem:[%s10506_s0 + $0x150] sm:$0xff]  }
  0x73   :  { %4428 = vperm.xlu0 %7531, %v3946_v34   ;;  %7038 = vmatprep.mubr.msk.bf16.mxu0 %vm929_vm2, %v7561_v35 }
  0x76   :  { %4443 = vperm.xlu1 %7532, %v3949_v37  }
  0x77   :  { %4438 = vperm.xlu0 %7531, %v3948_v38  }
  0x7a   :  { %7039 = vmatmul.mubr.msk.bf16.gmra.mrb[56].mxu0 %vm929_vm2, %v7562_v39  ;;  %4453 = vperm.xlu1 %7532, %v3951_v40  }
  0x7b   :  { %4448 = vperm.xlu0 %7531, %v3950_v42   ;;  %7042 = vmatprep.mubr.msk.bf16.mxu0 %vm929_vm2, %v7563_v41 }
  0x7e   :  { %4463 = vperm.xlu1 %7532, %v3953_v43  }
  0x7f   :  { %4458 = vperm.xlu0 %7531, %v3952_v44  }
  0x81   :  { %v8096_v49 = vpop.permute.xlu1 %4158  ;;  %v8098_v50 = vpop.permute.xlu0 %4148 }
  0x82   :  { %10513 = vst [vmem:[#allocation5_spill] sm:$0xff] %v8096_v49  ;;  %10514 = vst [vmem:[#allocation6_spill] sm:$0xff] %v8098_v50  ;;  %7043 = vmatmul.mubr.msk.bf16.gmra.mrb[60].mxu0 %vm929_vm2, %v7564_v45  ;;  %4473 = vperm.xlu1 %7532, %v3955_v46  }
  0x83   :  { %4468 = vperm.xlu0 %7531, %v3954_v48   ;;  %7046 = vmatprep.mubr.msk.bf16.mxu0 %vm929_vm2, %v7565_v47 }
  0x85   :  { %v8108_v53 = vpop.permute.xlu1 %4163  ;;  %v8110_v54 = vpop.permute.xlu0 %4153 }
  0x86   :  { %10515 = vst [vmem:[#allocation7_spill] sm:$0xff] %v8108_v53  ;;  %10516 = vst [vmem:[#allocation8_spill] sm:$0xff] %v8110_v54  ;;  %4483 = vperm.xlu1 %7532, %v3957_v51  }
  0x87   :  { %4478 = vperm.xlu0 %7531, %v3956_v52  }
  0x89   :  { %v8124_v59 = vpop.permute.xlu1 %4173 }
  0x8a   :  { %10517 = vst [vmem:[#allocation9_spill] sm:$0xff] %v8124_v59  ;;  %v8126_v60 = vpop.permute.xlu0 %4168  ;;  %7047 = vmatmul.mubr.msk.bf16.gmra.mrb[64].mxu0 %vm929_vm2, %v7566_v55  ;;  %4493 = vperm.xlu1 %7532, %v3959_v56  }
  0x8b   :  { %10518 = vst [vmem:[#allocation10_spill] sm:$0xff] %v8126_v60  ;;  %4488 = vperm.xlu0 %7531, %v3958_v58   ;;  %7050 = vmatprep.mubr.msk.bf16.mxu0 %vm929_vm2, %v7567_v57 }
  0x8d   :  { %v8136_v63 = vpop.permute.xlu1 %4183 }
  0x8e   :  { %10519 = vst [vmem:[#allocation11_spill] sm:$0xff] %v8136_v63  ;;  %v8138_v0 = vpop.permute.xlu0 %4178  ;;  %4503 = vperm.xlu1 %7532, %v3961_v61  }
  0x8f   :  { %10520 = vst [vmem:[#allocation12_spill] sm:$0xff] %v8138_v0  ;;  %4498 = vperm.xlu0 %7531, %v3960_v62  }
  0x91   :  { %v8152_v5 = vpop.permute.xlu1 %4193 }
  0x92   :  { %v8154_v6 = vpop.permute.xlu0 %4188  ;;  %7051 = vmatmul.mubr.msk.bf16.gmra.mrb[68].mxu0 %vm929_vm2, %v7568_v1  ;;  %4513 = vperm.xlu1 %7532, %v3963_v2  }
  0x93   :  { %4508 = vperm.xlu0 %7531, %v3962_v4   ;;  %7054 = vmatprep.mubr.msk.bf16.mxu0 %vm929_vm2, %v7569_v3 }
  0x95   :  { %v8164_v9 = vpop.permute.xlu1 %4203 }
  0x96   :  { %v8166_v10 = vpop.permute.xlu0 %4198  ;;  %4523 = vperm.xlu1 %7532, %v3965_v7  }
  0x97   :  { %4518 = vperm.xlu0 %7531, %v3964_v8  }
  0x99   :  { %v8180_v15 = vpop.permute.xlu1 %4213 }
  0x9a   :  { %v8182_v16 = vpop.permute.xlu0 %4208  ;;  %7055 = vmatmul.mubr.msk.bf16.gmra.mrb[72].mxu0 %vm929_vm2, %v7570_v11  ;;  %4533 = vperm.xlu1 %7532, %v3967_v12  }
  0x9b   :  { %4528 = vperm.xlu0 %7531, %v3966_v14   ;;  %7058 = vmatprep.mubr.msk.bf16.mxu0 %vm929_vm2, %v7571_v13 }
  0x9d   :  { %v8192_v19 = vpop.permute.xlu1 %4223 }
  0x9e   :  { %v8194_v20 = vpop.permute.xlu0 %4218  ;;  %4543 = vperm.xlu1 %7532, %v3969_v17  }
  0x9f   :  { %4538 = vperm.xlu0 %7531, %v3968_v18  }
  0xa1   :  { %v8208_v25 = vpop.permute.xlu1 %4233 }
  0xa2   :  { %v8210_v26 = vpop.permute.xlu0 %4228  ;;  %7059 = vmatmul.mubr.msk.bf16.gmra.mrb[76].mxu0 %vm929_vm2, %v7572_v21  ;;  %4553 = vperm.xlu1 %7532, %v3971_v22  }
  0xa3   :  { %4548 = vperm.xlu0 %7531, %v3970_v24   ;;  %7062 = vmatprep.mubr.msk.bf16.mxu0 %vm929_vm2, %v7573_v23 }
  0xa5   :  { %v8220_v29 = vpop.permute.xlu1 %4243 }
  0xa6   :  { %v8222_v30 = vpop.permute.xlu0 %4238  ;;  %4563 = vperm.xlu1 %7532, %v3973_v27  }
  0xa7   :  { %4558 = vperm.xlu0 %7531, %v3972_v28  }
  0xa8   :  { %11 = vsyncpa [#allocation3], 0  ;;  %v3974_v34 = vld [vmem:[%s10507_s1 + $0x2a0] sm:$0xff]  ;;  %v3977_v37 = vld [vmem:[%s10507_s1 + $0x2b8] sm:$0xff]  ;;  %vm6322_vm5 = vcmask 1041409   ;;  %vm6324_vm7 = vcmask 1042434  }
  0xa9   :  { %v8236_v35 = vpop.permute.xlu1 %4253  ;;  %v3976_v38 = vld [vmem:[%s10507_s1 + $0x2b0] sm:$0xff]  ;;  %v7576_v41 = vld [vmem:[%s10506_s0 + $0x158] sm:$0xff]   ;;  %v3979_v42 = vld [vmem:[%s10507_s1 + $0x2c8] sm:$0xff]  ;;  %vm6326_vm9 = vcmask 1043459   ;;  %vm6328_vm11 = vcmask 1044484   ;;  %vm6330_vm13 = vcmask 1045509  }
  0xaa   :  { %v8238_v36 = vpop.permute.xlu0 %4248  ;;  %7063 = vmatmul.mubr.msk.bf16.gmra.mrb[80].mxu0 %vm929_vm2, %v7574_v31  ;;  %4573 = vperm.xlu1 %7532, %v3975_v32   ;;  %v7577_v43 = vld [vmem:[%s10506_s0 + $0x160] sm:$0xff]   ;;  %v3981_v47 = vld [vmem:[%s10507_s1 + $0x2d8] sm:$0xff]  ;;  %v3980_v48 = vld [vmem:[%s10507_s1 + $0x2d0] sm:$0xff]  ;;  %vm6332_vm15 = vcmask 1046534  }
  0xab   :  { %4568 = vperm.xlu0 %7531, %v3974_v34   ;;  %7066 = vmatprep.mubr.msk.bf16.mxu0 %vm929_vm2, %v7575_v33  ;;  %v3978_v44 = vld [vmem:[%s10507_s1 + $0x2c0] sm:$0xff]  ;;  %v7578_v55 = vld [vmem:[%s10506_s0 + $0x168] sm:$0xff]   ;;  %v7579_v57 = vld [vmem:[%s10506_s0 + $0x170] sm:$0xff]  }
  0xac   :  { %v3983_v56 = vld [vmem:[%s10507_s1 + $0x2e8] sm:$0xff]  ;;  %v3982_v58 = vld [vmem:[%s10507_s1 + $0x2e0] sm:$0xff]  ;;  %v3985_v1 = vld [vmem:[%s10507_s1 + $0x2f8] sm:$0xff] }
  0xad   :  { %v8248_v39 = vpop.permute.xlu1 %4263  ;;  %v3984_v2 = vld [vmem:[%s10507_s1 + $0x2f0] sm:$0xff]  ;;  %v7580_v7 = vld [vmem:[%s10506_s0 + $0x178] sm:$0xff]   ;;  %v3987_v8 = vld [vmem:[%s10507_s1 + $0x308] sm:$0xff] }
  0xae   :  { %v8250_v40 = vpop.permute.xlu0 %4258  ;;  %4583 = vperm.xlu1 %7532, %v3977_v37   ;;  %v7581_v11 = vld [vmem:[%s10506_s0 + $0x180] sm:$0xff]   ;;  %v3989_v17 = vld [vmem:[%s10507_s1 + $0x318] sm:$0xff]  ;;  %v3988_v18 = vld [vmem:[%s10507_s1 + $0x310] sm:$0xff] }
  0xaf   :  { %4578 = vperm.xlu0 %7531, %v3976_v38   ;;  %v3986_v12 = vld [vmem:[%s10507_s1 + $0x300] sm:$0xff]  ;;  %v7582_v23 = vld [vmem:[%s10506_s0 + $0x188] sm:$0xff]   ;;  %v7584_v27 = vld [vmem:[%s10506_s0 + $0x190] sm:$0xff]  }
  0xb0   :  { %v3991_v24 = vld [vmem:[%s10507_s1 + $0x328] sm:$0xff]  ;;  %v3990_v28 = vld [vmem:[%s10507_s1 + $0x320] sm:$0xff]  ;;  %v3993_v33 = vld [vmem:[%s10507_s1 + $0x338] sm:$0xff] }
  0xb1   :  { %v8264_v45 = vpop.permute.xlu1 %4273  ;;  %v3992_v34 = vld [vmem:[%s10507_s1 + $0x330] sm:$0xff] }
  0xb2   :  { %v8266_v46 = vpop.permute.xlu0 %4268  ;;  %7067 = vmatmul.mubr.msk.bf16.gmra.mrb[84].mxu0 %vm929_vm2, %v7576_v41  ;;  %4593 = vperm.xlu1 %7532, %v3979_v42   ;;  %v7585_v41 = vld [vmem:[%s10506_s0 + $0x198] sm:$0xff]   ;;  %v3995_v42 = vld [vmem:[%s10507_s1 + $0x348] sm:$0xff] }
  0xb3   :  { %4588 = vperm.xlu0 %7531, %v3978_v44   ;;  %7070 = vmatprep.mubr.msk.bf16.mxu0 %vm929_vm2, %v7577_v43  ;;  %v7588_v43 = vld [vmem:[%s10506_s0 + $0x1a0] sm:$0xff]  }
  0xb4   :  { %v3994_v44 = vld [vmem:[%s10507_s1 + $0x340] sm:$0xff] }
  0xb5   :  { %v8276_v51 = vpop.permute.xlu1 %4283 }
  0xb6   :  { %v8278_v52 = vpop.permute.xlu0 %4278  ;;  %4603 = vperm.xlu1 %7532, %v3981_v47  }
  0xb7   :  { %4598 = vperm.xlu0 %7531, %v3980_v48  }
  0xb9   :  { %v8292_v61 = vpop.permute.xlu1 %4293 }
  0xba   :  { %v8294_v62 = vpop.permute.xlu0 %4288  ;;  %7071 = vmatmul.mubr.msk.bf16.gmra.mrb[88].mxu0 %vm929_vm2, %v7578_v55  ;;  %4613 = vperm.xlu1 %7532, %v3983_v56   ;;  %v3997_v55 = vld [vmem:[%s10507_s1 + $0x358] sm:$0xff]  ;;  %v3996_v56 = vld [vmem:[%s10507_s1 + $0x350] sm:$0xff] }
  0xbb   :  { %4608 = vperm.xlu0 %7531, %v3982_v58   ;;  %7074 = vmatprep.mubr.msk.bf16.mxu0 %vm929_vm2, %v7579_v57 }
  0xbd   :  { %v8304_v3 = vpop.permute.xlu1 %4303 }
  0xbe   :  { %v8306_v4 = vpop.permute.xlu0 %4298  ;;  %4623 = vperm.xlu1 %7532, %v3985_v1   ;;  %v7589_v1 = vld [vmem:[%s10506_s0 + $0x1a8] sm:$0xff]  }
  0xbf   :  { %4618 = vperm.xlu0 %7531, %v3984_v2   ;;  %v3999_v2 = vld [vmem:[%s10507_s1 + $0x368] sm:$0xff] }
  0xc1   :  { %v8320_v13 = vpop.permute.xlu1 %4313 }
  0xc2   :  { %v8322_v14 = vpop.permute.xlu0 %4308  ;;  %7075 = vmatmul.mubr.msk.bf16.gmra.mrb[92].mxu0 %vm929_vm2, %v7580_v7  ;;  %4633 = vperm.xlu1 %7532, %v3987_v8   ;;  %v7592_v7 = vld [vmem:[%s10506_s0 + $0x1b0] sm:$0xff]   ;;  %v3998_v8 = vld [vmem:[%s10507_s1 + $0x360] sm:$0xff] }
  0xc3   :  { %4628 = vperm.xlu0 %7531, %v3986_v12   ;;  %7078 = vmatprep.mubr.msk.bf16.mxu0 %vm929_vm2, %v7581_v11 }
  0xc5   :  { %v8332_v21 = vpop.permute.xlu1 %4323 }
  0xc6   :  { %v8334_v22 = vpop.permute.xlu0 %4318  ;;  %4643 = vperm.xlu1 %7532, %v3989_v17   ;;  %v8412_v17 = vld [vmem:[%s10509_s3] ss:$0 sm:$0xff] }
  0xc7   :  { %4638 = vperm.xlu0 %7531, %v3988_v18   ;;  %v4001_v18 = vld [vmem:[%s10507_s1 + $0x378] sm:$0xff] }
  0xc9   :  { %v8348_v31 = vpop.permute.xlu1 %4333 }
  0xca   :  { %v8350_v32 = vpop.permute.xlu0 %4328  ;;  %7079 = vmatmul.mubr.msk.bf16.gmra.mrb[96].mxu0 %vm929_vm2, %v7582_v23  ;;  %4653 = vperm.xlu1 %7532, %v3991_v24   ;;  %v4000_v23 = vld [vmem:[%s10507_s1 + $0x370] sm:$0xff] }
  0xcb   :  { %4648 = vperm.xlu0 %7531, %v3990_v28   ;;  %7082 = vmatprep.mubr.msk.bf16.mxu0 %vm929_vm2, %v7584_v27 }
  0xcd   :  { %v8360_v37 = vpop.permute.xlu1 %4343 }
  0xce   :  { %v8362_v38 = vpop.permute.xlu0 %4338  ;;  %4663 = vperm.xlu1 %7532, %v3993_v33  }
  0xcf   :  { %4658 = vperm.xlu0 %7531, %v3992_v34  }
  0xd1   :  { %v8376_v47 = vpop.permute.xlu1 %4353 }
  0xd2   :  { %v8378_v48 = vpop.permute.xlu0 %4348  ;;  %7083 = vmatmul.mubr.msk.bf16.gmra.mrb[100].mxu0 %vm929_vm2, %v7585_v41  ;;  %4673 = vperm.xlu1 %7532, %v3995_v42   ;;  %v7593_v41 = vld [vmem:[%s10506_s0 + $0x1b8] sm:$0xff]  }
  0xd3   :  { %4668 = vperm.xlu0 %7531, %v3994_v44   ;;  %7086 = vmatprep.mubr.msk.bf16.mxu0 %vm929_vm2, %v7588_v43  ;;  %v4003_v44 = vld [vmem:[%s10507_s1 + $0x388] sm:$0xff] }
  0xd5   :  { %v8388_v57 = vpop.permute.xlu1 %4363 }
  0xd6   :  { %v8390_v58 = vpop.permute.xlu0 %4358  ;;  %4683 = vperm.xlu1 %7532, %v3997_v55   ;;  %v7596_v55 = vld [vmem:[%s10506_s0 + $0x1c0] sm:$0xff]  }
  0xd7   :  { %4678 = vperm.xlu0 %7531, %v3996_v56  }
  0xd9   :  { %v8404_v11 = vpop.permute.xlu1 %4373 }
  0xda   :  { %v8406_v12 = vpop.permute.xlu0 %4368  ;;  %7087 = vmatmul.mubr.msk.bf16.gmra.mrb[104].mxu0 %vm929_vm2, %v7589_v1  ;;  %4693 = vperm.xlu1 %7532, %v3999_v2   ;;  %v4002_v2 = vld [vmem:[%s10507_s1 + $0x380] sm:$0xff] }
  0xdb   :  { %4688 = vperm.xlu0 %7531, %v3998_v8   ;;  %7090 = vmatprep.mubr.msk.bf16.mxu0 %vm929_vm2, %v7592_v7 }
  0xdd   :  { %v6984_v24 = vpop.f32.mrb[0].mxu0  ;;  %v8421_v27 = vpop.permute.xlu1 %4383 }
  0xde   :  { %10521 = vst [vmem:[#allocation13_spill] sm:$0xff] %v8421_v27  ;;  %v1364_v28 = vadd.f32 %v6984_v24, %v8412_v17  ;;  %v8424_v33 = vpop.permute.xlu0 %4378  ;;  %v1355_v34 = vpop.f32.mrb[1].mxu0  ;;  %4703 = vperm.xlu1 %7532, %v4001_v18  }
  0xdf   :  { %10522 = vst [vmem:[#allocation14_spill] sm:$0xff] %v8424_v33  ;;  %v1356_v42 = vadd.f32 %v8412_v17, %v1355_v34  ;;  %4698 = vperm.xlu0 %7531, %v4000_v23   ;;  %v6985_v43 = vpop.f32.mrb[2].mxu0 }
  0xe0   :  { %v1367_v56 = vadd.f32 %v6985_v43, %v8412_v17  ;;  %v1358_v1 = vpop.f32.mrb[3].mxu0  ;;  %v2380_v18 = vmax.f32 %v1364_v28, 0.0  ;;  %v4005_v43 = vld [vmem:[%s10507_s1 + $0x398] sm:$0xff]  ;;  %v4004_v28 = vld [vmem:[%s10507_s1 + $0x390] sm:$0xff] }
  0xe1   :  { %v1359_v7 = vadd.f32 %v8412_v17, %v1358_v1  ;;  %v8441_v8 = vpop.permute.xlu1 %4393  ;;  %v2378_v34 = vmax.f32 %v1356_v42, 0.0 }
  0xe2   :  { %10523 = vst [vmem:[#allocation15_spill] sm:$0xff] %v8441_v8  ;;  %v2381_v23 = vmax.f32 %v1367_v56, 0.0  ;;  %v8443_v24 = vpop.permute.xlu0 %4388  ;;  %7091 = vmatmul.mubr.msk.bf16.gmra.mrb[108].mxu0 %vm929_vm2, %v7593_v41  ;;  %4713 = vperm.xlu1 %7532, %v4003_v44  }
  0xe3   :  { %10524 = vst [vmem:[#allocation16_spill] sm:$0xff] %v8443_v24  ;;  %v2379_v53 = vmax.f32 %v1359_v7, 0.0  ;;  %4708 = vperm.xlu0 %7531, %v4002_v2   ;;  %7094 = vmatprep.mubr.msk.bf16.mxu0 %vm929_vm2, %v7596_v55  ;;  %v7597_v55 = vld [vmem:[%s10506_s0 + $0x1c8] sm:$0xff]  }
  0xe4   :  { %v8450_v49 = vpack.c.bf16 %v2381_v23, %v2380_v18  ;;  %v4007_v23 = vld [vmem:[%s10507_s1 + $0x3a8] sm:$0xff] }
  0xe5   :  { %v6988_v56 = vpop.f32.mrb[4].mxu0  ;;  %v8455_v1 = vpop.permute.xlu1 %4403  ;;  %v8457_v41 = vpack.c.bf16 %v2379_v53, %v2378_v34  ;;  %v7599_v53 = vld [vmem:[%s10506_s0 + $0x1d0] sm:$0xff]  }
  0xe6   :  { %10525 = vst [vmem:[#allocation17_spill] sm:$0xff] %v8455_v1  ;;  %v1380_v42 = vadd.f32 %v6988_v56, %v8412_v17  ;;  %v8460_v44 = vpop.permute.xlu0 %4398  ;;  %v1371_v2 = vpop.f32.mrb[5].mxu0  ;;  %4723 = vperm.xlu1 %7532, %v4005_v43   ;;  %v4006_v43 = vld [vmem:[%s10507_s1 + $0x3a0] sm:$0xff] }
  0xe7   :  { %10526 = vst [vmem:[#allocation18_spill] sm:$0xff] %v8460_v44  ;;  %v1372_v7 = vadd.f32 %v8412_v17, %v1371_v2  ;;  %4718 = vperm.xlu0 %7531, %v4004_v28   ;;  %v6989_v18 = vpop.f32.mrb[6].mxu0 }
  0xe8   :  { %v1383_v34 = vadd.f32 %v6989_v18, %v8412_v17  ;;  %v1374_v56 = vpop.f32.mrb[7].mxu0  ;;  %v2384_v28 = vmax.f32 %v1380_v42, 0.0  ;;  %v4009_v18 = vld [vmem:[%s10507_s1 + $0x3b8] sm:$0xff]  ;;  %v4008_v42 = vld [vmem:[%s10507_s1 + $0x3b0] sm:$0xff] }
  0xe9   :  { %v1375_v54 = vadd.f32 %v8412_v17, %v1374_v56  ;;  %v8477_v2 = vpop.permute.xlu1 %4413  ;;  %v2382_v63 = vmax.f32 %v1372_v7, 0.0 }
  0xea   :  { %10527 = vst [vmem:[#allocation19_spill] sm:$0xff] %v8477_v2  ;;  %v2385_v50 = vmax.f32 %v1383_v34, 0.0  ;;  %v8479_v59 = vpop.permute.xlu0 %4408  ;;  %7095 = vmatmul.mubr.msk.bf16.gmra.mrb[112].mxu0 %vm929_vm2, %v7597_v55  ;;  %4733 = vperm.xlu1 %7532, %v4007_v23   ;;  %v7600_v23 = vld [vmem:[%s10506_s0 + $0x1d8] sm:$0xff]  }
  0xeb   :  { %10528 = vst [vmem:[#allocation20_spill] sm:$0xff] %v8479_v59  ;;  %v2383_v60 = vmax.f32 %v1375_v54, 0.0  ;;  %4728 = vperm.xlu0 %7531, %v4006_v43   ;;  %7098 = vmatprep.mubr.msk.bf16.mxu0 %vm929_vm2, %v7599_v53  ;;  %v4011_v43 = vld [vmem:[%s10507_s1 + $0x3c8] sm:$0xff] }
  0xec   :  { %v2637_v0 = vpack.c.bf16 %v2385_v50, %v2384_v28 }
  0xed   :  { %v6992_v34 = vpop.f32.mrb[8].mxu0  ;;  %v8489_v56 = vpop.permute.xlu1 %4423  ;;  %v2636_v2 = vpack.c.bf16 %v2383_v60, %v2382_v63  ;;  %v7601_v60 = vld [vmem:[%s10506_s0 + $0x1e0] sm:$0xff]  }
  0xee   :  { %10529 = vst [vmem:[#allocation21_spill] sm:$0xff] %v8489_v56  ;;  %v1396_v55 = vadd.f32 %v6992_v34, %v8412_v17  ;;  %v8492_v7 = vpop.permute.xlu0 %4418  ;;  %v1387_v54 = vpop.f32.mrb[9].mxu0  ;;  %4743 = vperm.xlu1 %7532, %v4009_v18   ;;  %v4010_v18 = vld [vmem:[%s10507_s1 + $0x3c0] sm:$0xff] }
  0xef   :  { %10530 = vst [vmem:[#allocation22_spill] sm:$0xff] %v8492_v7  ;;  %v1388_v50 = vadd.f32 %v8412_v17, %v1387_v54  ;;  %4738 = vperm.xlu0 %7531, %v4008_v42   ;;  %v6993_v53 = vpop.f32.mrb[10].mxu0  ;;  %7258 = vmatprep.mubr.bf16.mxu1 %v2636_v2 }
  0xf0   :  { %v1399_v63 = vadd.f32 %v6993_v53, %v8412_v17  ;;  %v1390_v28 = vpop.f32.mrb[11].mxu0  ;;  %7259 = vmatmul.mubr.bf16.vlgmr.msra.gmra.mrb[0].mxu1 %v2637_v0  ;;  %v2388_v2 = vmax.f32 %v1396_v55, 0.0  ;;  %v4013_v0 = vld [vmem:[%s10507_s1 + $0x3d8] sm:$0xff]  ;;  %v4012_v55 = vld [vmem:[%s10507_s1 + $0x3d0] sm:$0xff] }
  0xf1   :  { %v1391_v42 = vadd.f32 %v8412_v17, %v1390_v28  ;;  %v8509_v34 = vpop.permute.xlu1 %4433  ;;  %v2386_v7 = vmax.f32 %v1388_v50, 0.0 }
  0xf2   :  { %10531 = vst [vmem:[#allocation23_spill] sm:$0xff] %v8509_v34  ;;  %v2389_v54 = vmax.f32 %v1399_v63, 0.0  ;;  %v8511_v56 = vpop.permute.xlu0 %4428  ;;  %7099 = vmatmul.mubr.msk.bf16.gmra.mrb[116].mxu0 %vm929_vm2, %v7600_v23  ;;  %4753 = vperm.xlu1 %7532, %v4011_v43  }
  0xf3   :  { %10532 = vst [vmem:[#allocation24_spill] sm:$0xff] %v8511_v56  ;;  %v2387_v59 = vmax.f32 %v1391_v42, 0.0  ;;  %4748 = vperm.xlu0 %7531, %v4010_v18   ;;  %7102 = vmatprep.mubr.msk.bf16.mxu0 %vm929_vm2, %v7601_v60  ;;  %v7602_v18 = vld [vmem:[%s10506_s0 + $0x1e8] sm:$0xff]  }
  0xf4   :  { %v2639_v53 = vpack.c.bf16 %v2389_v54, %v2388_v2 }
  0xf5   :  { %v2638_v63 = vpack.c.bf16 %v2387_v59, %v2386_v7  ;;  %v6996_v28 = vpop.f32.mrb[12].mxu0  ;;  %v8521_v34 = vpop.permute.xlu1 %4443  ;;  %v4015_v59 = vld [vmem:[%s10507_s1 + $0x3e8] sm:$0xff]  ;;  %v7603_v7 = vld [vmem:[%s10506_s0 + $0x1f0] sm:$0xff]  }
  0xf6   :  { %10533 = vst [vmem:[#allocation25_spill] sm:$0xff] %v8521_v34  ;;  %v1412_v23 = vadd.f32 %v6996_v28, %v8412_v17  ;;  %v8524_v50 = vpop.permute.xlu0 %4438  ;;  %v1403_v43 = vpop.f32.mrb[13].mxu0  ;;  %4763 = vperm.xlu1 %7532, %v4013_v0   ;;  %v4014_v0 = vld [vmem:[%s10507_s1 + $0x3e0] sm:$0xff] }
  0xf7   :  { %10534 = vst [vmem:[#allocation26_spill] sm:$0xff] %v8524_v50  ;;  %v1404_v60 = vadd.f32 %v8412_v17, %v1403_v43  ;;  %4758 = vperm.xlu0 %7531, %v4012_v55   ;;  %v6997_v42 = vpop.f32.mrb[14].mxu0  ;;  %7262 = vmatprep.mubr.bf16.mxu1 %v2638_v63 }
  0xf8   :  { %v1415_v2 = vadd.f32 %v6997_v42, %v8412_v17  ;;  %v1406_v54 = vpop.f32.mrb[15].mxu0  ;;  %7263 = vmatmul.mubr.bf16.gmra.mrb[4].mxu1 %v2639_v53  ;;  %v2392_v63 = vmax.f32 %v1412_v23, 0.0  ;;  %v4017_v53 = vld [vmem:[%s10507_s1 + $0x3f8] sm:$0xff]  ;;  %v4016_v23 = vld [vmem:[%s10507_s1 + $0x3f0] sm:$0xff] }
  0xf9   :  { %v1407_v55 = vadd.f32 %v8412_v17, %v1406_v54  ;;  %v8541_v28 = vpop.permute.xlu1 %4453  ;;  %v2390_v50 = vmax.f32 %v1404_v60, 0.0 }
  0xfa   :  { %10535 = vst [vmem:[#allocation27_spill] sm:$0xff] %v8541_v28  ;;  %v2393_v43 = vmax.f32 %v1415_v2, 0.0  ;;  %v8543_v34 = vpop.permute.xlu0 %4448  ;;  %7103 = vmatmul.mubr.msk.bf16.gmra.mrb[120].mxu0 %vm929_vm2, %v7602_v18  ;;  %4773 = vperm.xlu1 %7532, %v4015_v59  }
  0xfb   :  { %10536 = vst [vmem:[#allocation28_spill] sm:$0xff] %v8543_v34  ;;  %v2391_v56 = vmax.f32 %v1407_v55, 0.0  ;;  %4768 = vperm.xlu0 %7531, %v4014_v0   ;;  %7106 = vmatprep.mubr.msk.bf16.mxu0 %vm929_vm2, %v7603_v7  ;;  %v7604_v0 = vld [vmem:[%s10506_s0 + $0x1f8] sm:$0xff]  }
  0xfc   :  { %v2641_v42 = vpack.c.bf16 %v2393_v43, %v2392_v63 }
  0xfd   :  { %v2640_v2 = vpack.c.bf16 %v2391_v56, %v2390_v50  ;;  %v7000_v54 = vpop.f32.mrb[16].mxu0  ;;  %v8553_v28 = vpop.permute.xlu1 %4463  ;;  %v4019_v56 = vld [vmem:[%s10507_s1 + $0x408] sm:$0xff]  ;;  %v7605_v50 = vld [vmem:[%s10506_s0 + $0x200] sm:$0xff]  }
  0xfe   :  { %10537 = vst [vmem:[#allocation29_spill] sm:$0xff] %v8553_v28  ;;  %v1428_v18 = vadd.f32 %v7000_v54, %v8412_v17  ;;  %v8556_v60 = vpop.permute.xlu0 %4458  ;;  %v1419_v59 = vpop.f32.mrb[17].mxu0  ;;  %4783 = vperm.xlu1 %7532, %v4017_v53   ;;  %v4018_v53 = vld [vmem:[%s10507_s1 + $0x400] sm:$0xff] }
  0xff   :  { %10538 = vst [vmem:[#allocation30_spill] sm:$0xff] %v8556_v60  ;;  %v1420_v7 = vadd.f32 %v8412_v17, %v1419_v59  ;;  %4778 = vperm.xlu0 %7531, %v4016_v23   ;;  %v7001_v55 = vpop.f32.mrb[18].mxu0  ;;  %7266 = vmatprep.mubr.bf16.mxu1 %v2640_v2 }
 0x100   :  { %v1431_v63 = vadd.f32 %v7001_v55, %v8412_v17  ;;  %v1422_v43 = vpop.f32.mrb[19].mxu0  ;;  %7267 = vmatmul.mubr.bf16.gmra.mrb[8].mxu1 %v2641_v42  ;;  %v2396_v2 = vmax.f32 %v1428_v18, 0.0  ;;  %v4021_v42 = vld [vmem:[%s10507_s1 + $0x418] sm:$0xff]  ;;  %v4020_v18 = vld [vmem:[%s10507_s1 + $0x410] sm:$0xff] }
 0x101   :  { %v1423_v23 = vadd.f32 %v8412_v17, %v1422_v43  ;;  %v8573_v54 = vpop.permute.xlu1 %4473  ;;  %v2394_v60 = vmax.f32 %v1420_v7, 0.0 }
 0x102   :  { %10539 = vst [vmem:[#allocation31_spill] sm:$0xff] %v8573_v54  ;;  %v2397_v59 = vmax.f32 %v1431_v63, 0.0  ;;  %v8575_v28 = vpop.permute.xlu0 %4468  ;;  %7107 = vmatmul.mubr.msk.bf16.gmra.mrb[124].mxu0 %vm929_vm2, %v7604_v0  ;;  %4793 = vperm.xlu1 %7532, %v4019_v56  }
 0x103   :  { %10540 = vst [vmem:[#allocation32_spill] sm:$0xff] %v8575_v28  ;;  %v2395_v34 = vmax.f32 %v1423_v23, 0.0  ;;  %4788 = vperm.xlu0 %7531, %v4018_v53   ;;  %7110 = vmatprep.mubr.msk.bf16.mxu0 %vm929_vm2, %v7605_v50  ;;  %v7606_v53 = vld [vmem:[%s10506_s0 + $0x208] sm:$0xff]  }
 0x104   :  { %v2643_v55 = vpack.c.bf16 %v2397_v59, %v2396_v2 }
 0x105   :  { %v2642_v63 = vpack.c.bf16 %v2395_v34, %v2394_v60  ;;  %v7004_v43 = vpop.f32.mrb[20].mxu0  ;;  %v8585_v54 = vpop.permute.xlu1 %4483  ;;  %v4023_v34 = vld [vmem:[%s10507_s1 + $0x428] sm:$0xff]  ;;  %v7607_v60 = vld [vmem:[%s10506_s0 + $0x210] sm:$0xff]  }
 0x106   :  { %10541 = vst [vmem:[#allocation33_spill] sm:$0xff] %v8585_v54  ;;  %v1444_v0 = vadd.f32 %v7004_v43, %v8412_v17  ;;  %v8588_v7 = vpop.permute.xlu0 %4478  ;;  %v1435_v56 = vpop.f32.mrb[21].mxu0  ;;  %4803 = vperm.xlu1 %7532, %v4021_v42   ;;  %v4022_v42 = vld [vmem:[%s10507_s1 + $0x420] sm:$0xff] }
 0x107   :  { %10542 = vst [vmem:[#allocation34_spill] sm:$0xff] %v8588_v7  ;;  %v1436_v50 = vadd.f32 %v8412_v17, %v1435_v56  ;;  %4798 = vperm.xlu0 %7531, %v4020_v18   ;;  %v7005_v23 = vpop.f32.mrb[22].mxu0  ;;  %7270 = vmatprep.mubr.bf16.mxu1 %v2642_v63 }
 0x108   :  { %v1447_v2 = vadd.f32 %v7005_v23, %v8412_v17  ;;  %v1438_v59 = vpop.f32.mrb[23].mxu0  ;;  %7271 = vmatmul.mubr.bf16.gmra.mrb[12].mxu1 %v2643_v55  ;;  %v2400_v63 = vmax.f32 %v1444_v0, 0.0  ;;  %v4025_v55 = vld [vmem:[%s10507_s1 + $0x438] sm:$0xff]  ;;  %v4024_v0 = vld [vmem:[%s10507_s1 + $0x430] sm:$0xff] }
 0x109   :  { %v1439_v18 = vadd.f32 %v8412_v17, %v1438_v59  ;;  %v8605_v43 = vpop.permute.xlu1 %4493  ;;  %v2398_v7 = vmax.f32 %v1436_v50, 0.0 }
 0x10a   :  { %10543 = vst [vmem:[#allocation35_spill] sm:$0xff] %v8605_v43  ;;  %v2401_v56 = vmax.f32 %v1447_v2, 0.0  ;;  %v8607_v54 = vpop.permute.xlu0 %4488  ;;  %7111 = vmatmul.mubr.msk.bf16.gmra.mrb[128].mxu0 %vm929_vm2, %v7606_v53  ;;  %4813 = vperm.xlu1 %7532, %v4023_v34  }
 0x10b   :  { %10544 = vst [vmem:[#allocation36_spill] sm:$0xff] %v8607_v54  ;;  %v2399_v28 = vmax.f32 %v1439_v18, 0.0  ;;  %4808 = vperm.xlu0 %7531, %v4022_v42   ;;  %7114 = vmatprep.mubr.msk.bf16.mxu0 %vm929_vm2, %v7607_v60  ;;  %v7608_v42 = vld [vmem:[%s10506_s0 + $0x218] sm:$0xff]  }
 0x10c   :  { %v2645_v23 = vpack.c.bf16 %v2401_v56, %v2400_v63 }
 0x10d   :  { %v2644_v2 = vpack.c.bf16 %v2399_v28, %v2398_v7  ;;  %v7008_v59 = vpop.f32.mrb[24].mxu0  ;;  %v8617_v43 = vpop.permute.xlu1 %4503  ;;  %v4027_v28 = vld [vmem:[%s10507_s1 + $0x448] sm:$0xff]  ;;  %v7609_v7 = vld [vmem:[%s10506_s0 + $0x220] sm:$0xff]  }
 0x10e   :  { %10545 = vst [vmem:[#allocation37_spill] sm:$0xff] %v8617_v43  ;;  %v1460_v53 = vadd.f32 %v7008_v59, %v8412_v17  ;;  %v8620_v50 = vpop.permute.xlu0 %4498  ;;  %v1451_v34 = vpop.f32.mrb[25].mxu0  ;;  %4823 = vperm.xlu1 %7532, %v4025_v55   ;;  %v4026_v55 = vld [vmem:[%s10507_s1 + $0x440] sm:$0xff] }
 0x10f   :  { %10546 = vst [vmem:[#allocation38_spill] sm:$0xff] %v8620_v50  ;;  %v1452_v60 = vadd.f32 %v8412_v17, %v1451_v34  ;;  %4818 = vperm.xlu0 %7531, %v4024_v0   ;;  %v7009_v18 = vpop.f32.mrb[26].mxu0  ;;  %7274 = vmatprep.mubr.bf16.mxu1 %v2644_v2 }
 0x110   :  { %v1463_v63 = vadd.f32 %v7009_v18, %v8412_v17  ;;  %v1454_v56 = vpop.f32.mrb[27].mxu0  ;;  %7275 = vmatmul.mubr.bf16.gmra.mrb[16].mxu1 %v2645_v23  ;;  %v2404_v2 = vmax.f32 %v1460_v53, 0.0  ;;  %v4029_v23 = vld [vmem:[%s10507_s1 + $0x458] sm:$0xff]  ;;  %v4028_v53 = vld [vmem:[%s10507_s1 + $0x450] sm:$0xff] }
 0x111   :  { %v1455_v0 = vadd.f32 %v8412_v17, %v1454_v56  ;;  %v8637_v59 = vpop.permute.xlu1 %4513  ;;  %v2402_v50 = vmax.f32 %v1452_v60, 0.0 }
 0x112   :  { %10547 = vst [vmem:[#allocation39_spill] sm:$0xff] %v8637_v59  ;;  %v2405_v34 = vmax.f32 %v1463_v63, 0.0  ;;  %v8639_v43 = vpop.permute.xlu0 %4508  ;;  %7115 = vmatmul.mubr.msk.bf16.gmra.mrb[132].mxu0 %vm929_vm2, %v7608_v42  ;;  %4833 = vperm.xlu1 %7532, %v4027_v28  }
 0x113   :  { %10548 = vst [vmem:[#allocation40_spill] sm:$0xff] %v8639_v43  ;;  %v2403_v54 = vmax.f32 %v1455_v0, 0.0  ;;  %4828 = vperm.xlu0 %7531, %v4026_v55   ;;  %7118 = vmatprep.mubr.msk.bf16.mxu0 %vm929_vm2, %v7609_v7  ;;  %v7610_v55 = vld [vmem:[%s10506_s0 + $0x228] sm:$0xff]  }
 0x114   :  { %v2647_v18 = vpack.c.bf16 %v2405_v34, %v2404_v2 }
 0x115   :  { %v2646_v63 = vpack.c.bf16 %v2403_v54, %v2402_v50  ;;  %v7012_v56 = vpop.f32.mrb[28].mxu0  ;;  %v8649_v59 = vpop.permute.xlu1 %4523  ;;  %v4031_v54 = vld [vmem:[%s10507_s1 + $0x468] sm:$0xff]  ;;  %v7611_v50 = vld [vmem:[%s10506_s0 + $0x230] sm:$0xff]  }
 0x116   :  { %10549 = vst [vmem:[#allocation41_spill] sm:$0xff] %v8649_v59  ;;  %v1476_v42 = vadd.f32 %v7012_v56, %v8412_v17  ;;  %v8652_v60 = vpop.permute.xlu0 %4518  ;;  %v1467_v28 = vpop.f32.mrb[29].mxu0  ;;  %4843 = vperm.xlu1 %7532, %v4029_v23   ;;  %v4030_v23 = vld [vmem:[%s10507_s1 + $0x460] sm:$0xff] }
 0x117   :  { %10550 = vst [vmem:[#allocation42_spill] sm:$0xff] %v8652_v60  ;;  %v1468_v7 = vadd.f32 %v8412_v17, %v1467_v28  ;;  %4838 = vperm.xlu0 %7531, %v4028_v53   ;;  %v7013_v0 = vpop.f32.mrb[30].mxu0  ;;  %7278 = vmatprep.mubr.bf16.mxu1 %v2646_v63 }
 0x118   :  { %v1479_v2 = vadd.f32 %v7013_v0, %v8412_v17  ;;  %v1470_v34 = vpop.f32.mrb[31].mxu0  ;;  %7279 = vmatmul.mubr.bf16.gmra.mrb[20].mxu1 %v2647_v18  ;;  %v2408_v63 = vmax.f32 %v1476_v42, 0.0  ;;  %v4033_v18 = vld [vmem:[%s10507_s1 + $0x478] sm:$0xff]  ;;  %v4032_v42 = vld [vmem:[%s10507_s1 + $0x470] sm:$0xff] }
 0x119   :  { %v1471_v53 = vadd.f32 %v8412_v17, %v1470_v34  ;;  %v8669_v56 = vpop.permute.xlu1 %4533  ;;  %v2406_v60 = vmax.f32 %v1468_v7, 0.0 }
 0x11a   :  { %10551 = vst [vmem:[#allocation43_spill] sm:$0xff] %v8669_v56  ;;  %v2409_v28 = vmax.f32 %v1479_v2, 0.0  ;;  %v8671_v59 = vpop.permute.xlu0 %4528  ;;  %7119 = vmatmul.mubr.msk.bf16.gmra.mrb[136].mxu0 %vm929_vm2, %v7610_v55  ;;  %4853 = vperm.xlu1 %7532, %v4031_v54  }
 0x11b   :  { %10552 = vst [vmem:[#allocation44_spill] sm:$0xff] %v8671_v59  ;;  %v2407_v43 = vmax.f32 %v1471_v53, 0.0  ;;  %4848 = vperm.xlu0 %7531, %v4030_v23   ;;  %7122 = vmatprep.mubr.msk.bf16.mxu0 %vm929_vm2, %v7611_v50  ;;  %v7612_v23 = vld [vmem:[%s10506_s0 + $0x238] sm:$0xff]  }
 0x11c   :  { %v2649_v0 = vpack.c.bf16 %v2409_v28, %v2408_v63 }
 0x11d   :  { %v2648_v2 = vpack.c.bf16 %v2407_v43, %v2406_v60  ;;  %v7016_v34 = vpop.f32.mrb[32].mxu0  ;;  %v8681_v56 = vpop.permute.xlu1 %4543  ;;  %v4035_v43 = vld [vmem:[%s10507_s1 + $0x488] sm:$0xff]  ;;  %v7613_v60 = vld [vmem:[%s10506_s0 + $0x240] sm:$0xff]  }
 0x11e   :  { %10553 = vst [vmem:[#allocation45_spill] sm:$0xff] %v8681_v56  ;;  %v1492_v55 = vadd.f32 %v7016_v34, %v8412_v17  ;;  %v8684_v7 = vpop.permute.xlu0 %4538  ;;  %v1483_v54 = vpop.f32.mrb[33].mxu0  ;;  %4863 = vperm.xlu1 %7532, %v4033_v18   ;;  %v4034_v18 = vld [vmem:[%s10507_s1 + $0x480] sm:$0xff] }
 0x11f   :  { %10554 = vst [vmem:[#allocation46_spill] sm:$0xff] %v8684_v7  ;;  %v1484_v50 = vadd.f32 %v8412_v17, %v1483_v54  ;;  %4858 = vperm.xlu0 %7531, %v4032_v42   ;;  %v7017_v53 = vpop.f32.mrb[34].mxu0  ;;  %7282 = vmatprep.mubr.bf16.mxu1 %v2648_v2 }
 0x120   :  { %v1495_v63 = vadd.f32 %v7017_v53, %v8412_v17  ;;  %v1486_v28 = vpop.f32.mrb[35].mxu0  ;;  %7283 = vmatmul.mubr.bf16.gmra.mrb[24].mxu1 %v2649_v0  ;;  %v2412_v2 = vmax.f32 %v1492_v55, 0.0  ;;  %v4037_v0 = vld [vmem:[%s10507_s1 + $0x498] sm:$0xff]  ;;  %v4036_v55 = vld [vmem:[%s10507_s1 + $0x490] sm:$0xff] }
 0x121   :  { %v1487_v42 = vadd.f32 %v8412_v17, %v1486_v28  ;;  %v8701_v34 = vpop.permute.xlu1 %4553  ;;  %v2410_v7 = vmax.f32 %v1484_v50, 0.0 }
 0x122   :  { %10555 = vst [vmem:[#allocation47_spill] sm:$0xff] %v8701_v34  ;;  %v2413_v54 = vmax.f32 %v1495_v63, 0.0  ;;  %v8703_v56 = vpop.permute.xlu0 %4548  ;;  %7123 = vmatmul.mubr.msk.bf16.gmra.mrb[140].mxu0 %vm929_vm2, %v7612_v23  ;;  %4873 = vperm.xlu1 %7532, %v4035_v43  }
 0x123   :  { %10556 = vst [vmem:[#allocation48_spill] sm:$0xff] %v8703_v56  ;;  %v2411_v59 = vmax.f32 %v1487_v42, 0.0  ;;  %4868 = vperm.xlu0 %7531, %v4034_v18   ;;  %7126 = vmatprep.mubr.msk.bf16.mxu0 %vm929_vm2, %v7613_v60  ;;  %v7614_v18 = vld [vmem:[%s10506_s0 + $0x248] sm:$0xff]  }
 0x124   :  { %v2651_v53 = vpack.c.bf16 %v2413_v54, %v2412_v2 }
 0x125   :  { %v2650_v63 = vpack.c.bf16 %v2411_v59, %v2410_v7  ;;  %v7020_v28 = vpop.f32.mrb[36].mxu0  ;;  %v8713_v34 = vpop.permute.xlu1 %4563  ;;  %v4039_v59 = vld [vmem:[%s10507_s1 + $0x4a8] sm:$0xff]  ;;  %v7615_v7 = vld [vmem:[%s10506_s0 + $0x250] sm:$0xff]  }
 0x126   :  { %10557 = vst [vmem:[#allocation49_spill] sm:$0xff] %v8713_v34  ;;  %v1508_v23 = vadd.f32 %v7020_v28, %v8412_v17  ;;  %v8716_v50 = vpop.permute.xlu0 %4558  ;;  %v1499_v43 = vpop.f32.mrb[37].mxu0  ;;  %4883 = vperm.xlu1 %7532, %v4037_v0   ;;  %v4038_v0 = vld [vmem:[%s10507_s1 + $0x4a0] sm:$0xff] }
 0x127   :  { %10558 = vst [vmem:[#allocation50_spill] sm:$0xff] %v8716_v50  ;;  %v1500_v60 = vadd.f32 %v8412_v17, %v1499_v43  ;;  %4878 = vperm.xlu0 %7531, %v4036_v55   ;;  %v7021_v42 = vpop.f32.mrb[38].mxu0  ;;  %7286 = vmatprep.mubr.bf16.mxu1 %v2650_v63 }
 0x128   :  { %v1511_v2 = vadd.f32 %v7021_v42, %v8412_v17  ;;  %v1502_v54 = vpop.f32.mrb[39].mxu0  ;;  %7287 = vmatmul.mubr.bf16.gmra.mrb[28].mxu1 %v2651_v53  ;;  %v2416_v63 = vmax.f32 %v1508_v23, 0.0  ;;  %v4041_v53 = vld [vmem:[%s10507_s1 + $0x4b8] sm:$0xff]  ;;  %v4040_v23 = vld [vmem:[%s10507_s1 + $0x4b0] sm:$0xff] }
 0x129   :  { %v1503_v55 = vadd.f32 %v8412_v17, %v1502_v54  ;;  %v8733_v28 = vpop.permute.xlu1 %4573  ;;  %v2414_v50 = vmax.f32 %v1500_v60, 0.0 }
 0x12a   :  { %10559 = vst [vmem:[#allocation51_spill] sm:$0xff] %v8733_v28  ;;  %v2417_v43 = vmax.f32 %v1511_v2, 0.0  ;;  %v8735_v34 = vpop.permute.xlu0 %4568  ;;  %7127 = vmatmul.mubr.msk.bf16.gmra.mrb[144].mxu0 %vm929_vm2, %v7614_v18  ;;  %4893 = vperm.xlu1 %7532, %v4039_v59  }
 0x12b   :  { %10560 = vst [vmem:[#allocation52_spill] sm:$0xff] %v8735_v34  ;;  %v2415_v56 = vmax.f32 %v1503_v55, 0.0  ;;  %4888 = vperm.xlu0 %7531, %v4038_v0   ;;  %7130 = vmatprep.mubr.msk.bf16.mxu0 %vm929_vm2, %v7615_v7  ;;  %v7616_v0 = vld [vmem:[%s10506_s0 + $0x258] sm:$0xff]  }
 0x12c   :  { %v2653_v42 = vpack.c.bf16 %v2417_v43, %v2416_v63 }
 0x12d   :  { %v2652_v2 = vpack.c.bf16 %v2415_v56, %v2414_v50  ;;  %v7024_v54 = vpop.f32.mrb[40].mxu0  ;;  %v8745_v28 = vpop.permute.xlu1 %4583  ;;  %v4043_v56 = vld [vmem:[%s10507_s1 + $0x4c8] sm:$0xff]  ;;  %v7617_v50 = vld [vmem:[%s10506_s0 + $0x260] sm:$0xff]  }
 0x12e   :  { %10561 = vst [vmem:[#allocation53_spill] sm:$0xff] %v8745_v28  ;;  %v1524_v18 = vadd.f32 %v7024_v54, %v8412_v17  ;;  %v8748_v60 = vpop.permute.xlu0 %4578  ;;  %v1515_v59 = vpop.f32.mrb[41].mxu0  ;;  %4903 = vperm.xlu1 %7532, %v4041_v53   ;;  %v4042_v53 = vld [vmem:[%s10507_s1 + $0x4c0] sm:$0xff] }
 0x12f   :  { %10562 = vst [vmem:[#allocation54_spill] sm:$0xff] %v8748_v60  ;;  %v1516_v7 = vadd.f32 %v8412_v17, %v1515_v59  ;;  %4898 = vperm.xlu0 %7531, %v4040_v23   ;;  %v7025_v55 = vpop.f32.mrb[42].mxu0  ;;  %7290 = vmatprep.mubr.bf16.mxu1 %v2652_v2 }
 0x130   :  { %v1527_v63 = vadd.f32 %v7025_v55, %v8412_v17  ;;  %v1518_v43 = vpop.f32.mrb[43].mxu0  ;;  %7291 = vmatmul.mubr.bf16.gmra.mrb[32].mxu1 %v2653_v42  ;;  %v2420_v2 = vmax.f32 %v1524_v18, 0.0  ;;  %v4045_v42 = vld [vmem:[%s10507_s1 + $0x4d8] sm:$0xff]  ;;  %v4044_v18 = vld [vmem:[%s10507_s1 + $0x4d0] sm:$0xff] }
 0x131   :  { %v1519_v23 = vadd.f32 %v8412_v17, %v1518_v43  ;;  %v8765_v54 = vpop.permute.xlu1 %4593  ;;  %v2418_v60 = vmax.f32 %v1516_v7, 0.0 }
 0x132   :  { %10563 = vst [vmem:[#allocation55_spill] sm:$0xff] %v8765_v54  ;;  %v2421_v59 = vmax.f32 %v1527_v63, 0.0  ;;  %v8767_v28 = vpop.permute.xlu0 %4588  ;;  %7131 = vmatmul.mubr.msk.bf16.gmra.mrb[148].mxu0 %vm929_vm2, %v7616_v0  ;;  %4913 = vperm.xlu1 %7532, %v4043_v56   ;;  %v7618_v56 = vld [vmem:[%s10506_s0 + $0x268] sm:$0xff]  }
 0x133   :  { %10564 = vst [vmem:[#allocation56_spill] sm:$0xff] %v8767_v28  ;;  %v2419_v34 = vmax.f32 %v1519_v23, 0.0  ;;  %4908 = vperm.xlu0 %7531, %v4042_v53   ;;  %7134 = vmatprep.mubr.msk.bf16.mxu0 %vm929_vm2, %v7617_v50 }
 0x134   :  { %v2655_v55 = vpack.c.bf16 %v2421_v59, %v2420_v2 }
 0x135   :  { %v2654_v63 = vpack.c.bf16 %v2419_v34, %v2418_v60  ;;  %v7028_v43 = vpop.f32.mrb[44].mxu0  ;;  %v8778_v0 = vpop.permute.xlu1 %4603  ;;  %v4047_v34 = vld [vmem:[%s10507_s1 + $0x4e8] sm:$0xff]  ;;  %v7619_v60 = vld [vmem:[%s10506_s0 + $0x270] sm:$0xff]  }
 0x136   :  { %v1540_v54 = vadd.f32 %v7028_v43, %v8412_v17  ;;  %10565 = vst [vmem:[#allocation57_spill] sm:$0xff] %v8778_v0  ;;  %v1531_v7 = vpop.f32.mrb[45].mxu0  ;;  %4923 = vperm.xlu1 %7532, %v4045_v42   ;;  %v8790_v23 = vpop.permute.xlu0 %4598  ;;  %v4046_v42 = vld [vmem:[%s10507_s1 + $0x4e0] sm:$0xff] }
 0x137   :  { %v1532_v53 = vadd.f32 %v8412_v17, %v1531_v7  ;;  %4918 = vperm.xlu0 %7531, %v4044_v18   ;;  %v7029_v50 = vpop.f32.mrb[46].mxu0  ;;  %7294 = vmatprep.mubr.bf16.mxu1 %v2654_v63  ;;  %10566 = vst [vmem:[#allocation58_spill] sm:$0xff] %v8790_v23 }
 0x138   :  { %v1543_v2 = vadd.f32 %v7029_v50, %v8412_v17  ;;  %v1534_v59 = vpop.f32.mrb[47].mxu0  ;;  %7295 = vmatmul.mubr.bf16.gmra.mrb[36].mxu1 %v2655_v55  ;;  %v2424_v63 = vmax.f32 %v1540_v54, 0.0  ;;  %v4049_v50 = vld [vmem:[%s10507_s1 + $0x4f8] sm:$0xff]  ;;  %v4048_v54 = vld [vmem:[%s10507_s1 + $0x4f0] sm:$0xff] }
 0x139   :  { %v1535_v18 = vadd.f32 %v8412_v17, %v1534_v59  ;;  %v2422_v7 = vmax.f32 %v1532_v53, 0.0  ;;  %v8802_v23 = vpop.permute.xlu1 %4613 }
 0x13a   :  { %v2425_v43 = vmax.f32 %v1543_v2, 0.0  ;;  %7135 = vmatmul.mubr.msk.bf16.gmra.mrb[152].mxu0 %vm929_vm2, %v7618_v56  ;;  %4933 = vperm.xlu1 %7532, %v4047_v34   ;;  %10567 = vst [vmem:[#allocation59_spill] sm:$0xff] %v8802_v23  ;;  %v8807_v56 = vpop.permute.xlu0 %4608 }
 0x13b   :  { %v2423_v0 = vmax.f32 %v1535_v18, 0.0  ;;  %4928 = vperm.xlu0 %7531, %v4046_v42   ;;  %7138 = vmatprep.mubr.msk.bf16.mxu0 %vm929_vm2, %v7619_v60  ;;  %10568 = vst [vmem:[#allocation60_spill] sm:$0xff] %v8807_v56  ;;  %v7620_v42 = vld [vmem:[%s10506_s0 + $0x278] sm:$0xff]  }
 0x13c   :  { %v2657_v55 = vpack.c.bf16 %v2425_v43, %v2424_v63  ;;  %v7621_v63 = vld [vmem:[%s10506_s0 + $0x280] sm:$0xff]  }
 0x13d   :  { %v2656_v2 = vpack.c.bf16 %v2423_v0, %v2422_v7  ;;  %v7032_v59 = vpop.f32.mrb[48].mxu0  ;;  %v4051_v0 = vld [vmem:[%s10507_s1 + $0x508] sm:$0xff] }
 0x13e   :  { %v1556_v53 = vadd.f32 %v7032_v59, %v8412_v17  ;;  %v1547_v34 = vpop.f32.mrb[49].mxu0  ;;  %4943 = vperm.xlu1 %7532, %v4049_v50   ;;  %v4050_v50 = vld [vmem:[%s10507_s1 + $0x500] sm:$0xff] }
 0x13f   :  { %v1548_v60 = vadd.f32 %v8412_v17, %v1547_v34  ;;  %4938 = vperm.xlu0 %7531, %v4048_v54   ;;  %v7033_v18 = vpop.f32.mrb[50].mxu0  ;;  %7298 = vmatprep.mubr.bf16.mxu1 %v2656_v2  ;;  %v8825_v2 = vpop.permute.xlu1 %4623 }
 0x140   :  { %v1559_v43 = vadd.f32 %v7033_v18, %v8412_v17  ;;  %v1550_v7 = vpop.f32.mrb[51].mxu0  ;;  %7299 = vmatmul.mubr.bf16.gmra.mrb[40].mxu1 %v2657_v55  ;;  %v2428_v59 = vmax.f32 %v1556_v53, 0.0  ;;  %10569 = vst [vmem:[#allocation61_spill] sm:$0xff] %v8825_v2  ;;  %v4053_v55 = vld [vmem:[%s10507_s1 + $0x518] sm:$0xff]  ;;  %v8832_v18 = vpop.permute.xlu0 %4618  ;;  %v4052_v53 = vld [vmem:[%s10507_s1 + $0x510] sm:$0xff] }
 0x141   :  { %v1551_v54 = vadd.f32 %v8412_v17, %v1550_v7  ;;  %v2426_v23 = vmax.f32 %v1548_v60, 0.0  ;;  %10570 = vst [vmem:[#allocation62_spill] sm:$0xff] %v8832_v18 }
 0x142   :  { %v2429_v34 = vmax.f32 %v1559_v43, 0.0  ;;  %7139 = vmatmul.mubr.msk.bf16.gmra.mrb[156].mxu0 %vm929_vm2, %v7620_v42  ;;  %4953 = vperm.xlu1 %7532, %v4051_v0   ;;  %v7622_v0 = vld [vmem:[%s10506_s0 + $0x288] sm:$0xff]  }
 0x143   :  { %v2427_v56 = vmax.f32 %v1551_v54, 0.0  ;;  %4948 = vperm.xlu0 %7531, %v4050_v50   ;;  %7142 = vmatprep.mubr.msk.bf16.mxu0 %vm929_vm2, %v7621_v63  ;;  %v4055_v54 = vld [vmem:[%s10507_s1 + $0x528] sm:$0xff] }
 0x144   :  { %v2659_v28 = vpack.c.bf16 %v2429_v34, %v2428_v59 }
 0x145   :  { %v2658_v43 = vpack.c.bf16 %v2427_v56, %v2426_v23  ;;  %v7036_v7 = vpop.f32.mrb[52].mxu0  ;;  %v7623_v23 = vld [vmem:[%s10506_s0 + $0x290] sm:$0xff]   ;;  %v8848_v56 = vpop.permute.xlu1 %4633 }
 0x146   :  { %v1572_v42 = vadd.f32 %v7036_v7, %v8412_v17  ;;  %v1563_v60 = vpop.f32.mrb[53].mxu0  ;;  %4963 = vperm.xlu1 %7532, %v4053_v55   ;;  %10571 = vst [vmem:[#allocation63_spill] sm:$0xff] %v8848_v56  ;;  %v4054_v55 = vld [vmem:[%s10507_s1 + $0x520] sm:$0xff] }
 0x147   :  { %v1564_v50 = vadd.f32 %v8412_v17, %v1563_v60  ;;  %4958 = vperm.xlu0 %7531, %v4052_v53   ;;  %v7037_v63 = vpop.f32.mrb[54].mxu0  ;;  %7302 = vmatprep.mubr.bf16.mxu1 %v2658_v43  ;;  %v8855_v43 = vpop.permute.xlu0 %4628 }
 0x148   :  { %v1575_v59 = vadd.f32 %v7037_v63, %v8412_v17  ;;  %v1566_v34 = vpop.f32.mrb[55].mxu0  ;;  %7303 = vmatmul.mubr.bf16.gmra.mrb[44].mxu1 %v2659_v28  ;;  %10572 = vst [vmem:[#allocation64_spill] sm:$0xff] %v8855_v43  ;;  %v2432_v7 = vmax.f32 %v1572_v42, 0.0  ;;  %v4057_v28 = vld [vmem:[%s10507_s1 + $0x538] sm:$0xff] }
 0x149   :  { %v1567_v53 = vadd.f32 %v8412_v17, %v1566_v34  ;;  %v2430_v2 = vmax.f32 %v1564_v50, 0.0  ;;  %v4056_v34 = vld [vmem:[%s10507_s1 + $0x530] sm:$0xff] }
 0x14a   :  { %v2433_v60 = vmax.f32 %v1575_v59, 0.0  ;;  %7143 = vmatmul.mubr.msk.bf16.gmra.mrb[160].mxu0 %vm929_vm2, %v7622_v0  ;;  %4973 = vperm.xlu1 %7532, %v4055_v54   ;;  %v8865_v59 = vpop.permute.xlu1 %4643  ;;  %v7624_v54 = vld [vmem:[%s10506_s0 + $0x298] sm:$0xff]  }
 0x14b   :  { %v2431_v18 = vmax.f32 %v1567_v53, 0.0  ;;  %4968 = vperm.xlu0 %7531, %v4054_v55   ;;  %7146 = vmatprep.mubr.msk.bf16.mxu0 %vm929_vm2, %v7623_v23  ;;  %10573 = vst [vmem:[#allocation65_spill] sm:$0xff] %v8865_v59  ;;  %v8878_v53 = vpop.permute.xlu0 %4638 }
 0x14c   :  { %v2661_v63 = vpack.c.bf16 %v2433_v60, %v2432_v7  ;;  %10574 = vst [vmem:[#allocation66_spill] sm:$0xff] %v8878_v53 }
 0x14d   :  { %v2660_v56 = vpack.c.bf16 %v2431_v18, %v2430_v2  ;;  %v7040_v42 = vpop.f32.mrb[56].mxu0  ;;  %v4059_v2 = vld [vmem:[%s10507_s1 + $0x548] sm:$0xff]  ;;  %v7625_v18 = vld [vmem:[%s10506_s0 + $0x2a0] sm:$0xff]  }
 0x14e   :  { %v1588_v0 = vadd.f32 %v7040_v42, %v8412_v17  ;;  %v1579_v50 = vpop.f32.mrb[57].mxu0  ;;  %4983 = vperm.xlu1 %7532, %v4057_v28   ;;  %v4058_v28 = vld [vmem:[%s10507_s1 + $0x540] sm:$0xff] }
 0x14f   :  { %v1580_v55 = vadd.f32 %v8412_v17, %v1579_v50  ;;  %4978 = vperm.xlu0 %7531, %v4056_v34   ;;  %v7041_v23 = vpop.f32.mrb[58].mxu0  ;;  %7306 = vmatprep.mubr.bf16.mxu1 %v2660_v56 }
 0x150   :  { %v1591_v7 = vadd.f32 %v7041_v23, %v8412_v17  ;;  %v1582_v60 = vpop.f32.mrb[59].mxu0  ;;  %7307 = vmatmul.mubr.bf16.gmra.mrb[48].mxu1 %v2661_v63  ;;  %v2436_v34 = vmax.f32 %v1588_v0, 0.0  ;;  %v4061_v23 = vld [vmem:[%s10507_s1 + $0x558] sm:$0xff]  ;;  %v8890_v63 = vpop.permute.xlu1 %4653  ;;  %v4060_v0 = vld [vmem:[%s10507_s1 + $0x550] sm:$0xff] }
 0x151   :  { %v1583_v56 = vadd.f32 %v8412_v17, %v1582_v60  ;;  %v2434_v50 = vmax.f32 %v1580_v55, 0.0  ;;  %10575 = vst [vmem:[#allocation67_spill] sm:$0xff] %v8890_v63 }
 0x152   :  { %v2437_v42 = vmax.f32 %v1591_v7, 0.0  ;;  %7147 = vmatmul.mubr.msk.bf16.gmra.mrb[164].mxu0 %vm929_vm2, %v7624_v54  ;;  %4993 = vperm.xlu1 %7532, %v4059_v2   ;;  %v8895_v54 = vpop.permute.xlu0 %4648 }
 0x153   :  { %v2435_v59 = vmax.f32 %v1583_v56, 0.0  ;;  %4988 = vperm.xlu0 %7531, %v4058_v28   ;;  %7150 = vmatprep.mubr.msk.bf16.mxu0 %vm929_vm2, %v7625_v18  ;;  %10576 = vst [vmem:[#allocation68_spill] sm:$0xff] %v8895_v54  ;;  %v7626_v28 = vld [vmem:[%s10506_s0 + $0x2a8] sm:$0xff]  }
 0x154   :  { %v2663_v53 = vpack.c.bf16 %v2437_v42, %v2436_v34  ;;  %v7627_v34 = vld [vmem:[%s10506_s0 + $0x2b0] sm:$0xff]  }
 0x155   :  { %v2662_v7 = vpack.c.bf16 %v2435_v59, %v2434_v50  ;;  %v7044_v60 = vpop.f32.mrb[60].mxu0  ;;  %v4063_v59 = vld [vmem:[%s10507_s1 + $0x568] sm:$0xff] }
 0x156   :  { %v1604_v55 = vadd.f32 %v7044_v60, %v8412_v17  ;;  %v1595_v2 = vpop.f32.mrb[61].mxu0  ;;  %5003 = vperm.xlu1 %7532, %v4061_v23   ;;  %v4062_v23 = vld [vmem:[%s10507_s1 + $0x560] sm:$0xff]  ;;  %v8913_v60 = vpop.permute.xlu1 %4663 }
 0x157   :  { %v1596_v18 = vadd.f32 %v8412_v17, %v1595_v2  ;;  %4998 = vperm.xlu0 %7531, %v4060_v0   ;;  %v7045_v56 = vpop.f32.mrb[62].mxu0  ;;  %7310 = vmatprep.mubr.bf16.mxu1 %v2662_v7  ;;  %10577 = vst [vmem:[#allocation69_spill] sm:$0xff] %v8913_v60 }
 0x158   :  { %v1607_v42 = vadd.f32 %v7045_v56, %v8412_v17  ;;  %v1598_v50 = vpop.f32.mrb[63].mxu0  ;;  %7311 = vmatmul.mubr.bf16.gmra.mrb[52].mxu1 %v2663_v53  ;;  %v2440_v7 = vmax.f32 %v1604_v55, 0.0  ;;  %v4065_v53 = vld [vmem:[%s10507_s1 + $0x578] sm:$0xff]  ;;  %v8920_v56 = vpop.permute.xlu0 %4658  ;;  %v4064_v55 = vld [vmem:[%s10507_s1 + $0x570] sm:$0xff] }
 0x159   :  { %v1599_v0 = vadd.f32 %v8412_v17, %v1598_v50  ;;  %v2438_v63 = vmax.f32 %v1596_v18, 0.0  ;;  %10578 = vst [vmem:[#allocation70_spill] sm:$0xff] %v8920_v56 }
 0x15a   :  { %v2441_v2 = vmax.f32 %v1607_v42, 0.0  ;;  %7151 = vmatmul.mubr.msk.bf16.gmra.mrb[168].mxu0 %vm929_vm2, %v7626_v28  ;;  %5013 = vperm.xlu1 %7532, %v4063_v59   ;;  %v7628_v59 = vld [vmem:[%s10506_s0 + $0x2b8] sm:$0xff]  }
 0x15b   :  { %v2439_v54 = vmax.f32 %v1599_v0, 0.0  ;;  %5008 = vperm.xlu0 %7531, %v4062_v23   ;;  %7154 = vmatprep.mubr.msk.bf16.mxu0 %vm929_vm2, %v7627_v34  ;;  %v4067_v0 = vld [vmem:[%s10507_s1 + $0x588] sm:$0xff] }
 0x15c   :  { %v2665_v43 = vpack.c.bf16 %v2441_v2, %v2440_v7  ;;  %v8941_v7 = vld [vmem:[%s10509_s3] ss:$0 sm:$0xff] }
 0x15d   :  { %v2664_v42 = vpack.c.bf16 %v2439_v54, %v2438_v63  ;;  %v7048_v50 = vpop.f32.mrb[64].mxu0  ;;  %v7629_v63 = vld [vmem:[%s10506_s0 + $0x2c0] sm:$0xff]   ;;  %v8936_v54 = vpop.permute.xlu1 %4673 }
 0x15e   :  { %v1620_v28 = vadd.f32 %v7048_v50, %v8412_v17  ;;  %v1611_v18 = vpop.f32.mrb[65].mxu0  ;;  %5023 = vperm.xlu1 %7532, %v4065_v53   ;;  %10579 = vst [vmem:[#allocation71_spill] sm:$0xff] %v8936_v54  ;;  %v4066_v53 = vld [vmem:[%s10507_s1 + $0x580] sm:$0xff] }
 0x15f   :  { %v1612_v23 = vadd.f32 %v8412_v17, %v1611_v18  ;;  %5018 = vperm.xlu0 %7531, %v4064_v55   ;;  %v7049_v34 = vpop.f32.mrb[66].mxu0  ;;  %7314 = vmatprep.mubr.bf16.mxu1 %v2664_v42  ;;  %v8948_v42 = vpop.permute.xlu0 %4668 }
 0x160   :  { %v1623_v17 = vadd.f32 %v8941_v7, %v7049_v34  ;;  %v1614_v2 = vpop.f32.mrb[67].mxu0  ;;  %7315 = vmatmul.mubr.bf16.gmra.mrb[56].mxu1 %v2665_v43  ;;  %10580 = vst [vmem:[#allocation72_spill] sm:$0xff] %v8948_v42  ;;  %v2444_v50 = vmax.f32 %v1620_v28, 0.0  ;;  %v4069_v43 = vld [vmem:[%s10507_s1 + $0x598] sm:$0xff] }
 0x161   :  { %v1615_v55 = vadd.f32 %v8941_v7, %v1614_v2  ;;  %v2442_v54 = vmax.f32 %v1612_v23, 0.0  ;;  %v4068_v2 = vld [vmem:[%s10507_s1 + $0x590] sm:$0xff] }
 0x162   :  { %v2445_v18 = vmax.f32 %v1623_v17, 0.0  ;;  %7155 = vmatmul.mubr.msk.bf16.gmra.mrb[172].mxu0 %vm929_vm2, %v7628_v59  ;;  %5033 = vperm.xlu1 %7532, %v4067_v0   ;;  %v8958_v17 = vpop.permute.xlu1 %4683  ;;  %v7630_v0 = vld [vmem:[%s10506_s0 + $0x2c8] sm:$0xff]  }
 0x163   :  { %v2443_v60 = vmax.f32 %v1615_v55, 0.0  ;;  %5028 = vperm.xlu0 %7531, %v4066_v53   ;;  %7158 = vmatprep.mubr.msk.bf16.mxu0 %vm929_vm2, %v7629_v63  ;;  %10581 = vst [vmem:[#allocation73_spill] sm:$0xff] %v8958_v17  ;;  %v8971_v55 = vpop.permute.xlu0 %4678 }
 0x164   :  { %v2667_v34 = vpack.c.bf16 %v2445_v18, %v2444_v50  ;;  %10582 = vst [vmem:[#allocation74_spill] sm:$0xff] %v8971_v55 }
 0x165   :  { %v2666_v42 = vpack.c.bf16 %v2443_v60, %v2442_v54  ;;  %v7052_v28 = vpop.f32.mrb[68].mxu0  ;;  %v4071_v60 = vld [vmem:[%s10507_s1 + $0x5a8] sm:$0xff]  ;;  %v7631_v54 = vld [vmem:[%s10506_s0 + $0x2d0] sm:$0xff]  }
 0x166   :  { %v1636_v59 = vadd.f32 %v8941_v7, %v7052_v28  ;;  %v1627_v23 = vpop.f32.mrb[69].mxu0  ;;  %5043 = vperm.xlu1 %7532, %v4069_v43   ;;  %v4070_v43 = vld [vmem:[%s10507_s1 + $0x5a0] sm:$0xff] }
 0x167   :  { %v1628_v53 = vadd.f32 %v8941_v7, %v1627_v23  ;;  %5038 = vperm.xlu0 %7531, %v4068_v2   ;;  %v7053_v63 = vpop.f32.mrb[70].mxu0  ;;  %7318 = vmatprep.mubr.bf16.mxu1 %v2666_v42 }
 0x168   :  { %v1639_v50 = vadd.f32 %v8941_v7, %v7053_v63  ;;  %v1630_v18 = vpop.f32.mrb[71].mxu0  ;;  %7319 = vmatmul.mubr.bf16.gmra.mrb[60].mxu1 %v2667_v34  ;;  %v2448_v2 = vmax.f32 %v1636_v59, 0.0  ;;  %v4073_v63 = vld [vmem:[%s10507_s1 + $0x5b8] sm:$0xff]  ;;  %v8983_v34 = vpop.permute.xlu1 %4693  ;;  %v4072_v59 = vld [vmem:[%s10507_s1 + $0x5b0] sm:$0xff] }
 0x169   :  { %v1631_v42 = vadd.f32 %v8941_v7, %v1630_v18  ;;  %v2446_v23 = vmax.f32 %v1628_v53, 0.0  ;;  %10583 = vst [vmem:[#allocation75_spill] sm:$0xff] %v8983_v34 }
 0x16a   :  { %v2449_v28 = vmax.f32 %v1639_v50, 0.0  ;;  %7159 = vmatmul.mubr.msk.bf16.gmra.mrb[176].mxu0 %vm929_vm2, %v7630_v0  ;;  %5053 = vperm.xlu1 %7532, %v4071_v60   ;;  %v8988_v0 = vpop.permute.xlu0 %4688 }
 0x16b   :  { %v2447_v17 = vmax.f32 %v1631_v42, 0.0  ;;  %5048 = vperm.xlu0 %7531, %v4070_v43   ;;  %7162 = vmatprep.mubr.msk.bf16.mxu0 %vm929_vm2, %v7631_v54  ;;  %10584 = vst [vmem:[#allocation76_spill] sm:$0xff] %v8988_v0  ;;  %v7632_v43 = vld [vmem:[%s10506_s0 + $0x2d8] sm:$0xff]  }
 0x16c   :  { %v2669_v55 = vpack.c.bf16 %v2449_v28, %v2448_v2  ;;  %v7633_v2 = vld [vmem:[%s10506_s0 + $0x2e0] sm:$0xff]  }
 0x16d   :  { %v2668_v50 = vpack.c.bf16 %v2447_v17, %v2446_v23  ;;  %v7056_v18 = vpop.f32.mrb[72].mxu0  ;;  %v4075_v17 = vld [vmem:[%s10507_s1 + $0x5c8] sm:$0xff] }
 0x16e   :  { %v1652_v53 = vadd.f32 %v8941_v7, %v7056_v18  ;;  %v1643_v60 = vpop.f32.mrb[73].mxu0  ;;  %5063 = vperm.xlu1 %7532, %v4073_v63   ;;  %v4074_v63 = vld [vmem:[%s10507_s1 + $0x5c0] sm:$0xff]  ;;  %v9006_v18 = vpop.permute.xlu1 %4703 }
 0x16f   :  { %v1644_v54 = vadd.f32 %v8941_v7, %v1643_v60  ;;  %5058 = vperm.xlu0 %7531, %v4072_v59   ;;  %v7057_v42 = vpop.f32.mrb[74].mxu0  ;;  %7322 = vmatprep.mubr.bf16.mxu1 %v2668_v50  ;;  %10585 = vst [vmem:[#allocation77_spill] sm:$0xff] %v9006_v18 }
 0x170   :  { %v1655_v28 = vadd.f32 %v8941_v7, %v7057_v42  ;;  %v1646_v23 = vpop.f32.mrb[75].mxu0  ;;  %7323 = vmatmul.mubr.bf16.gmra.mrb[64].mxu1 %v2669_v55  ;;  %v2452_v50 = vmax.f32 %v1652_v53, 0.0  ;;  %v4077_v55 = vld [vmem:[%s10507_s1 + $0x5d8] sm:$0xff]  ;;  %v9013_v42 = vpop.permute.xlu0 %4698  ;;  %v4076_v53 = vld [vmem:[%s10507_s1 + $0x5d0] sm:$0xff] }
 0x171   :  { %v1647_v59 = vadd.f32 %v8941_v7, %v1646_v23  ;;  %v2450_v34 = vmax.f32 %v1644_v54, 0.0  ;;  %10586 = vst [vmem:[#allocation78_spill] sm:$0xff] %v9013_v42 }
 0x172   :  { %v2453_v60 = vmax.f32 %v1655_v28, 0.0  ;;  %7163 = vmatmul.mubr.msk.bf16.gmra.mrb[180].mxu0 %vm929_vm2, %v7632_v43  ;;  %5073 = vperm.xlu1 %7532, %v4075_v17   ;;  %v7634_v17 = vld [vmem:[%s10506_s0 + $0x2e8] sm:$0xff]  }
 0x173   :  { %v2451_v0 = vmax.f32 %v1647_v59, 0.0  ;;  %5068 = vperm.xlu0 %7531, %v4074_v63   ;;  %7166 = vmatprep.mubr.msk.bf16.mxu0 %vm929_vm2, %v7633_v2  ;;  %v4079_v59 = vld [vmem:[%s10507_s1 + $0x5e8] sm:$0xff] }
 0x174   :  { %v2671_v56 = vpack.c.bf16 %v2453_v60, %v2452_v50 }
 0x175   :  { %v2670_v28 = vpack.c.bf16 %v2451_v0, %v2450_v34  ;;  %v7060_v23 = vpop.f32.mrb[76].mxu0  ;;  %v7635_v34 = vld [vmem:[%s10506_s0 + $0x2f0] sm:$0xff]   ;;  %v9029_v0 = vpop.permute.xlu1 %4713 }
 0x176   :  { %v1668_v43 = vadd.f32 %v8941_v7, %v7060_v23  ;;  %v1659_v54 = vpop.f32.mrb[77].mxu0  ;;  %5083 = vperm.xlu1 %7532, %v4077_v55   ;;  %10587 = vst [vmem:[#allocation79_spill] sm:$0xff] %v9029_v0  ;;  %v4078_v55 = vld [vmem:[%s10507_s1 + $0x5e0] sm:$0xff] }
 0x177   :  { %v1660_v63 = vadd.f32 %v8941_v7, %v1659_v54  ;;  %5078 = vperm.xlu0 %7531, %v4076_v53   ;;  %v7061_v2 = vpop.f32.mrb[78].mxu0  ;;  %7326 = vmatprep.mubr.bf16.mxu1 %v2670_v28  ;;  %v9036_v28 = vpop.permute.xlu0 %4708 }
 0x178   :  { %v1671_v50 = vadd.f32 %v8941_v7, %v7061_v2  ;;  %v1662_v60 = vpop.f32.mrb[79].mxu0  ;;  %7327 = vmatmul.mubr.bf16.gmra.mrb[68].mxu1 %v2671_v56  ;;  %10588 = vst [vmem:[#allocation80_spill] sm:$0xff] %v9036_v28  ;;  %v2456_v23 = vmax.f32 %v1668_v43, 0.0  ;;  %v4081_v56 = vld [vmem:[%s10507_s1 + $0x5f8] sm:$0xff] }
 0x179   :  { %v1663_v53 = vadd.f32 %v8941_v7, %v1662_v60  ;;  %v2454_v18 = vmax.f32 %v1660_v63, 0.0  ;;  %v4080_v60 = vld [vmem:[%s10507_s1 + $0x5f0] sm:$0xff] }
 0x17a   :  { %v2457_v54 = vmax.f32 %v1671_v50, 0.0  ;;  %7167 = vmatmul.mubr.msk.bf16.gmra.mrb[184].mxu0 %vm929_vm2, %v7634_v17  ;;  %5093 = vperm.xlu1 %7532, %v4079_v59   ;;  %v9046_v50 = vpop.permute.xlu1 %4723  ;;  %v7636_v59 = vld [vmem:[%s10506_s0 + $0x2f8] sm:$0xff]  }
 0x17b   :  { %v2455_v42 = vmax.f32 %v1663_v53, 0.0  ;;  %5088 = vperm.xlu0 %7531, %v4078_v55   ;;  %7170 = vmatprep.mubr.msk.bf16.mxu0 %vm929_vm2, %v7635_v34  ;;  %10589 = vst [vmem:[#allocation81_spill] sm:$0xff] %v9046_v50  ;;  %v9059_v53 = vpop.permute.xlu0 %4718 }
 0x17c   :  { %v2673_v2 = vpack.c.bf16 %v2457_v54, %v2456_v23  ;;  %10590 = vst [vmem:[#allocation82_spill] sm:$0xff] %v9059_v53 }
 0x17d   :  { %v2672_v0 = vpack.c.bf16 %v2455_v42, %v2454_v18  ;;  %v7064_v43 = vpop.f32.mrb[80].mxu0  ;;  %v4083_v18 = vld [vmem:[%s10507_s1 + $0x608] sm:$0xff]  ;;  %v7637_v42 = vld [vmem:[%s10506_s0 + $0x300] sm:$0xff]  }
 0x17e   :  { %v1684_v17 = vadd.f32 %v8941_v7, %v7064_v43  ;;  %v1675_v63 = vpop.f32.mrb[81].mxu0  ;;  %5103 = vperm.xlu1 %7532, %v4081_v56   ;;  %v4082_v56 = vld [vmem:[%s10507_s1 + $0x600] sm:$0xff] }
 0x17f   :  { %v1676_v55 = vadd.f32 %v8941_v7, %v1675_v63  ;;  %5098 = vperm.xlu0 %7531, %v4080_v60   ;;  %v7065_v34 = vpop.f32.mrb[82].mxu0  ;;  %7330 = vmatprep.mubr.bf16.mxu1 %v2672_v0 }
 0x180   :  { %v1687_v23 = vadd.f32 %v8941_v7, %v7065_v34  ;;  %v1678_v54 = vpop.f32.mrb[83].mxu0  ;;  %7331 = vmatmul.mubr.bf16.gmra.mrb[72].mxu1 %v2673_v2  ;;  %v2460_v60 = vmax.f32 %v1684_v17, 0.0  ;;  %v4085_v34 = vld [vmem:[%s10507_s1 + $0x618] sm:$0xff]  ;;  %v9071_v2 = vpop.permute.xlu1 %4733  ;;  %v4084_v17 = vld [vmem:[%s10507_s1 + $0x610] sm:$0xff] }
 0x181   :  { %v1679_v0 = vadd.f32 %v8941_v7, %v1678_v54  ;;  %v2458_v63 = vmax.f32 %v1676_v55, 0.0  ;;  %10591 = vst [vmem:[#allocation83_spill] sm:$0xff] %v9071_v2 }
 0x182   :  { %v2461_v43 = vmax.f32 %v1687_v23, 0.0  ;;  %7171 = vmatmul.mubr.msk.bf16.gmra.mrb[188].mxu0 %vm929_vm2, %v7636_v59  ;;  %5113 = vperm.xlu1 %7532, %v4083_v18   ;;  %v9076_v59 = vpop.permute.xlu0 %4728 }
 0x183   :  { %v2459_v50 = vmax.f32 %v1679_v0, 0.0  ;;  %5108 = vperm.xlu0 %7531, %v4082_v56   ;;  %7174 = vmatprep.mubr.msk.bf16.mxu0 %vm929_vm2, %v7637_v42  ;;  %10592 = vst [vmem:[#allocation84_spill] sm:$0xff] %v9076_v59  ;;  %v7638_v56 = vld [vmem:[%s10506_s0 + $0x308] sm:$0xff]  }
 0x184   :  { %v2675_v53 = vpack.c.bf16 %v2461_v43, %v2460_v60  ;;  %v7639_v60 = vld [vmem:[%s10506_s0 + $0x310] sm:$0xff]  }
 0x185   :  { %v2674_v23 = vpack.c.bf16 %v2459_v50, %v2458_v63  ;;  %v7068_v54 = vpop.f32.mrb[84].mxu0  ;;  %v4087_v50 = vld [vmem:[%s10507_s1 + $0x628] sm:$0xff] }
 0x186   :  { %v1700_v55 = vadd.f32 %v8941_v7, %v7068_v54  ;;  %v1691_v18 = vpop.f32.mrb[85].mxu0  ;;  %5123 = vperm.xlu1 %7532, %v4085_v34   ;;  %v4086_v34 = vld [vmem:[%s10507_s1 + $0x620] sm:$0xff]  ;;  %v9094_v54 = vpop.permute.xlu1 %4743 }
 0x187   :  { %v1692_v42 = vadd.f32 %v8941_v7, %v1691_v18  ;;  %5118 = vperm.xlu0 %7531, %v4084_v17   ;;  %v7069_v0 = vpop.f32.mrb[86].mxu0  ;;  %7334 = vmatprep.mubr.bf16.mxu1 %v2674_v23  ;;  %10593 = vst [vmem:[#allocation85_spill] sm:$0xff] %v9094_v54 }
 0x188   :  { %v1703_v43 = vadd.f32 %v8941_v7, %v7069_v0  ;;  %v1694_v63 = vpop.f32.mrb[87].mxu0  ;;  %7335 = vmatmul.mubr.bf16.gmra.mrb[76].mxu1 %v2675_v53  ;;  %v2464_v23 = vmax.f32 %v1700_v55, 0.0  ;;  %v4089_v53 = vld [vmem:[%s10507_s1 + $0x638] sm:$0xff]  ;;  %v9101_v0 = vpop.permute.xlu0 %4738  ;;  %v4088_v55 = vld [vmem:[%s10507_s1 + $0x630] sm:$0xff] }
 0x189   :  { %v1695_v17 = vadd.f32 %v8941_v7, %v1694_v63  ;;  %v2462_v2 = vmax.f32 %v1692_v42, 0.0  ;;  %10594 = vst [vmem:[#allocation86_spill] sm:$0xff] %v9101_v0 }
 0x18a   :  { %v2465_v18 = vmax.f32 %v1703_v43, 0.0  ;;  %7175 = vmatmul.mubr.msk.bf16.gmra.mrb[192].mxu0 %vm929_vm2, %v7638_v56  ;;  %5133 = vperm.xlu1 %7532, %v4087_v50   ;;  %v7640_v50 = vld [vmem:[%s10506_s0 + $0x318] sm:$0xff]  }
 0x18b   :  { %v2463_v59 = vmax.f32 %v1695_v17, 0.0  ;;  %5128 = vperm.xlu0 %7531, %v4086_v34   ;;  %7178 = vmatprep.mubr.msk.bf16.mxu0 %vm929_vm2, %v7639_v60  ;;  %v4091_v17 = vld [vmem:[%s10507_s1 + $0x648] sm:$0xff] }
 0x18c   :  { %v2677_v28 = vpack.c.bf16 %v2465_v18, %v2464_v23 }
 0x18d   :  { %v2676_v43 = vpack.c.bf16 %v2463_v59, %v2462_v2  ;;  %v7072_v63 = vpop.f32.mrb[88].mxu0  ;;  %v7641_v2 = vld [vmem:[%s10506_s0 + $0x320] sm:$0xff]   ;;  %v9117_v59 = vpop.permute.xlu1 %4753 }
 0x18e   :  { %v1716_v56 = vadd.f32 %v8941_v7, %v7072_v63  ;;  %v1707_v42 = vpop.f32.mrb[89].mxu0  ;;  %5143 = vperm.xlu1 %7532, %v4089_v53   ;;  %10595 = vst [vmem:[#allocation87_spill] sm:$0xff] %v9117_v59  ;;  %v4090_v53 = vld [vmem:[%s10507_s1 + $0x640] sm:$0xff] }
 0x18f   :  { %v1708_v34 = vadd.f32 %v8941_v7, %v1707_v42  ;;  %5138 = vperm.xlu0 %7531, %v4088_v55   ;;  %v7073_v60 = vpop.f32.mrb[90].mxu0  ;;  %7338 = vmatprep.mubr.bf16.mxu1 %v2676_v43  ;;  %v9124_v43 = vpop.permute.xlu0 %4748 }
 0x190   :  { %v1719_v23 = vadd.f32 %v8941_v7, %v7073_v60  ;;  %v1710_v18 = vpop.f32.mrb[91].mxu0  ;;  %7339 = vmatmul.mubr.bf16.gmra.mrb[80].mxu1 %v2677_v28  ;;  %10596 = vst [vmem:[#allocation88_spill] sm:$0xff] %v9124_v43  ;;  %v2468_v63 = vmax.f32 %v1716_v56, 0.0  ;;  %v4093_v28 = vld [vmem:[%s10507_s1 + $0x658] sm:$0xff] }
 0x191   :  { %v1711_v55 = vadd.f32 %v8941_v7, %v1710_v18  ;;  %v2466_v54 = vmax.f32 %v1708_v34, 0.0  ;;  %v4092_v18 = vld [vmem:[%s10507_s1 + $0x650] sm:$0xff] }
 0x192   :  { %v2469_v42 = vmax.f32 %v1719_v23, 0.0  ;;  %7179 = vmatmul.mubr.msk.bf16.gmra.mrb[196].mxu0 %vm929_vm2, %v7640_v50  ;;  %5153 = vperm.xlu1 %7532, %v4091_v17   ;;  %v9134_v23 = vpop.permute.xlu1 %4763  ;;  %v7642_v17 = vld [vmem:[%s10506_s0 + $0x328] sm:$0xff]  }
 0x193   :  { %v2467_v0 = vmax.f32 %v1711_v55, 0.0  ;;  %5148 = vperm.xlu0 %7531, %v4090_v53   ;;  %7182 = vmatprep.mubr.msk.bf16.mxu0 %vm929_vm2, %v7641_v2  ;;  %10597 = vst [vmem:[#allocation89_spill] sm:$0xff] %v9134_v23  ;;  %v9147_v55 = vpop.permute.xlu0 %4758 }
 0x194   :  { %v2679_v60 = vpack.c.bf16 %v2469_v42, %v2468_v63  ;;  %10598 = vst [vmem:[#allocation90_spill] sm:$0xff] %v9147_v55 }
 0x195   :  { %v2678_v59 = vpack.c.bf16 %v2467_v0, %v2466_v54  ;;  %v7076_v56 = vpop.f32.mrb[92].mxu0  ;;  %v4095_v54 = vld [vmem:[%s10507_s1 + $0x668] sm:$0xff]  ;;  %v7643_v0 = vld [vmem:[%s10506_s0 + $0x330] sm:$0xff]  }
 0x196   :  { %v1732_v50 = vadd.f32 %v8941_v7, %v7076_v56  ;;  %v1723_v34 = vpop.f32.mrb[93].mxu0  ;;  %5163 = vperm.xlu1 %7532, %v4093_v28   ;;  %v4094_v28 = vld [vmem:[%s10507_s1 + $0x660] sm:$0xff] }
 0x197   :  { %v1724_v53 = vadd.f32 %v8941_v7, %v1723_v34  ;;  %5158 = vperm.xlu0 %7531, %v4092_v18   ;;  %v7077_v2 = vpop.f32.mrb[94].mxu0  ;;  %7342 = vmatprep.mubr.bf16.mxu1 %v2678_v59 }
 0x198   :  { %v1735_v63 = vadd.f32 %v8941_v7, %v7077_v2  ;;  %v1726_v42 = vpop.f32.mrb[95].mxu0  ;;  %7343 = vmatmul.mubr.bf16.gmra.mrb[84].mxu1 %v2679_v60  ;;  %v2472_v18 = vmax.f32 %v1732_v50, 0.0  ;;  %v4097_v2 = vld [vmem:[%s10507_s1 + $0x678] sm:$0xff]  ;;  %v9159_v60 = vpop.permute.xlu1 %4773  ;;  %v4096_v50 = vld [vmem:[%s10507_s1 + $0x670] sm:$0xff] }
 0x199   :  { %v1727_v59 = vadd.f32 %v8941_v7, %v1726_v42  ;;  %v2470_v34 = vmax.f32 %v1724_v53, 0.0  ;;  %10599 = vst [vmem:[#allocation91_spill] sm:$0xff] %v9159_v60 }
 0x19a   :  { %v2473_v56 = vmax.f32 %v1735_v63, 0.0  ;;  %7183 = vmatmul.mubr.msk.bf16.gmra.mrb[200].mxu0 %vm929_vm2, %v7642_v17  ;;  %5173 = vperm.xlu1 %7532, %v4095_v54   ;;  %v9164_v17 = vpop.permute.xlu0 %4768 }
 0x19b   :  { %v2471_v23 = vmax.f32 %v1727_v59, 0.0  ;;  %5168 = vperm.xlu0 %7531, %v4094_v28   ;;  %7186 = vmatprep.mubr.msk.bf16.mxu0 %vm929_vm2, %v7643_v0  ;;  %10600 = vst [vmem:[#allocation92_spill] sm:$0xff] %v9164_v17  ;;  %v7644_v28 = vld [vmem:[%s10506_s0 + $0x338] sm:$0xff]  }
 0x19c   :  { %v2681_v55 = vpack.c.bf16 %v2473_v56, %v2472_v18  ;;  %v7645_v18 = vld [vmem:[%s10506_s0 + $0x340] sm:$0xff]  }
 0x19d   :  { %v2680_v63 = vpack.c.bf16 %v2471_v23, %v2470_v34  ;;  %v7080_v42 = vpop.f32.mrb[96].mxu0  ;;  %v4099_v23 = vld [vmem:[%s10507_s1 + $0x688] sm:$0xff] }
 0x19e   :  { %v1748_v53 = vadd.f32 %v8941_v7, %v7080_v42  ;;  %v1739_v54 = vpop.f32.mrb[97].mxu0  ;;  %5183 = vperm.xlu1 %7532, %v4097_v2   ;;  %v4098_v2 = vld [vmem:[%s10507_s1 + $0x680] sm:$0xff]  ;;  %v9182_v42 = vpop.permute.xlu1 %4783 }
 0x19f   :  { %v1740_v0 = vadd.f32 %v8941_v7, %v1739_v54  ;;  %5178 = vperm.xlu0 %7531, %v4096_v50   ;;  %v7081_v59 = vpop.f32.mrb[98].mxu0  ;;  %7346 = vmatprep.mubr.bf16.mxu1 %v2680_v63  ;;  %10601 = vst [vmem:[#allocation93_spill] sm:$0xff] %v9182_v42 }
 0x1a0   :  { %v1751_v56 = vadd.f32 %v8941_v7, %v7081_v59  ;;  %v1742_v34 = vpop.f32.mrb[99].mxu0  ;;  %7347 = vmatmul.mubr.bf16.gmra.mrb[88].mxu1 %v2681_v55  ;;  %v2476_v63 = vmax.f32 %v1748_v53, 0.0  ;;  %v4101_v55 = vld [vmem:[%s10507_s1 + $0x698] sm:$0xff]  ;;  %v9189_v59 = vpop.permute.xlu0 %4778  ;;  %v4100_v53 = vld [vmem:[%s10507_s1 + $0x690] sm:$0xff] }
 0x1a1   :  { %v1743_v50 = vadd.f32 %v8941_v7, %v1742_v34  ;;  %v2474_v60 = vmax.f32 %v1740_v0, 0.0  ;;  %10602 = vst [vmem:[#allocation94_spill] sm:$0xff] %v9189_v59 }
 0x1a2   :  { %v2477_v54 = vmax.f32 %v1751_v56, 0.0  ;;  %7187 = vmatmul.mubr.msk.bf16.gmra.mrb[204].mxu0 %vm929_vm2, %v7644_v28  ;;  %5193 = vperm.xlu1 %7532, %v4099_v23   ;;  %v7646_v23 = vld [vmem:[%s10506_s0 + $0x348] sm:$0xff]  }
 0x1a3   :  { %v2475_v17 = vmax.f32 %v1743_v50, 0.0  ;;  %5188 = vperm.xlu0 %7531, %v4098_v2   ;;  %7190 = vmatprep.mubr.msk.bf16.mxu0 %vm929_vm2, %v7645_v18  ;;  %v4103_v50 = vld [vmem:[%s10507_s1 + $0x6a8] sm:$0xff] }
 0x1a4   :  { %v2683_v43 = vpack.c.bf16 %v2477_v54, %v2476_v63 }
 0x1a5   :  { %v2682_v56 = vpack.c.bf16 %v2475_v17, %v2474_v60  ;;  %v7084_v34 = vpop.f32.mrb[100].mxu0  ;;  %v7647_v60 = vld [vmem:[%s10506_s0 + $0x350] sm:$0xff]   ;;  %v9205_v17 = vpop.permute.xlu1 %4793 }
 0x1a6   :  { %v1764_v28 = vadd.f32 %v8941_v7, %v7084_v34  ;;  %v1755_v0 = vpop.f32.mrb[101].mxu0  ;;  %5203 = vperm.xlu1 %7532, %v4101_v55   ;;  %10603 = vst [vmem:[#allocation95_spill] sm:$0xff] %v9205_v17  ;;  %v4102_v55 = vld [vmem:[%s10507_s1 + $0x6a0] sm:$0xff] }
 0x1a7   :  { %v1756_v2 = vadd.f32 %v8941_v7, %v1755_v0  ;;  %5198 = vperm.xlu0 %7531, %v4100_v53   ;;  %v7085_v18 = vpop.f32.mrb[102].mxu0  ;;  %7350 = vmatprep.mubr.bf16.mxu1 %v2682_v56  ;;  %v9212_v56 = vpop.permute.xlu0 %4788 }
 0x1a8   :  { %v1767_v63 = vadd.f32 %v8941_v7, %v7085_v18  ;;  %v1758_v54 = vpop.f32.mrb[103].mxu0  ;;  %7351 = vmatmul.mubr.bf16.gmra.mrb[92].mxu1 %v2683_v43  ;;  %10604 = vst [vmem:[#allocation96_spill] sm:$0xff] %v9212_v56  ;;  %v2480_v34 = vmax.f32 %v1764_v28, 0.0  ;;  %v4105_v43 = vld [vmem:[%s10507_s1 + $0x6b8] sm:$0xff] }
 0x1a9   :  { %v1759_v53 = vadd.f32 %v8941_v7, %v1758_v54  ;;  %v2478_v42 = vmax.f32 %v1756_v2, 0.0  ;;  %v4104_v54 = vld [vmem:[%s10507_s1 + $0x6b0] sm:$0xff] }
 0x1aa   :  { %v2481_v0 = vmax.f32 %v1767_v63, 0.0  ;;  %7191 = vmatmul.mubr.msk.bf16.gmra.mrb[208].mxu0 %vm929_vm2, %v7646_v23  ;;  %5213 = vperm.xlu1 %7532, %v4103_v50   ;;  %v9222_v63 = vpop.permute.xlu1 %4803  ;;  %v7648_v50 = vld [vmem:[%s10506_s0 + $0x358] sm:$0xff]  }
 0x1ab   :  { %v2479_v59 = vmax.f32 %v1759_v53, 0.0  ;;  %5208 = vperm.xlu0 %7531, %v4102_v55   ;;  %7194 = vmatprep.mubr.msk.bf16.mxu0 %vm929_vm2, %v7647_v60  ;;  %10605 = vst [vmem:[#allocation97_spill] sm:$0xff] %v9222_v63  ;;  %v9235_v53 = vpop.permute.xlu0 %4798 }
 0x1ac   :  { %v2685_v18 = vpack.c.bf16 %v2481_v0, %v2480_v34  ;;  %10606 = vst [vmem:[#allocation98_spill] sm:$0xff] %v9235_v53 }
 0x1ad   :  { %v2684_v17 = vpack.c.bf16 %v2479_v59, %v2478_v42  ;;  %v7088_v28 = vpop.f32.mrb[104].mxu0  ;;  %v4107_v42 = vld [vmem:[%s10507_s1 + $0x6c8] sm:$0xff]  ;;  %v7649_v59 = vld [vmem:[%s10506_s0 + $0x360] sm:$0xff]  }
 0x1ae   :  { %v1780_v23 = vadd.f32 %v8941_v7, %v7088_v28  ;;  %v1771_v2 = vpop.f32.mrb[105].mxu0  ;;  %5223 = vperm.xlu1 %7532, %v4105_v43   ;;  %v4106_v43 = vld [vmem:[%s10507_s1 + $0x6c0] sm:$0xff] }
 0x1af   :  { %v1772_v55 = vadd.f32 %v8941_v7, %v1771_v2  ;;  %5218 = vperm.xlu0 %7531, %v4104_v54   ;;  %v7089_v60 = vpop.f32.mrb[106].mxu0  ;;  %7354 = vmatprep.mubr.bf16.mxu1 %v2684_v17 }
 0x1b0   :  { %v1783_v34 = vadd.f32 %v8941_v7, %v7089_v60  ;;  %v1774_v0 = vpop.f32.mrb[107].mxu0  ;;  %7355 = vmatmul.mubr.bf16.gmra.mrb[96].mxu1 %v2685_v18  ;;  %v2484_v54 = vmax.f32 %v1780_v23, 0.0  ;;  %v4109_v60 = vld [vmem:[%s10507_s1 + $0x6d8] sm:$0xff]  ;;  %v9247_v18 = vpop.permute.xlu1 %4813  ;;  %v4108_v23 = vld [vmem:[%s10507_s1 + $0x6d0] sm:$0xff] }
 0x1b1   :  { %v1775_v17 = vadd.f32 %v8941_v7, %v1774_v0  ;;  %v2482_v2 = vmax.f32 %v1772_v55, 0.0  ;;  %10607 = vst [vmem:[#allocation99_spill] sm:$0xff] %v9247_v18 }
 0x1b2   :  { %v2485_v28 = vmax.f32 %v1783_v34, 0.0  ;;  %7195 = vmatmul.mubr.msk.bf16.gmra.mrb[212].mxu0 %vm929_vm2, %v7648_v50  ;;  %5233 = vperm.xlu1 %7532, %v4107_v42   ;;  %v9252_v50 = vpop.permute.xlu0 %4808 }
 0x1b3   :  { %v2483_v63 = vmax.f32 %v1775_v17, 0.0  ;;  %5228 = vperm.xlu0 %7531, %v4106_v43   ;;  %7198 = vmatprep.mubr.msk.bf16.mxu0 %vm929_vm2, %v7649_v59  ;;  %10608 = vst [vmem:[#allocation100_spill] sm:$0xff] %v9252_v50  ;;  %v7650_v43 = vld [vmem:[%s10506_s0 + $0x368] sm:$0xff]  }
 0x1b4   :  { %v2687_v53 = vpack.c.bf16 %v2485_v28, %v2484_v54  ;;  %v7651_v54 = vld [vmem:[%s10506_s0 + $0x370] sm:$0xff]  }
 0x1b5   :  { %v2686_v34 = vpack.c.bf16 %v2483_v63, %v2482_v2  ;;  %v7092_v0 = vpop.f32.mrb[108].mxu0  ;;  %v4111_v63 = vld [vmem:[%s10507_s1 + $0x6e8] sm:$0xff] }
 0x1b6   :  { %v1796_v55 = vadd.f32 %v8941_v7, %v7092_v0  ;;  %v1787_v42 = vpop.f32.mrb[109].mxu0  ;;  %5243 = vperm.xlu1 %7532, %v4109_v60   ;;  %v4110_v60 = vld [vmem:[%s10507_s1 + $0x6e0] sm:$0xff]  ;;  %v9270_v0 = vpop.permute.xlu1 %4823 }
 0x1b7   :  { %v1788_v59 = vadd.f32 %v8941_v7, %v1787_v42  ;;  %5238 = vperm.xlu0 %7531, %v4108_v23   ;;  %v7093_v17 = vpop.f32.mrb[110].mxu0  ;;  %7358 = vmatprep.mubr.bf16.mxu1 %v2686_v34  ;;  %10609 = vst [vmem:[#allocation101_spill] sm:$0xff] %v9270_v0 }
 0x1b8   :  { %v1799_v28 = vadd.f32 %v8941_v7, %v7093_v17  ;;  %v1790_v2 = vpop.f32.mrb[111].mxu0  ;;  %7359 = vmatmul.mubr.bf16.gmra.mrb[100].mxu1 %v2687_v53  ;;  %v2488_v34 = vmax.f32 %v1796_v55, 0.0  ;;  %v4113_v53 = vld [vmem:[%s10507_s1 + $0x6f8] sm:$0xff]  ;;  %v9277_v17 = vpop.permute.xlu0 %4818  ;;  %v4112_v55 = vld [vmem:[%s10507_s1 + $0x6f0] sm:$0xff] }
 0x1b9   :  { %v1791_v23 = vadd.f32 %v8941_v7, %v1790_v2  ;;  %v2486_v18 = vmax.f32 %v1788_v59, 0.0  ;;  %10610 = vst [vmem:[#allocation102_spill] sm:$0xff] %v9277_v17 }
 0x1ba   :  { %v2489_v42 = vmax.f32 %v1799_v28, 0.0  ;;  %7199 = vmatmul.mubr.msk.bf16.gmra.mrb[216].mxu0 %vm929_vm2, %v7650_v43  ;;  %5253 = vperm.xlu1 %7532, %v4111_v63   ;;  %v7652_v63 = vld [vmem:[%s10506_s0 + $0x378] sm:$0xff]  }
 0x1bb   :  { %v2487_v50 = vmax.f32 %v1791_v23, 0.0  ;;  %5248 = vperm.xlu0 %7531, %v4110_v60   ;;  %7202 = vmatprep.mubr.msk.bf16.mxu0 %vm929_vm2, %v7651_v54  ;;  %v4115_v23 = vld [vmem:[%s10507_s1 + $0x708] sm:$0xff] }
 0x1bc   :  { %v2689_v56 = vpack.c.bf16 %v2489_v42, %v2488_v34 }
 0x1bd   :  { %v2688_v28 = vpack.c.bf16 %v2487_v50, %v2486_v18  ;;  %v7096_v2 = vpop.f32.mrb[112].mxu0  ;;  %v7653_v18 = vld [vmem:[%s10506_s0 + $0x380] sm:$0xff]   ;;  %v9293_v50 = vpop.permute.xlu1 %4833 }
 0x1be   :  { %v1812_v43 = vadd.f32 %v8941_v7, %v7096_v2  ;;  %v1803_v59 = vpop.f32.mrb[113].mxu0  ;;  %5263 = vperm.xlu1 %7532, %v4113_v53   ;;  %10611 = vst [vmem:[#allocation103_spill] sm:$0xff] %v9293_v50  ;;  %v4114_v53 = vld [vmem:[%s10507_s1 + $0x700] sm:$0xff] }
 0x1bf   :  { %v1804_v60 = vadd.f32 %v8941_v7, %v1803_v59  ;;  %5258 = vperm.xlu0 %7531, %v4112_v55   ;;  %v7097_v54 = vpop.f32.mrb[114].mxu0  ;;  %7362 = vmatprep.mubr.bf16.mxu1 %v2688_v28  ;;  %v9300_v28 = vpop.permute.xlu0 %4828 }
 0x1c0   :  { %v1815_v34 = vadd.f32 %v8941_v7, %v7097_v54  ;;  %v1806_v42 = vpop.f32.mrb[115].mxu0  ;;  %7363 = vmatmul.mubr.bf16.gmra.mrb[104].mxu1 %v2689_v56  ;;  %10612 = vst [vmem:[#allocation104_spill] sm:$0xff] %v9300_v28  ;;  %v2492_v2 = vmax.f32 %v1812_v43, 0.0  ;;  %v4117_v56 = vld [vmem:[%s10507_s1 + $0x718] sm:$0xff]  ;;  %v4116_v43 = vld [vmem:[%s10507_s1 + $0x710] sm:$0xff] }
 0x1c1   :  { %v1807_v55 = vadd.f32 %v8941_v7, %v1806_v42  ;;  %v2490_v0 = vmax.f32 %v1804_v60, 0.0 }
 0x1c2   :  { %v2493_v59 = vmax.f32 %v1815_v34, 0.0  ;;  %7203 = vmatmul.mubr.msk.bf16.gmra.mrb[220].mxu0 %vm929_vm2, %v7652_v63  ;;  %5273 = vperm.xlu1 %7532, %v4115_v23   ;;  %v9316_v34 = vpop.permute.xlu1 %4843 }
 0x1c3   :  { %v2491_v17 = vmax.f32 %v1807_v55, 0.0  ;;  %5268 = vperm.xlu0 %7531, %v4114_v53   ;;  %v9303_v50 = vpop.f32.mrb[0].mxu1  ;;  %7206 = vmatprep.mubr.msk.bf16.mxu0 %vm929_vm2, %v7653_v18  ;;  %10616 = vst [vmem:[#allocation108_spill] sm:$0xff] %v9316_v34  ;;  %v7654_v53 = vld [vmem:[%s10506_s0 + $0x388] sm:$0xff]  }
 0x1c4   :  { %10613 = vst [vmem:[#allocation105_spill] sm:$0xff] %v9303_v50  ;;  %v2691_v54 = vpack.c.bf16 %v2493_v59, %v2492_v2  ;;  %v9309_v42 = vpop.f32.mrb[1].mxu1  ;;  %v9330_v59 = vpop.permute.xlu0 %4838 }
 0x1c5   :  { %10614 = vst [vmem:[#allocation106_spill] sm:$0xff] %v9309_v42  ;;  %v2690_v63 = vpack.c.bf16 %v2491_v17, %v2490_v0  ;;  %v7100_v23 = vpop.f32.mrb[116].mxu0  ;;  %v9314_v60 = vpop.f32.mrb[2].mxu1  ;;  %v4119_v0 = vld [vmem:[%s10507_s1 + $0x728] sm:$0xff]  ;;  %v7655_v17 = vld [vmem:[%s10506_s0 + $0x390] sm:$0xff]   ;;  %10618 = vst [vmem:[#allocation110_spill] sm:$0xff] %v9330_v59 }
 0x1c6   :  { %10615 = vst [vmem:[#allocation107_spill] sm:$0xff] %v9314_v60  ;;  %5283 = vperm.xlu1 %7532, %v4117_v56   ;;  %v1828_v18 = vadd.f32 %v8941_v7, %v7100_v23  ;;  %v1819_v55 = vpop.f32.mrb[117].mxu0  ;;  %v9322_v2 = vpop.f32.mrb[3].mxu1  ;;  %v4118_v23 = vld [vmem:[%s10507_s1 + $0x720] sm:$0xff] }
 0x1c7   :  { %10617 = vst [vmem:[#allocation109_spill] sm:$0xff] %v9322_v2  ;;  %5278 = vperm.xlu0 %7531, %v4116_v43   ;;  %7366 = vmatprep.mubr.bf16.mxu1 %v2690_v63  ;;  %v1820_v56 = vadd.f32 %v8941_v7, %v1819_v55  ;;  %v7101_v34 = vpop.f32.mrb[118].mxu0  ;;  %v9343_v55 = vpop.permute.xlu1 %4853 }
 0x1c8   :  { %7367 = vmatmul.mubr.bf16.gmra.mrb[108].mxu1 %v2691_v54  ;;  %v1831_v43 = vadd.f32 %v8941_v7, %v7101_v34  ;;  %v1822_v63 = vpop.f32.mrb[119].mxu0  ;;  %v2496_v28 = vmax.f32 %v1828_v18, 0.0  ;;  %v4123_v54 = vld [vmem:[%s10507_s1 + $0x748] sm:$0xff]  ;;  %10619 = vst [vmem:[#allocation111_spill] sm:$0xff] %v9343_v55  ;;  %v9351_v18 = vld [vmem:[%s10511_s5] ss:$0 sm:$0xff] }
 0x1c9   :  { %v1823_v2 = vadd.f32 %v8941_v7, %v1822_v63  ;;  %v2494_v42 = vmax.f32 %v1820_v56, 0.0  ;;  %v9353_v63 = vpop.permute.xlu0 %4848 }
 0x1ca   :  { %7207 = vmatmul.mubr.msk.bf16.gmra.mrb[224].mxu0 %vm929_vm2, %v7654_v53  ;;  %5293 = vperm.xlu1 %7532, %v4119_v0   ;;  %v2497_v60 = vmax.f32 %v1831_v43, 0.0  ;;  %v4122_v53 = vld [vmem:[%s10507_s1 + $0x740] sm:$0xff]  ;;  %10620 = vst [vmem:[#allocation112_spill] sm:$0xff] %v9353_v63 }
 0x1cb   :  { %5288 = vperm.xlu0 %7531, %v4118_v23   ;;  %v7264_v59 = vpop.f32.mrb[4].mxu1  ;;  %7210 = vmatprep.mubr.msk.bf16.mxu0 %vm929_vm2, %v7655_v17  ;;  %v2495_v34 = vmax.f32 %v1823_v2, 0.0  ;;  %v7656_v2 = vld [vmem:[%s10506_s0 + $0x398] sm:$0xff]   ;;  %v9374_v24 = vpop.permute.xlu1 %4863 }
 0x1cc   :  { %v2899_v50 = vpop.f32.mrb[5].mxu1  ;;  %v2693_v0 = vpack.c.bf16 %v2497_v60, %v2496_v28  ;;  %v4131_v28 = vld [vmem:[%s10507_s1 + $0x788] sm:$0xff]  ;;  %10621 = vst [vmem:[#allocation113_spill] sm:$0xff] %v9374_v24 }
 0x1cd   :  { %v7104_v23 = vpop.f32.mrb[120].mxu0  ;;  %v7265_v43 = vpop.f32.mrb[6].mxu1  ;;  %v2692_v17 = vpack.c.bf16 %v2495_v34, %v2494_v42  ;;  %v2900_v55 = vadd.f32 %v9351_v18, %v2899_v50  ;;  %v7657_v42 = vld [vmem:[%s10506_s0 + $0x3a0] sm:$0xff]   ;;  %v2908_v50 = vadd.f32 %v7264_v59, %v9351_v18 }
 0x1ce   :  { %5313 = vperm.xlu1 %7532, %v4123_v54   ;;  %v1844_v56 = vadd.f32 %v8941_v7, %v7104_v23  ;;  %v1835_v1 = vpop.f32.mrb[121].mxu0  ;;  %v2902_v44 = vpop.f32.mrb[7].mxu1  ;;  %v2911_v23 = vadd.f32 %v7265_v43, %v9351_v18  ;;  %v4138_v43 = vld [vmem:[%s10507_s1 + $0x7c0] sm:$0xff] }
 0x1cf   :  { %5308 = vperm.xlu0 %7531, %v4122_v53   ;;  %v1836_v60 = vadd.f32 %v8941_v7, %v1835_v1  ;;  %v2903_v54 = vadd.f32 %v9351_v18, %v2902_v44  ;;  %v7105_v34 = vpop.f32.mrb[122].mxu0  ;;  %7370 = vmatprep.mubr.bf16.mxu1 %v2692_v17  ;;  %v4130_v53 = vld [vmem:[%s10507_s1 + $0x780] sm:$0xff]  ;;  %v5434_v59 = vadd.f32 %v8154_v6, %v2900_v55 }
 0x1d0   :  { %v1847_v63 = vadd.f32 %v8941_v7, %v7105_v34  ;;  %v1838_v8 = vpop.f32.mrb[123].mxu0  ;;  %7371 = vmatmul.mubr.bf16.gmra.mrb[112].mxu1 %v2693_v0  ;;  %v2500_v17 = vmax.f32 %v1844_v56, 0.0  ;;  %v9384_v0 = vpop.permute.xlu0 %4858  ;;  %v5436_v6 = vadd.f32 %v8166_v10, %v2908_v50  ;;  %v7658_v10 = vld [vmem:[%s10506_s0 + $0x3a8] sm:$0xff]  }
 0x1d1   :  { %v5435_v1 = vadd.f32 %v8152_v5, %v2903_v54  ;;  %v1839_v44 = vadd.f32 %v8941_v7, %v1838_v8  ;;  %v2498_v5 = vmax.f32 %v1836_v60, 0.0 }
 0x1d2   :  { %7211 = vmatmul.mubr.msk.bf16.gmra.mrb[228].mxu0 %vm929_vm2, %v7656_v2  ;;  %5353 = vperm.xlu1 %7532, %v4131_v28   ;;  %v2501_v27 = vmax.f32 %v1847_v63, 0.0  ;;  %v4124_v63 = vld [vmem:[%s10507_s1 + $0x750] sm:$0xff] }
 0x1d3   :  { %5348 = vperm.xlu0 %7531, %v4130_v53   ;;  %v7268_v33 = vpop.f32.mrb[8].mxu1  ;;  %7214 = vmatprep.mubr.msk.bf16.mxu0 %vm929_vm2, %v7657_v42  ;;  %v5695_v55 = vmax.f32 %v5434_v59, %v5435_v1  ;;  %v2499_v8 = vmax.f32 %v1839_v44, 0.0  ;;  %v5437_v53 = vadd.f32 %v8164_v9, %v2911_v23  ;;  %v7659_v9 = vld [vmem:[%s10506_s0 + $0x3b0] sm:$0xff]   ;;  %v9403_v23 = vpop.permute.xlu1 %4873 }
 0x1d4   :  { %v2915_v54 = vpop.f32.mrb[9].mxu1  ;;  %v2695_v2 = vpack.c.bf16 %v2501_v27, %v2500_v17  ;;  %v4132_v27 = vld [vmem:[%s10507_s1 + $0x790] sm:$0xff]  ;;  %v2924_v44 = vadd.f32 %v7268_v33, %v9351_v18 }
 0x1d5   :  { %v2916_v56 = vadd.f32 %v9351_v18, %v2915_v54  ;;  %v7108_v28 = vpop.f32.mrb[124].mxu0  ;;  %v7269_v34 = vpop.f32.mrb[10].mxu1  ;;  %v5696_v42 = vmax.f32 %v5695_v55, %v5436_v6  ;;  %v2694_v24 = vpack.c.bf16 %v2499_v8, %v2498_v5  ;;  %v4139_v5 = vld [vmem:[%s10507_s1 + $0x7c8] sm:$0xff] }
 0x1d6   :  { %5388 = vperm.xlu1 %7532, %v4138_v43   ;;  %v1860_v60 = vadd.f32 %v8941_v7, %v7108_v28  ;;  %v1851_v59 = vpop.f32.mrb[125].mxu0  ;;  %v2918_v1 = vpop.f32.mrb[11].mxu1  ;;  %v2927_v55 = vadd.f32 %v7269_v34, %v9351_v18  ;;  %v4140_v34 = vld [vmem:[%s10507_s1 + $0x7d0] sm:$0xff] }
 0x1d7   :  { %v5438_v50 = vadd.f32 %v8182_v16, %v2916_v56  ;;  %5318 = vperm.xlu0 %7531, %v4124_v63   ;;  %v5697_v17 = vmax.f32 %v5696_v42, %v5437_v53  ;;  %v1852_v16 = vadd.f32 %v8941_v7, %v1851_v59  ;;  %v2919_v43 = vadd.f32 %v9351_v18, %v2918_v1  ;;  %v7109_v6 = vpop.f32.mrb[126].mxu0  ;;  %v9413_v63 = vpop.permute.xlu0 %4868 }
 0x1d8   :  { %7374 = vmatprep.mubr.bf16.mxu1 %v2694_v24  ;;  %v1863_v8 = vadd.f32 %v8941_v7, %v7109_v6  ;;  %v1854_v54 = vpop.f32.mrb[127].mxu0  ;;  %v2504_v24 = vmax.f32 %v1860_v60, 0.0  ;;  %v5441_v6 = vadd.f32 %v8192_v19, %v2927_v55  ;;  %v4126_v19 = vld [vmem:[%s10507_s1 + $0x760] sm:$0xff] }
 0x1d9   :  { %7375 = vmatmul.mubr.bf16.gmra.mrb[116].mxu1 %v2695_v2  ;;  %v5698_v33 = vmax.f32 %v5697_v17, %v5438_v50  ;;  %v5439_v56 = vadd.f32 %v8180_v15, %v2919_v43  ;;  %v1855_v28 = vadd.f32 %v8941_v7, %v1854_v54  ;;  %v5440_v2 = vadd.f32 %v8194_v20, %v2924_v44  ;;  %v4125_v7 = vld [vmem:[%s10507_s1 + $0x758] sm:$0xff]  ;;  %v9427_v43 = vpop.permute.xlu1 %4883  ;;  %v9436_v44 = vld [vmem:[%s10509_s3] ss:$0 sm:$0xff] }
 0x1da   :  { %7215 = vmatmul.mubr.msk.bf16.gmra.mrb[232].mxu0 %vm929_vm2, %v7658_v10  ;;  %5358 = vperm.xlu1 %7532, %v4132_v27   ;;  %v2505_v53 = vmax.f32 %v1863_v8, 0.0  ;;  %v2502_v50 = vmax.f32 %v1852_v16, 0.0  ;;  %v7660_v20 = vld [vmem:[%s10506_s0 + $0x3b8] sm:$0xff]   ;;  %v7661_v55 = vld [vmem:[%s10506_s0 + $0x3c0] sm:$0xff]  }
 0x1db   :  { %5393 = vperm.xlu0 %7531, %v4139_v5   ;;  %v7272_v42 = vpop.f32.mrb[12].mxu1  ;;  %7218 = vmatprep.mubr.msk.bf16.mxu0 %vm929_vm2, %v7659_v9  ;;  %v5699_v59 = vmax.f32 %v5698_v33, %v5439_v56  ;;  %v2503_v15 = vmax.f32 %v1855_v28, 0.0  ;;  %v9445_v33 = vpop.permute.xlu0 %4878 }
 0x1dc   :  { %v2931_v1 = vpop.f32.mrb[13].mxu1  ;;  %v2697_v10 = vpack.c.bf16 %v2505_v53, %v2504_v24  ;;  %v2940_v28 = vadd.f32 %v7272_v42, %v9351_v18 }
 0x1dd   :  { %v2932_v60 = vadd.f32 %v9351_v18, %v2931_v1  ;;  %v7112_v27 = vpop.f32.mrb[128].mxu0  ;;  %v7273_v17 = vpop.f32.mrb[14].mxu1  ;;  %v5700_v9 = vmax.f32 %v5699_v59, %v5440_v2  ;;  %v2696_v5 = vpack.c.bf16 %v2503_v15, %v2502_v50  ;;  %v4133_v2 = vld [vmem:[%s10507_s1 + $0x798] sm:$0xff] }
 0x1de   :  { %5398 = vperm.xlu1 %7532, %v4140_v34   ;;  %v1876_v16 = vadd.f32 %v9436_v44, %v7112_v27  ;;  %v1867_v8 = vpop.f32.mrb[129].mxu0  ;;  %v2934_v54 = vpop.f32.mrb[15].mxu1  ;;  %v2943_v1 = vadd.f32 %v7273_v17, %v9351_v18 }
 0x1df   :  { %5323 = vperm.xlu0 %7531, %v4125_v7   ;;  %v9447_v56 = vmax.f32 %v5700_v9, %v5441_v6  ;;  %v1868_v24 = vadd.f32 %v9436_v44, %v1867_v8  ;;  %v2935_v53 = vadd.f32 %v9351_v18, %v2934_v54  ;;  %v7113_v34 = vpop.f32.mrb[130].mxu0  ;;  %7378 = vmatprep.mubr.bf16.mxu1 %v2696_v5 }
 0x1e0   :  { %v5442_v50 = vadd.f32 %v8210_v26, %v2932_v60  ;;  %v1879_v59 = vadd.f32 %v9436_v44, %v7113_v34  ;;  %v1870_v15 = vpop.f32.mrb[131].mxu0  ;;  %v2508_v27 = vmax.f32 %v1876_v16, 0.0  ;;  %v4134_v26 = vld [vmem:[%s10507_s1 + $0x7a0] sm:$0xff]  ;;  %v5444_v60 = vadd.f32 %v8222_v30, %v2940_v28  ;;  %v9472_v34 = vpop.permute.xlu0 %4888  ;;  %v7662_v30 = vld [vmem:[%s10506_s0 + $0x3c8] sm:$0xff]  }
 0x1e1   :  { %7379 = vmatmul.mubr.bf16.gmra.mrb[120].mxu1 %v2697_v10  ;;  %v5443_v42 = vadd.f32 %v8208_v25, %v2935_v53  ;;  %v1871_v7 = vadd.f32 %v9436_v44, %v1870_v15  ;;  %v9465_v10 = vpop.permute.xlu1 %4893  ;;  %v2506_v25 = vmax.f32 %v1868_v24, 0.0 }
 0x1e2   :  { %7219 = vmatmul.mubr.msk.bf16.gmra.mrb[236].mxu0 %vm929_vm2, %v7660_v20  ;;  %5328 = vperm.xlu1 %7532, %v4126_v19   ;;  %v2509_v6 = vmax.f32 %v1879_v59, 0.0  ;;  %v4141_v20 = vld [vmem:[%s10507_s1 + $0x7d8] sm:$0xff] }
 0x1e3   :  { %5363 = vperm.xlu0 %7531, %v4133_v2   ;;  %v7276_v9 = vpop.f32.mrb[16].mxu1  ;;  %7222 = vmatprep.mubr.msk.bf16.mxu0 %vm929_vm2, %v7661_v55  ;;  %v5708_v17 = vmax.f32 %v5442_v50, %v5443_v42  ;;  %v2507_v5 = vmax.f32 %v1871_v7, 0.0  ;;  %v5445_v55 = vadd.f32 %v8220_v29, %v2943_v1  ;;  %v4142_v42 = vld [vmem:[%s10507_s1 + $0x7e0] sm:$0xff]  ;;  %v7663_v29 = vld [vmem:[%s10506_s0 + $0x3d0] sm:$0xff]  }
 0x1e4   :  { %v2947_v8 = vpop.f32.mrb[17].mxu1  ;;  %v2699_v16 = vpack.c.bf16 %v2509_v6, %v2508_v27  ;;  %v2956_v1 = vadd.f32 %v7276_v9, %v9351_v18 }
 0x1e5   :  { %v2948_v54 = vadd.f32 %v9351_v18, %v2947_v8  ;;  %v7116_v19 = vpop.f32.mrb[132].mxu0  ;;  %v7277_v53 = vpop.f32.mrb[18].mxu1  ;;  %v5709_v2 = vmax.f32 %v5708_v17, %v5444_v60  ;;  %v2698_v59 = vpack.c.bf16 %v2507_v5, %v2506_v25 }
 0x1e6   :  { %5368 = vperm.xlu1 %7532, %v4134_v26   ;;  %v1892_v24 = vadd.f32 %v9436_v44, %v7116_v19  ;;  %v1883_v50 = vpop.f32.mrb[133].mxu0  ;;  %v2950_v15 = vpop.f32.mrb[19].mxu1  ;;  %v2959_v9 = vadd.f32 %v7277_v53, %v9351_v18  ;;  %v5448_v53 = vadd.f32 %v8250_v40, %v2956_v1 }
 0x1e7   :  { %v5446_v28 = vadd.f32 %v8238_v36, %v2948_v54  ;;  %5403 = vperm.xlu0 %7531, %v4141_v20   ;;  %v5710_v7 = vmax.f32 %v5709_v2, %v5445_v55  ;;  %v2951_v27 = vadd.f32 %v9351_v18, %v2950_v15  ;;  %v7117_v6 = vpop.f32.mrb[134].mxu0  ;;  %7382 = vmatprep.mubr.bf16.mxu1 %v2698_v59  ;;  %v4127_v36 = vld [vmem:[%s10507_s1 + $0x768] sm:$0xff]  ;;  %v9493_v17 = vpop.permute.xlu1 %4903 }
 0x1e8   :  { %v1884_v26 = vadd.f32 %v9436_v44, %v1883_v50  ;;  %v1895_v60 = vadd.f32 %v9436_v44, %v7117_v6  ;;  %v1886_v25 = vpop.f32.mrb[135].mxu0  ;;  %v2512_v20 = vmax.f32 %v1892_v24, 0.0  ;;  %v9503_v2 = vpop.permute.xlu0 %4898 }
 0x1e9   :  { %7383 = vmatmul.mubr.bf16.gmra.mrb[124].mxu1 %v2699_v16  ;;  %v5711_v5 = vmax.f32 %v5710_v7, %v5446_v28  ;;  %v5447_v8 = vadd.f32 %v8236_v35, %v2951_v27  ;;  %v1887_v19 = vadd.f32 %v9436_v44, %v1886_v25  ;;  %v4135_v16 = vld [vmem:[%s10507_s1 + $0x7a8] sm:$0xff]  ;;  %v5449_v7 = vadd.f32 %v8248_v39, %v2959_v9 }
 0x1ea   :  { %7223 = vmatmul.mubr.msk.bf16.gmra.mrb[240].mxu0 %vm929_vm2, %v7662_v30  ;;  %5408 = vperm.xlu1 %7532, %v4142_v42   ;;  %v2513_v54 = vmax.f32 %v1895_v60, 0.0  ;;  %v4120_v30 = vld [vmem:[%s10507_s1 + $0x730] sm:$0xff]  ;;  %v2510_v28 = vmax.f32 %v1884_v26, 0.0  ;;  %v4143_v9 = vld [vmem:[%s10507_s1 + $0x7e8] sm:$0xff] }
 0x1eb   :  { %5333 = vperm.xlu0 %7531, %v4127_v36   ;;  %v7280_v55 = vpop.f32.mrb[20].mxu1  ;;  %7226 = vmatprep.mubr.msk.bf16.mxu0 %vm929_vm2, %v7663_v29  ;;  %v5712_v35 = vmax.f32 %v5711_v5, %v5447_v8  ;;  %v2511_v50 = vmax.f32 %v1887_v19, 0.0  ;;  %v7664_v29 = vld [vmem:[%s10506_s0 + $0x3d8] sm:$0xff]   ;;  %v9515_v26 = vpop.permute.xlu1 %4913  ;;  %v4128_v8 = vld [vmem:[%s10507_s1 + $0x770] sm:$0xff] }
 0x1ec   :  { %v2963_v59 = vpop.f32.mrb[21].mxu1  ;;  %v2701_v24 = vpack.c.bf16 %v2513_v54, %v2512_v20  ;;  %v7665_v20 = vld [vmem:[%s10506_s0 + $0x3e0] sm:$0xff]   ;;  %v2972_v54 = vadd.f32 %v7280_v55, %v9351_v18 }
 0x1ed   :  { %v7120_v15 = vpop.f32.mrb[136].mxu0  ;;  %v7281_v42 = vpop.f32.mrb[22].mxu1  ;;  %v5713_v27 = vmax.f32 %v5712_v35, %v5448_v53  ;;  %v2700_v40 = vpack.c.bf16 %v2511_v50, %v2510_v28  ;;  %v2964_v1 = vadd.f32 %v9351_v18, %v2963_v59 }
 0x1ee   :  { %5373 = vperm.xlu1 %7532, %v4135_v16   ;;  %v1908_v6 = vadd.f32 %v9436_v44, %v7120_v15  ;;  %v1899_v36 = vpop.f32.mrb[137].mxu0  ;;  %v2966_v60 = vpop.f32.mrb[23].mxu1  ;;  %v2975_v59 = vadd.f32 %v7281_v42, %v9351_v18  ;;  %v4136_v42 = vld [vmem:[%s10507_s1 + $0x7b0] sm:$0xff] }
 0x1ef   :  { %5298 = vperm.xlu0 %7531, %v4120_v30   ;;  %v9517_v25 = vmax.f32 %v5713_v27, %v5449_v7  ;;  %v1900_v39 = vadd.f32 %v9436_v44, %v1899_v36  ;;  %v7121_v5 = vpop.f32.mrb[138].mxu0  ;;  %v2967_v19 = vadd.f32 %v9351_v18, %v2966_v60  ;;  %7386 = vmatprep.mubr.bf16.mxu1 %v2700_v40  ;;  %v9532_v35 = vpop.permute.xlu0 %4908 }
 0x1f0   :  { %v1911_v16 = vadd.f32 %v9436_v44, %v7121_v5  ;;  %v1902_v53 = vpop.f32.mrb[139].mxu0  ;;  %v5450_v28 = vadd.f32 %v8266_v46, %v2964_v1  ;;  %v2516_v50 = vmax.f32 %v1908_v6, 0.0  ;;  %v5452_v46 = vadd.f32 %v8278_v52, %v2972_v54 }
 0x1f1   :  { %v1903_v30 = vadd.f32 %v9436_v44, %v1902_v53  ;;  %7387 = vmatmul.mubr.bf16.gmra.mrb[128].mxu1 %v2701_v24  ;;  %v5451_v55 = vadd.f32 %v8264_v45, %v2967_v19  ;;  %v2514_v27 = vmax.f32 %v1900_v39, 0.0  ;;  %v4121_v24 = vld [vmem:[%s10507_s1 + $0x738] sm:$0xff]  ;;  %v9548_v39 = vpop.permute.xlu1 %4923  ;;  %v5453_v5 = vadd.f32 %v8276_v51, %v2975_v59 }
 0x1f2   :  { %7227 = vmatmul.mubr.msk.bf16.gmra.mrb[244].mxu0 %vm929_vm2, %v7664_v29  ;;  %v2517_v15 = vmax.f32 %v1911_v16, 0.0  ;;  %5413 = vperm.xlu1 %7532, %v4143_v9  }
 0x1f3   :  { %5338 = vperm.xlu0 %7531, %v4128_v8   ;;  %v7284_v7 = vpop.f32.mrb[24].mxu1  ;;  %v2515_v40 = vmax.f32 %v1903_v30, 0.0  ;;  %7230 = vmatprep.mubr.msk.bf16.mxu0 %vm929_vm2, %v7665_v20  ;;  %v5721_v45 = vmax.f32 %v5450_v28, %v5451_v55  ;;  %v7666_v8 = vld [vmem:[%s10506_s0 + $0x3e8] sm:$0xff]   ;;  %v9556_v53 = vpop.permute.xlu0 %4918  ;;  %v4144_v28 = vld [vmem:[%s10507_s1 + $0x7f0] sm:$0xff] }
 0x1f4   :  { %v2979_v36 = vpop.f32.mrb[25].mxu1  ;;  %v2703_v29 = vpack.c.bf16 %v2517_v15, %v2516_v50  ;;  %v7667_v50 = vld [vmem:[%s10506_s0 + $0x3f0] sm:$0xff]   ;;  %v2988_v55 = vadd.f32 %v7284_v7, %v9351_v18 }
 0x1f5   :  { %v2980_v1 = vadd.f32 %v9351_v18, %v2979_v36  ;;  %v7124_v6 = vpop.f32.mrb[140].mxu0  ;;  %v7285_v60 = vpop.f32.mrb[26].mxu1  ;;  %v2702_v9 = vpack.c.bf16 %v2515_v40, %v2514_v27  ;;  %v5722_v19 = vmax.f32 %v5721_v45, %v5452_v46 }
 0x1f6   :  { %v1924_v52 = vadd.f32 %v9436_v44, %v7124_v6  ;;  %v1915_v54 = vpop.f32.mrb[141].mxu0  ;;  %v2982_v16 = vpop.f32.mrb[27].mxu1  ;;  %5378 = vperm.xlu1 %7532, %v4136_v42   ;;  %v2991_v45 = vadd.f32 %v7285_v60, %v9351_v18 }
 0x1f7   :  { %v5454_v20 = vadd.f32 %v8294_v62, %v2980_v1  ;;  %5303 = vperm.xlu0 %7531, %v4121_v24   ;;  %v1916_v30 = vadd.f32 %v9436_v44, %v1915_v54  ;;  %v2983_v51 = vadd.f32 %v9351_v18, %v2982_v16  ;;  %v7125_v59 = vpop.f32.mrb[142].mxu0  ;;  %7390 = vmatprep.mubr.bf16.mxu1 %v2702_v9  ;;  %v4129_v62 = vld [vmem:[%s10507_s1 + $0x778] sm:$0xff]  ;;  %v9584_v16 = vpop.permute.xlu1 %4933 }
 0x1f8   :  { %v5723_v15 = vmax.f32 %v5722_v19, %v5453_v5  ;;  %v1927_v27 = vadd.f32 %v9436_v44, %v7125_v59  ;;  %v1918_v40 = vpop.f32.mrb[143].mxu0  ;;  %v2520_v46 = vmax.f32 %v1924_v52, 0.0  ;;  %v7668_v59 = vld [vmem:[%s10506_s0 + $0x3f8] sm:$0xff]  }
 0x1f9   :  { %v5455_v36 = vadd.f32 %v8292_v61, %v2983_v51  ;;  %v1919_v42 = vadd.f32 %v9436_v44, %v1918_v40  ;;  %7391 = vmatmul.mubr.bf16.gmra.mrb[132].mxu1 %v2703_v29  ;;  %v2518_v7 = vmax.f32 %v1916_v30, 0.0  ;;  %v4145_v61 = vld [vmem:[%s10507_s1 + $0x7f8] sm:$0xff]  ;;  %v9586_v30 = vpop.permute.xlu0 %4928 }
 0x1fa   :  { %7231 = vmatmul.mubr.msk.bf16.gmra.mrb[248].mxu0 %vm929_vm2, %v7666_v8  ;;  %v5724_v24 = vmax.f32 %v5723_v15, %v5454_v20  ;;  %v2521_v1 = vmax.f32 %v1927_v27, 0.0  ;;  %5418 = vperm.xlu1 %7532, %v4144_v28   ;;  %v4137_v29 = vld [vmem:[%s10507_s1 + $0x7b8] sm:$0xff]  ;;  %v5456_v8 = vadd.f32 %v8306_v4, %v2988_v55  ;;  %v5457_v28 = vadd.f32 %v8304_v3, %v2991_v45 }
 0x1fb   :  { %5343 = vperm.xlu0 %7531, %v4129_v62   ;;  %v7288_v6 = vpop.f32.mrb[28].mxu1  ;;  %v2519_v5 = vmax.f32 %v1919_v42, 0.0  ;;  %7234 = vmatprep.mubr.msk.bf16.mxu0 %vm929_vm2, %v7667_v50 }
 0x1fc   :  { %v2995_v9 = vpop.f32.mrb[29].mxu1  ;;  %v5725_v60 = vmax.f32 %v5724_v24, %v5455_v36  ;;  %v2705_v19 = vpack.c.bf16 %v2521_v1, %v2520_v46  ;;  %v3004_v15 = vadd.f32 %v7288_v6, %v9351_v18 }
 0x1fd   :  { %v2996_v20 = vadd.f32 %v9351_v18, %v2995_v9  ;;  %v7128_v52 = vpop.f32.mrb[144].mxu0  ;;  %v7289_v54 = vpop.f32.mrb[30].mxu1  ;;  %v2704_v51 = vpack.c.bf16 %v2519_v5, %v2518_v7 }
 0x1fe   :  { %v5726_v62 = vmax.f32 %v5725_v60, %v5456_v8  ;;  %v1940_v4 = vadd.f32 %v9436_v44, %v7128_v52  ;;  %v1931_v50 = vpop.f32.mrb[145].mxu0  ;;  %v2998_v55 = vpop.f32.mrb[31].mxu1  ;;  %5423 = vperm.xlu1 %7532, %v4145_v61   ;;  %v3007_v45 = vadd.f32 %v7289_v54, %v9351_v18  ;;  %v5460_v61 = vadd.f32 %v8334_v22, %v3004_v15 }
 0x1ff   :  { %5383 = vperm.xlu0 %7531, %v4137_v29   ;;  %v1932_v27 = vadd.f32 %v9436_v44, %v1931_v50  ;;  %v2999_v40 = vadd.f32 %v9351_v18, %v2998_v55  ;;  %v7129_v36 = vpop.f32.mrb[146].mxu0  ;;  %7394 = vmatprep.mubr.bf16.mxu1 %v2704_v51  ;;  %v5458_v24 = vadd.f32 %v8322_v14, %v2996_v20 }
 0x200   :  { %v9596_v42 = vmax.f32 %v5726_v62, %v5457_v28  ;;  %v1943_v3 = vadd.f32 %v9436_v44, %v7129_v36  ;;  %v1934_v46 = vpop.f32.mrb[147].mxu0  ;;  %v2524_v6 = vmax.f32 %v1940_v4, 0.0 }
 0x201   :  { %v5459_v1 = vadd.f32 %v8320_v13, %v2999_v40  ;;  %v1935_v7 = vadd.f32 %v9436_v44, %v1934_v46  ;;  %7395 = vmatmul.mubr.bf16.gmra.mrb[136].mxu1 %v2705_v19  ;;  %v2522_v14 = vmax.f32 %v1932_v27, 0.0  ;;  %v5461_v19 = vadd.f32 %v8332_v21, %v3007_v45 }
 0x202   :  { %7235 = vmatmul.mubr.msk.bf16.gmra.mrb[252].mxu0 %vm929_vm2, %v7668_v59  ;;  %v2525_v5 = vmax.f32 %v1943_v3, 0.0  ;;  %vm6334_vm2 = vcmask 1047559  }
 0x203   :  { %7254 = vmatprep.mubr.bf16.mxu0 %v8457_v41  ;;  %v7292_v9 = vpop.f32.mrb[32].mxu1  ;;  %v5734_v29 = vmax.f32 %v5458_v24, %v5459_v1  ;;  %v2523_v8 = vmax.f32 %v1935_v7, 0.0 }
 0x204   :  { %v3011_v60 = vpop.f32.mrb[33].mxu1  ;;  %v2707_v20 = vpack.c.bf16 %v2525_v5, %v2524_v6  ;;  %v3020_v22 = vadd.f32 %v7292_v9, %v9351_v18 }
 0x205   :  { %v3012_v52 = vadd.f32 %v9351_v18, %v3011_v60  ;;  %v7132_v13 = vpop.f32.mrb[148].mxu0  ;;  %v7293_v54 = vpop.f32.mrb[34].mxu1  ;;  %v5735_v51 = vmax.f32 %v5734_v29, %v5460_v61  ;;  %v2706_v59 = vpack.c.bf16 %v2523_v8, %v2522_v14 }
 0x206   :  { %v1956_v41 = vadd.f32 %v9436_v44, %v7132_v13  ;;  %v1947_v62 = vpop.f32.mrb[149].mxu0  ;;  %v3014_v4 = vpop.f32.mrb[35].mxu1  ;;  %v3023_v40 = vadd.f32 %v7293_v54, %v9351_v18  ;;  %v5464_v7 = vadd.f32 %v8362_v38, %v3020_v22 }
 0x207   :  { %v5462_v28 = vadd.f32 %v8350_v32, %v3012_v52  ;;  %v5736_v50 = vmax.f32 %v5735_v51, %v5461_v19  ;;  %v1948_v55 = vadd.f32 %v9436_v44, %v1947_v62  ;;  %v3015_v15 = vadd.f32 %v9351_v18, %v3014_v4  ;;  %v7133_v27 = vpop.f32.mrb[150].mxu0  ;;  %7398 = vmatprep.mubr.bf16.mxu1 %v2706_v59 }
 0x208   :  { %v1959_v21 = vadd.f32 %v9436_v44, %v7133_v27  ;;  %v1950_v36 = vpop.f32.mrb[151].mxu0  ;;  %v2528_v46 = vmax.f32 %v1956_v41, 0.0  ;;  %v5465_v60 = vadd.f32 %v8360_v37, %v3023_v40 }
 0x209   :  { %v5737_v24 = vmax.f32 %v5736_v50, %v5462_v28  ;;  %v5463_v32 = vadd.f32 %v8348_v31, %v3015_v15  ;;  %v1951_v3 = vadd.f32 %v9436_v44, %v1950_v36  ;;  %7399 = vmatmul.mubr.bf16.gmra.mrb[140].mxu1 %v2707_v20  ;;  %v2526_v6 = vmax.f32 %v1948_v55, 0.0 }
 0x20a   :  { %7255 = vmatmul.mubr.bf16.vlgmr.msra.gmra.mrb[0].mxu0 %v8450_v49  ;;  %v2529_v45 = vmax.f32 %v1959_v21, 0.0 }
 0x20b   :  { %v7296_v1 = vpop.f32.mrb[36].mxu1  ;;  %v5738_v5 = vmax.f32 %v5737_v24, %v5463_v32  ;;  %v2527_v9 = vmax.f32 %v1951_v3, 0.0 }
 0x20c   :  { %v3027_v61 = vpop.f32.mrb[37].mxu1  ;;  %v2709_v14 = vpack.c.bf16 %v2529_v45, %v2528_v46  ;;  %v3036_v59 = vadd.f32 %v7296_v1, %v9351_v18 }
 0x20d   :  { %v7136_v29 = vpop.f32.mrb[152].mxu0  ;;  %v7297_v8 = vpop.f32.mrb[38].mxu1  ;;  %v5739_v31 = vmax.f32 %v5738_v5, %v5464_v7  ;;  %v2708_v52 = vpack.c.bf16 %v2527_v9, %v2526_v6  ;;  %v3028_v20 = vadd.f32 %v9351_v18, %v3027_v61 }
 0x20e   :  { %v1972_v49 = vadd.f32 %v9436_v44, %v7136_v29  ;;  %v1963_v13 = vpop.f32.mrb[153].mxu0  ;;  %v3030_v54 = vpop.f32.mrb[39].mxu1  ;;  %v3039_v50 = vadd.f32 %v7297_v8, %v9351_v18  ;;  %v5468_v24 = vadd.f32 %v8390_v58, %v3036_v59 }
 0x20f   :  { %v9622_v19 = vmax.f32 %v5739_v31, %v5465_v60  ;;  %v1964_v38 = vadd.f32 %v9436_v44, %v1963_v13  ;;  %v7137_v51 = vpop.f32.mrb[154].mxu0  ;;  %7402 = vmatprep.mubr.bf16.mxu1 %v2708_v52  ;;  %v3031_v28 = vadd.f32 %v9351_v18, %v3030_v54  ;;  %v5466_v62 = vadd.f32 %v8378_v48, %v3028_v20 }
 0x210   :  { %v1975_v37 = vadd.f32 %v9436_v44, %v7137_v51  ;;  %v1966_v41 = vpop.f32.mrb[155].mxu0  ;;  %v2532_v22 = vmax.f32 %v1972_v49, 0.0  ;;  %v5469_v7 = vadd.f32 %v8388_v57, %v3039_v50 }
 0x211   :  { %v1967_v4 = vadd.f32 %v9436_v44, %v1966_v41  ;;  %7403 = vmatmul.mubr.bf16.gmra.mrb[144].mxu1 %v2709_v14  ;;  %v5467_v55 = vadd.f32 %v8376_v47, %v3031_v28  ;;  %v2530_v40 = vmax.f32 %v1964_v38, 0.0 }
 0x212   :  { %v2533_v15 = vmax.f32 %v1975_v37, 0.0  ;;  %v10622_v37 = vld [vmem:[#allocation14_spill] sm:$0xff] }
 0x213   :  { %v7300_v27 = vpop.f32.mrb[40].mxu1  ;;  %v2531_v21 = vmax.f32 %v1967_v4, 0.0  ;;  %v5747_v32 = vmax.f32 %v5466_v62, %v5467_v55 }
 0x214   :  { %v3043_v36 = vpop.f32.mrb[41].mxu1  ;;  %v2711_v3 = vpack.c.bf16 %v2533_v15, %v2532_v22  ;;  %v3052_v8 = vadd.f32 %v7300_v27, %v9351_v18  ;;  %v10623_v15 = vld [vmem:[#allocation13_spill] sm:$0xff] }
 0x215   :  { %v3044_v46 = vadd.f32 %v9351_v18, %v3043_v36  ;;  %v7140_v48 = vpop.f32.mrb[156].mxu0  ;;  %v7301_v45 = vpop.f32.mrb[42].mxu1  ;;  %v2710_v1 = vpack.c.bf16 %v2531_v21, %v2530_v40  ;;  %v5748_v6 = vmax.f32 %v5747_v32, %v5468_v24 }
 0x216   :  { %v1988_v47 = vadd.f32 %v9436_v44, %v7140_v48  ;;  %v1979_v9 = vpop.f32.mrb[157].mxu0  ;;  %v3046_v61 = vpop.f32.mrb[43].mxu1  ;;  %v3055_v13 = vadd.f32 %v7301_v45, %v9351_v18  ;;  %v5472_v41 = vadd.f32 %v10622_v37, %v3052_v8 }
 0x217   :  { %v5470_v5 = vadd.f32 %v8406_v12, %v3044_v46  ;;  %v1980_v14 = vadd.f32 %v9436_v44, %v1979_v9  ;;  %v3047_v58 = vadd.f32 %v9351_v18, %v3046_v61  ;;  %v7141_v29 = vpop.f32.mrb[158].mxu0  ;;  %7406 = vmatprep.mubr.bf16.mxu1 %v2710_v1  ;;  %v5749_v60 = vmax.f32 %v5748_v6, %v5469_v7  ;;  %v10624_v6 = vld [vmem:[#allocation16_spill] sm:$0xff]  ;;  %v10625_v9 = vld [vmem:[#allocation15_spill] sm:$0xff] }
 0x218   :  { %v1991_v31 = vadd.f32 %v9436_v44, %v7141_v29  ;;  %v1982_v52 = vpop.f32.mrb[159].mxu0  ;;  %v2536_v49 = vmax.f32 %v1988_v47, 0.0  ;;  %v5473_v27 = vadd.f32 %v10623_v15, %v3055_v13 }
 0x219   :  { %v5471_v57 = vadd.f32 %v8404_v11, %v3047_v58  ;;  %v1983_v12 = vadd.f32 %v9436_v44, %v1982_v52  ;;  %7407 = vmatmul.mubr.bf16.gmra.mrb[148].mxu1 %v2711_v3  ;;  %v5750_v20 = vmax.f32 %v5749_v60, %v5470_v5  ;;  %v2534_v51 = vmax.f32 %v1980_v14, 0.0  ;;  %v10626_v60 = vld [vmem:[#allocation18_spill] sm:$0xff] }
 0x21a   :  { %v2537_v54 = vmax.f32 %v1991_v31, 0.0 }
 0x21b   :  { %v7304_v38 = vpop.f32.mrb[44].mxu1  ;;  %v2535_v59 = vmax.f32 %v1983_v12, 0.0  ;;  %v5751_v62 = vmax.f32 %v5750_v20, %v5471_v57 }
 0x21c   :  { %v3059_v28 = vpop.f32.mrb[45].mxu1  ;;  %v2713_v4 = vpack.c.bf16 %v2537_v54, %v2536_v49  ;;  %v3068_v32 = vadd.f32 %v7304_v38, %v9351_v18 }
 0x21d   :  { %v7144_v22 = vpop.f32.mrb[160].mxu0  ;;  %v7305_v50 = vpop.f32.mrb[46].mxu1  ;;  %v2712_v55 = vpack.c.bf16 %v2535_v59, %v2534_v51  ;;  %v3060_v11 = vadd.f32 %v9351_v18, %v3059_v28  ;;  %v5752_v40 = vmax.f32 %v5751_v62, %v5472_v41  ;;  %v10627_v51 = vld [vmem:[#allocation17_spill] sm:$0xff]  ;;  %v10628_v41 = vld [vmem:[#allocation20_spill] sm:$0xff] }
 0x21e   :  { %v2004_v21 = vadd.f32 %v9436_v44, %v7144_v22  ;;  %v1995_v36 = vpop.f32.mrb[161].mxu0  ;;  %v3062_v24 = vpop.f32.mrb[47].mxu1  ;;  %v3071_v47 = vadd.f32 %v7305_v50, %v9351_v18  ;;  %v5476_v31 = vadd.f32 %v10626_v60, %v3068_v32 }
 0x21f   :  { %v1996_v3 = vadd.f32 %v9436_v44, %v1995_v36  ;;  %v3063_v46 = vadd.f32 %v9351_v18, %v3062_v24  ;;  %v7145_v48 = vpop.f32.mrb[162].mxu0  ;;  %7410 = vmatprep.mubr.bf16.mxu1 %v2712_v55  ;;  %v9651_v45 = vmax.f32 %v5752_v40, %v5473_v27  ;;  %v5474_v5 = vadd.f32 %v10624_v6, %v3060_v11 }
 0x220   :  { %v2007_v1 = vadd.f32 %v9436_v44, %v7145_v48  ;;  %v1998_v7 = vpop.f32.mrb[163].mxu0  ;;  %v2540_v58 = vmax.f32 %v2004_v21, 0.0  ;;  %v5477_v59 = vadd.f32 %v10627_v51, %v3071_v47 }
 0x221   :  { %v5475_v61 = vadd.f32 %v10625_v9, %v3063_v46  ;;  %v1999_v14 = vadd.f32 %v9436_v44, %v1998_v7  ;;  %7411 = vmatmul.mubr.bf16.gmra.mrb[152].mxu1 %v2713_v4  ;;  %v2538_v52 = vmax.f32 %v1996_v3, 0.0  ;;  %v10629_v3 = vld [vmem:[#allocation19_spill] sm:$0xff] }
 0x222   :  { %v2541_v29 = vmax.f32 %v2007_v1, 0.0 }
 0x223   :  { %v7308_v8 = vpop.f32.mrb[48].mxu1  ;;  %v5760_v57 = vmax.f32 %v5474_v5, %v5475_v61  ;;  %v2539_v12 = vmax.f32 %v1999_v14, 0.0  ;;  %v10630_v5 = vld [vmem:[#allocation22_spill] sm:$0xff] }
 0x224   :  { %v3075_v20 = vpop.f32.mrb[49].mxu1  ;;  %v2715_v49 = vpack.c.bf16 %v2541_v29, %v2540_v58  ;;  %v3084_v55 = vadd.f32 %v7308_v8, %v9351_v18 }
 0x225   :  { %v3076_v13 = vadd.f32 %v9351_v18, %v3075_v20  ;;  %v7148_v54 = vpop.f32.mrb[164].mxu0  ;;  %v7309_v38 = vpop.f32.mrb[50].mxu1  ;;  %v5761_v28 = vmax.f32 %v5760_v57, %v5476_v31  ;;  %v2714_v37 = vpack.c.bf16 %v2539_v12, %v2538_v52  ;;  %v10631_v31 = vld [vmem:[#allocation21_spill] sm:$0xff] }
 0x226   :  { %v2020_v4 = vadd.f32 %v9436_v44, %v7148_v54  ;;  %v2011_v22 = vpop.f32.mrb[165].mxu0  ;;  %v3078_v50 = vpop.f32.mrb[51].mxu1  ;;  %v3087_v32 = vadd.f32 %v7309_v38, %v9351_v18  ;;  %v5480_v47 = vadd.f32 %v10630_v5, %v3084_v55 }
 0x227   :  { %v5478_v62 = vadd.f32 %v10628_v41, %v3076_v13  ;;  %v5762_v11 = vmax.f32 %v5761_v28, %v5477_v59  ;;  %v2012_v15 = vadd.f32 %v9436_v44, %v2011_v22  ;;  %v3079_v27 = vadd.f32 %v9351_v18, %v3078_v50  ;;  %v7149_v40 = vpop.f32.mrb[166].mxu0  ;;  %7414 = vmatprep.mubr.bf16.mxu1 %v2714_v37 }
 0x228   :  { %v2023_v21 = vadd.f32 %v9436_v44, %v7149_v40  ;;  %v2014_v36 = vpop.f32.mrb[167].mxu0  ;;  %v2544_v1 = vmax.f32 %v2020_v4, 0.0  ;;  %v5481_v52 = vadd.f32 %v10631_v31, %v3087_v32  ;;  %v10632_v4 = vld [vmem:[#allocation24_spill] sm:$0xff] }
 0x229   :  { %v5763_v24 = vmax.f32 %v5762_v11, %v5478_v62  ;;  %v5479_v46 = vadd.f32 %v10629_v3, %v3079_v27  ;;  %v2015_v48 = vadd.f32 %v9436_v44, %v2014_v36  ;;  %7415 = vmatmul.mubr.bf16.gmra.mrb[156].mxu1 %v2715_v49  ;;  %v2542_v9 = vmax.f32 %v2012_v15, 0.0  ;;  %v10633_v15 = vld [vmem:[#allocation23_spill] sm:$0xff]  ;;  %v10634_v3 = vld [vmem:[#allocation26_spill] sm:$0xff] }
 0x22a   :  { %v2545_v7 = vmax.f32 %v2023_v21, 0.0 }
 0x22b   :  { %v7312_v6 = vpop.f32.mrb[52].mxu1  ;;  %v5764_v61 = vmax.f32 %v5763_v24, %v5479_v46  ;;  %v2543_v14 = vmax.f32 %v2015_v48, 0.0 }
 0x22c   :  { %v3091_v58 = vpop.f32.mrb[53].mxu1  ;;  %v2717_v29 = vpack.c.bf16 %v2545_v7, %v2544_v1  ;;  %v3100_v28 = vadd.f32 %v7312_v6, %v9351_v18 }
 0x22d   :  { %v7152_v8 = vpop.f32.mrb[168].mxu0  ;;  %v7313_v60 = vpop.f32.mrb[54].mxu1  ;;  %v5765_v57 = vmax.f32 %v5764_v61, %v5480_v47  ;;  %v2716_v12 = vpack.c.bf16 %v2543_v14, %v2542_v9  ;;  %v3092_v20 = vadd.f32 %v9351_v18, %v3091_v58  ;;  %v10635_v9 = vld [vmem:[#allocation25_spill] sm:$0xff]  ;;  %v10636_v58 = vld [vmem:[#allocation28_spill] sm:$0xff] }
 0x22e   :  { %v2036_v49 = vadd.f32 %v9436_v44, %v7152_v8  ;;  %v2027_v13 = vpop.f32.mrb[169].mxu0  ;;  %v3094_v54 = vpop.f32.mrb[55].mxu1  ;;  %v3103_v11 = vadd.f32 %v7313_v60, %v9351_v18  ;;  %v5484_v46 = vadd.f32 %v10634_v3, %v3100_v28 }
 0x22f   :  { %v9674_v38 = vmax.f32 %v5765_v57, %v5481_v52  ;;  %v2028_v51 = vadd.f32 %v9436_v44, %v2027_v13  ;;  %v7153_v59 = vpop.f32.mrb[170].mxu0  ;;  %7418 = vmatprep.mubr.bf16.mxu1 %v2716_v12  ;;  %v3095_v37 = vadd.f32 %v9351_v18, %v3094_v54  ;;  %v5482_v22 = vadd.f32 %v10632_v4, %v3092_v20  ;;  %v9693_v57 = vld [vmem:[%s10511_s5] ss:$0 sm:$0xff] }
 0x230   :  { %v2039_v41 = vadd.f32 %v9436_v44, %v7153_v59  ;;  %v2030_v62 = vpop.f32.mrb[171].mxu0  ;;  %v2548_v55 = vmax.f32 %v2036_v49, 0.0  ;;  %v5485_v61 = vadd.f32 %v10635_v9, %v3103_v11 }
 0x231   :  { %v2031_v50 = vadd.f32 %v9436_v44, %v2030_v62  ;;  %7419 = vmatmul.mubr.bf16.gmra.mrb[160].mxu1 %v2717_v29  ;;  %v5483_v27 = vadd.f32 %v10633_v15, %v3095_v37  ;;  %v2546_v36 = vmax.f32 %v2028_v51, 0.0  ;;  %v10637_v51 = vld [vmem:[#allocation27_spill] sm:$0xff]  ;;  %v10638_v15 = vld [vmem:[#allocation30_spill] sm:$0xff] }
 0x232   :  { %v2549_v40 = vmax.f32 %v2039_v41, 0.0 }
 0x233   :  { %v7316_v21 = vpop.f32.mrb[56].mxu1  ;;  %v2547_v24 = vmax.f32 %v2031_v50, 0.0  ;;  %v5773_v48 = vmax.f32 %v5482_v22, %v5483_v27 }
 0x234   :  { %v3107_v32 = vpop.f32.mrb[57].mxu1  ;;  %v2719_v1 = vpack.c.bf16 %v2549_v40, %v2548_v55  ;;  %v3116_v20 = vadd.f32 %v9693_v57, %v7316_v21 }
 0x235   :  { %v3108_v7 = vadd.f32 %v9351_v18, %v3107_v32  ;;  %v7156_v6 = vpop.f32.mrb[172].mxu0  ;;  %v7317_v5 = vpop.f32.mrb[58].mxu1  ;;  %v2718_v47 = vpack.c.bf16 %v2547_v24, %v2546_v36  ;;  %v5774_v14 = vmax.f32 %v5773_v48, %v5484_v46  ;;  %v10639_v46 = vld [vmem:[#allocation29_spill] sm:$0xff] }
 0x236   :  { %v2052_v8 = vadd.f32 %v9436_v44, %v7156_v6  ;;  %v2043_v60 = vpop.f32.mrb[173].mxu0  ;;  %v3110_v31 = vpop.f32.mrb[59].mxu1  ;;  %v3119_v62 = vadd.f32 %v9693_v57, %v7317_v5  ;;  %v5488_v27 = vadd.f32 %v10638_v15, %v3116_v20 }
 0x237   :  { %v5486_v29 = vadd.f32 %v10636_v58, %v3108_v7  ;;  %v2044_v52 = vadd.f32 %v9436_v44, %v2043_v60  ;;  %v3111_v18 = vadd.f32 %v9693_v57, %v3110_v31  ;;  %v7157_v12 = vpop.f32.mrb[174].mxu0  ;;  %7422 = vmatprep.mubr.bf16.mxu1 %v2718_v47  ;;  %v5775_v49 = vmax.f32 %v5774_v14, %v5485_v61  ;;  %v10640_v60 = vld [vmem:[#allocation32_spill] sm:$0xff] }
 0x238   :  { %v2055_v13 = vadd.f32 %v9436_v44, %v7157_v12  ;;  %v2046_v54 = vpop.f32.mrb[175].mxu0  ;;  %v2552_v41 = vmax.f32 %v2052_v8, 0.0  ;;  %v5489_v48 = vadd.f32 %v10639_v46, %v3119_v62 }
 0x239   :  { %v5487_v59 = vadd.f32 %v10637_v51, %v3111_v18  ;;  %v2047_v28 = vadd.f32 %v9436_v44, %v2046_v54  ;;  %7423 = vmatmul.mubr.bf16.gmra.mrb[164].mxu1 %v2719_v1  ;;  %v5776_v37 = vmax.f32 %v5775_v49, %v5486_v29  ;;  %v2550_v50 = vmax.f32 %v2044_v52, 0.0  ;;  %v10641_v18 = vld [vmem:[#allocation31_spill] sm:$0xff]  ;;  %v10642_v51 = vld [vmem:[#allocation34_spill] sm:$0xff] }
 0x23a   :  { %v2553_v4 = vmax.f32 %v2055_v13, 0.0 }
 0x23b   :  { %v7320_v22 = vpop.f32.mrb[60].mxu1  ;;  %v2551_v55 = vmax.f32 %v2047_v28, 0.0  ;;  %v5777_v40 = vmax.f32 %v5776_v37, %v5487_v59 }
 0x23c   :  { %v3123_v11 = vpop.f32.mrb[61].mxu1  ;;  %v2721_v21 = vpack.c.bf16 %v2553_v4, %v2552_v41  ;;  %v3132_v47 = vadd.f32 %v9693_v57, %v7320_v22 }
 0x23d   :  { %v7160_v36 = vpop.f32.mrb[176].mxu0  ;;  %v7321_v24 = vpop.f32.mrb[62].mxu1  ;;  %v2720_v32 = vpack.c.bf16 %v2551_v55, %v2550_v50  ;;  %v3124_v3 = vadd.f32 %v9693_v57, %v3123_v11  ;;  %v5778_v1 = vmax.f32 %v5777_v40, %v5488_v27  ;;  %v10643_v11 = vld [vmem:[#allocation33_spill] sm:$0xff] }
 0x23e   :  { %v2068_v7 = vadd.f32 %v9436_v44, %v7160_v36  ;;  %v2059_v6 = vpop.f32.mrb[177].mxu0  ;;  %v3126_v5 = vpop.f32.mrb[63].mxu1  ;;  %v3135_v52 = vadd.f32 %v9693_v57, %v7321_v24  ;;  %v5492_v59 = vadd.f32 %v10642_v51, %v3132_v47  ;;  %v10644_v36 = vld [vmem:[#allocation36_spill] sm:$0xff] }
 0x23f   :  { %v2060_v9 = vadd.f32 %v9436_v44, %v2059_v6  ;;  %v3127_v61 = vadd.f32 %v9693_v57, %v3126_v5  ;;  %v7161_v14 = vpop.f32.mrb[178].mxu0  ;;  %7426 = vmatprep.mubr.bf16.mxu1 %v2720_v32  ;;  %v9708_v58 = vmax.f32 %v5778_v1, %v5489_v48  ;;  %v5490_v31 = vadd.f32 %v10640_v60, %v3124_v3 }
 0x240   :  { %v2071_v29 = vadd.f32 %v9436_v44, %v7161_v14  ;;  %v2062_v8 = vpop.f32.mrb[179].mxu0  ;;  %v2556_v49 = vmax.f32 %v2068_v7, 0.0  ;;  %v5493_v15 = vadd.f32 %v10643_v11, %v3135_v52  ;;  %v10645_v14 = vld [vmem:[#allocation35_spill] sm:$0xff] }
 0x241   :  { %v5491_v12 = vadd.f32 %v10641_v18, %v3127_v61  ;;  %v2063_v20 = vadd.f32 %v9436_v44, %v2062_v8  ;;  %7427 = vmatmul.mubr.bf16.gmra.mrb[168].mxu1 %v2721_v21  ;;  %v2554_v28 = vmax.f32 %v2060_v9, 0.0  ;;  %v10646_v18 = vld [vmem:[#allocation38_spill] sm:$0xff] }
 0x242   :  { %v2557_v13 = vmax.f32 %v2071_v29, 0.0 }
 0x243   :  { %v7324_v54 = vpop.f32.mrb[64].mxu1  ;;  %v5786_v37 = vmax.f32 %v5490_v31, %v5491_v12  ;;  %v2555_v41 = vmax.f32 %v2063_v20, 0.0 }
 0x244   :  { %v3139_v62 = vpop.f32.mrb[65].mxu1  ;;  %v2723_v4 = vpack.c.bf16 %v2557_v13, %v2556_v49  ;;  %v3148_v46 = vadd.f32 %v9693_v57, %v7324_v54 }
 0x245   :  { %v3140_v22 = vadd.f32 %v9693_v57, %v3139_v62  ;;  %v7164_v50 = vpop.f32.mrb[180].mxu0  ;;  %v7325_v55 = vpop.f32.mrb[66].mxu1  ;;  %v5787_v27 = vmax.f32 %v5786_v37, %v5492_v59  ;;  %v2722_v40 = vpack.c.bf16 %v2555_v41, %v2554_v28  ;;  %v10647_v37 = vld [vmem:[#allocation37_spill] sm:$0xff] }
 0x246   :  { %v2084_v24 = vadd.f32 %v9436_v44, %v7164_v50  ;;  %v2075_v32 = vpop.f32.mrb[181].mxu0  ;;  %v3142_v3 = vpop.f32.mrb[67].mxu1  ;;  %v3151_v61 = vadd.f32 %v9693_v57, %v7325_v55  ;;  %v5496_v12 = vadd.f32 %v10646_v18, %v3148_v46 }
 0x247   :  { %v5494_v21 = vadd.f32 %v10644_v36, %v3140_v22  ;;  %v5788_v48 = vmax.f32 %v5787_v27, %v5493_v15  ;;  %v2076_v1 = vadd.f32 %v9436_v44, %v2075_v32  ;;  %v3143_v7 = vadd.f32 %v9693_v57, %v3142_v3  ;;  %v7165_v6 = vpop.f32.mrb[182].mxu0  ;;  %7430 = vmatprep.mubr.bf16.mxu1 %v2722_v40 }
 0x248   :  { %v2087_v5 = vadd.f32 %v9436_v44, %v7165_v6  ;;  %v2078_v47 = vpop.f32.mrb[183].mxu0  ;;  %v2560_v60 = vmax.f32 %v2084_v24, 0.0  ;;  %v5497_v41 = vadd.f32 %v10647_v37, %v3151_v61  ;;  %v9737_v24 = vld [vmem:[%s10509_s3] ss:$0 sm:$0xff] }
 0x249   :  { %v5789_v9 = vmax.f32 %v5788_v48, %v5494_v21  ;;  %v5495_v29 = vadd.f32 %v10645_v14, %v3143_v7  ;;  %v2079_v8 = vadd.f32 %v9436_v44, %v2078_v47  ;;  %7431 = vmatmul.mubr.bf16.gmra.mrb[172].mxu1 %v2723_v4  ;;  %v2558_v20 = vmax.f32 %v2076_v1, 0.0  ;;  %v10648_v48 = vld [vmem:[#allocation40_spill] sm:$0xff] }
 0x24a   :  { %v2561_v31 = vmax.f32 %v2087_v5, 0.0  ;;  %v10649_v5 = vld [vmem:[#allocation39_spill] sm:$0xff] }
 0x24b   :  { %v7328_v52 = vpop.f32.mrb[68].mxu1  ;;  %v5790_v49 = vmax.f32 %v5789_v9, %v5495_v29  ;;  %v2559_v13 = vmax.f32 %v2079_v8, 0.0 }
 0x24c   :  { %v3155_v54 = vpop.f32.mrb[69].mxu1  ;;  %v2725_v51 = vpack.c.bf16 %v2561_v31, %v2560_v60  ;;  %v3164_v36 = vadd.f32 %v9693_v57, %v7328_v52  ;;  %v10650_v31 = vld [vmem:[#allocation42_spill] sm:$0xff] }
 0x24d   :  { %v7168_v59 = vpop.f32.mrb[184].mxu0  ;;  %v7329_v28 = vpop.f32.mrb[70].mxu1  ;;  %v5791_v62 = vmax.f32 %v5790_v49, %v5496_v12  ;;  %v2724_v22 = vpack.c.bf16 %v2559_v13, %v2558_v20  ;;  %v3156_v50 = vadd.f32 %v9693_v57, %v3155_v54 }
 0x24e   :  { %v2100_v4 = vadd.f32 %v9436_v44, %v7168_v59  ;;  %v2091_v55 = vpop.f32.mrb[185].mxu0  ;;  %v3158_v11 = vpop.f32.mrb[71].mxu1  ;;  %v3167_v6 = vadd.f32 %v9693_v57, %v7329_v28  ;;  %v5500_v52 = vadd.f32 %v10650_v31, %v3164_v36  ;;  %v10651_v59 = vld [vmem:[#allocation41_spill] sm:$0xff] }
 0x24f   :  { %v5792_v15 = vmax.f32 %v5791_v62, %v5497_v41  ;;  %v2092_v27 = vadd.f32 %v9436_v44, %v2091_v55  ;;  %v7169_v40 = vpop.f32.mrb[186].mxu0  ;;  %7434 = vmatprep.mubr.bf16.mxu1 %v2724_v22  ;;  %v3159_v21 = vadd.f32 %v9693_v57, %v3158_v11  ;;  %v5498_v1 = vadd.f32 %v10648_v48, %v3156_v50  ;;  %v10652_v41 = vld [vmem:[#allocation44_spill] sm:$0xff] }
 0x250   :  { %v2103_v32 = vadd.f32 %v9737_v24, %v7169_v40  ;;  %v2094_v3 = vpop.f32.mrb[187].mxu0  ;;  %v2564_v44 = vmax.f32 %v2100_v4, 0.0  ;;  %v5501_v28 = vadd.f32 %v10651_v59, %v3167_v6 }
 0x251   :  { %v5793_v46 = vrot.slane %v5792_v15, 4  ;;  %v2095_v7 = vadd.f32 %v9737_v24, %v2094_v3  ;;  %7435 = vmatmul.mubr.bf16.gmra.mrb[176].mxu1 %v2725_v51  ;;  %v5499_v47 = vadd.f32 %v10649_v5, %v3159_v21  ;;  %v2562_v29 = vmax.f32 %v2092_v27, 0.0  ;;  %v10653_v3 = vld [vmem:[#allocation43_spill] sm:$0xff] }
 0x252   :  { %v2565_v9 = vmax.f32 %v2103_v32, 0.0 }
 0x253   :  { %v7332_v61 = vpop.f32.mrb[72].mxu1  ;;  %v5794_v14 = vmax.f32 %v5792_v15, %v5793_v46  ;;  %v2563_v8 = vmax.f32 %v2095_v7, 0.0  ;;  %v5799_v18 = vmax.f32 %v5498_v1, %v5499_v47 }
 0x254   :  { %v3171_v60 = vpop.f32.mrb[73].mxu1  ;;  %v2727_v12 = vpack.c.bf16 %v2565_v9, %v2564_v44  ;;  %v3180_v40 = vadd.f32 %v9693_v57, %v7332_v61  ;;  %v10654_v61 = vld [vmem:[#allocation46_spill] sm:$0xff] }
 0x255   :  { %v3172_v20 = vadd.f32 %v9693_v57, %v3171_v60  ;;  %v7172_v49 = vpop.f32.mrb[188].mxu0  ;;  %v7333_v13 = vpop.f32.mrb[74].mxu1  ;;  %v5795_v54 = vrot.slane %v5794_v14, 2  ;;  %v2726_v51 = vpack.c.bf16 %v2563_v8, %v2562_v29  ;;  %v5800_v37 = vmax.f32 %v5799_v18, %v5500_v52 }
 0x256   :  { %v2116_v22 = vadd.f32 %v9737_v24, %v7172_v49  ;;  %v2107_v50 = vpop.f32.mrb[189].mxu0  ;;  %v3174_v4 = vpop.f32.mrb[75].mxu1  ;;  %v3183_v44 = vadd.f32 %v9693_v57, %v7333_v13  ;;  %v5504_v8 = vadd.f32 %v10654_v61, %v3180_v40  ;;  %v10656_v40 = vld [vmem:[#allocation48_spill] sm:$0xff] }
 0x257   :  { %v5502_v62 = vadd.f32 %v10652_v41, %v3172_v20  ;;  %v2108_v55 = vadd.f32 %v9737_v24, %v2107_v50  ;;  %v3175_v11 = vadd.f32 %v9693_v57, %v3174_v4  ;;  %v7173_v15 = vpop.f32.mrb[190].mxu0  ;;  %7438 = vmatprep.mubr.bf16.mxu1 %v2726_v51  ;;  %v5796_v27 = vmax.f32 %v5794_v14, %v5795_v54 }
 0x258   :  { %v5801_v36 = vmax.f32 %v5800_v37, %v5501_v28  ;;  %v2119_v21 = vadd.f32 %v9737_v24, %v7173_v15  ;;  %v2110_v32 = vpop.f32.mrb[191].mxu0  ;;  %v2568_v7 = vmax.f32 %v2116_v22, 0.0  ;;  %v9760_v37 = vpop.permute.xlu0 %4938 }
 0x259   :  { %v5503_v46 = vadd.f32 %v10653_v3, %v3175_v11  ;;  %v2111_v48 = vadd.f32 %v9737_v24, %v2110_v32  ;;  %7439 = vmatmul.mubr.bf16.gmra.mrb[180].mxu1 %v2727_v12  ;;  %v2566_v47 = vmax.f32 %v2108_v55, 0.0  ;;  %v5797_v29 = vrot.slane %v5796_v27, 1  ;;  %v10655_v12 = vld [vmem:[#allocation45_spill] sm:$0xff]  ;;  %v10657_v32 = vld [vmem:[#allocation47_spill] sm:$0xff] }
 0x25a   :  { %v5802_v1 = vmax.f32 %v5801_v36, %v5502_v62  ;;  %v2569_v6 = vmax.f32 %v2119_v21, 0.0  ;;  %v5505_v54 = vadd.f32 %v10655_v12, %v3183_v44 }
 0x25b   :  { %v7336_v5 = vpop.f32.mrb[76].mxu1  ;;  %v2567_v9 = vmax.f32 %v2111_v48, 0.0  ;;  %v5798_v4 = vmax.f32 %v5796_v27, %v5797_v29 }
 0x25c   :  { %v3187_v14 = vpop.f32.mrb[77].mxu1  ;;  %v5803_v60 = vmax.f32 %v5802_v1, %v5503_v46  ;;  %v2729_v31 = vpack.c.bf16 %v2569_v6, %v2568_v7  ;;  %v3196_v41 = vadd.f32 %v9693_v57, %v7336_v5  ;;  %v10658_v6 = vld [vmem:[#allocation50_spill] sm:$0xff] }
 0x25d   :  { %v7176_v52 = vpop.f32.mrb[192].mxu0  ;;  %v7337_v18 = vpop.f32.mrb[78].mxu1  ;;  %v2728_v20 = vpack.c.bf16 %v2567_v9, %v2566_v47  ;;  %v3188_v49 = vadd.f32 %v9693_v57, %v3187_v14  ;;  %vm6106_vm3 = vcmp.gt.f32.partialorder %v5798_v4, -1.5e+38 }
 0x25e   :  { %v5804_v51 = vmax.f32 %v5803_v60, %v5504_v8  ;;  %v2132_v13 = vadd.f32 %v9737_v24, %v7176_v52  ;;  %v2123_v59 = vpop.f32.mrb[193].mxu0  ;;  %v3190_v28 = vpop.f32.mrb[79].mxu1  ;;  %v3199_v21 = vadd.f32 %v9693_v57, %v7337_v18  ;;  %v5508_v5 = vadd.f32 %v10658_v6, %v3196_v41 }
 0x25f   :  { %v2124_v62 = vadd.f32 %v9737_v24, %v2123_v59  ;;  %v3191_v22 = vadd.f32 %v9693_v57, %v3190_v28  ;;  %v7177_v50 = vpop.f32.mrb[194].mxu0  ;;  %7442 = vmatprep.mubr.bf16.mxu1 %v2728_v20  ;;  %v5506_v36 = vadd.f32 %v10656_v40, %v3188_v49  ;;  %v9772_v18 = vpop.permute.xlu0 %4948 }
 0x260   :  { %v5805_v55 = vmax.f32 %v5804_v51, %v5505_v54  ;;  %v2135_v11 = vadd.f32 %v9737_v24, %v7177_v50  ;;  %v2126_v15 = vpop.f32.mrb[195].mxu0  ;;  %v2572_v1 = vmax.f32 %v2132_v13, 0.0  ;;  %v10660_v51 = vld [vmem:[#allocation52_spill] sm:$0xff] }
 0x261   :  { %v5507_v3 = vadd.f32 %v10657_v32, %v3191_v22  ;;  %v2127_v46 = vadd.f32 %v9737_v24, %v2126_v15  ;;  %7443 = vmatmul.mubr.bf16.gmra.mrb[184].mxu1 %v2729_v31  ;;  %v2570_v27 = vmax.f32 %v2124_v62, 0.0  ;;  %v10659_v31 = vld [vmem:[#allocation49_spill] sm:$0xff]  ;;  %v6138_v15 = vsel %vm6106_vm3, %v5798_v4, 0.0 }
 0x262   :  { %v5806_v48 = vrot.slane %v5805_v55, 4  ;;  %v2573_v7 = vmax.f32 %v2135_v11, 0.0  ;;  %v5509_v20 = vadd.f32 %v10659_v31, %v3199_v21 }
 0x263   :  { %v7340_v44 = vpop.f32.mrb[80].mxu1  ;;  %v5812_v47 = vmax.f32 %v5506_v36, %v5507_v3  ;;  %v2571_v9 = vmax.f32 %v2127_v46, 0.0  ;;  %v10661_v46 = vld [vmem:[#allocation51_spill] sm:$0xff] }
 0x264   :  { %v3203_v14 = vpop.f32.mrb[81].mxu1  ;;  %v5807_v29 = vmax.f32 %v5805_v55, %v5806_v48  ;;  %v2731_v61 = vpack.c.bf16 %v2573_v7, %v2572_v1  ;;  %v3212_v62 = vadd.f32 %v9693_v57, %v7340_v44 }
 0x265   :  { %v3204_v8 = vadd.f32 %v9693_v57, %v3203_v14  ;;  %v7180_v60 = vpop.f32.mrb[196].mxu0  ;;  %v7341_v52 = vpop.f32.mrb[82].mxu1  ;;  %v5813_v49 = vmax.f32 %v5812_v47, %v5508_v5  ;;  %v2730_v12 = vpack.c.bf16 %v2571_v9, %v2570_v27  ;;  %v10662_v47 = vld [vmem:[#allocation54_spill] sm:$0xff] }
 0x266   :  { %v5808_v54 = vrot.slane %v5807_v29, 2  ;;  %v2148_v59 = vadd.f32 %v9737_v24, %v7180_v60  ;;  %v2139_v28 = vpop.f32.mrb[197].mxu0  ;;  %v3206_v41 = vpop.f32.mrb[83].mxu1  ;;  %v3215_v3 = vadd.f32 %v9693_v57, %v7341_v52  ;;  %v5512_v4 = vadd.f32 %v10662_v47, %v3212_v62  ;;  %v10666_v47 = vld [vmem:[#allocation55_spill] sm:$0xff] }
 0x267   :  { %v5510_v13 = vadd.f32 %v10660_v51, %v3204_v8  ;;  %v5814_v22 = vmax.f32 %v5813_v49, %v5509_v20  ;;  %v2140_v50 = vadd.f32 %v9737_v24, %v2139_v28  ;;  %v3207_v55 = vadd.f32 %v9693_v57, %v3206_v41  ;;  %v7181_v11 = vpop.f32.mrb[198].mxu0  ;;  %7446 = vmatprep.mubr.bf16.mxu1 %v2730_v12  ;;  %v9784_v27 = vpop.permute.xlu0 %4958  ;;  %v10663_v12 = vld [vmem:[#allocation53_spill] sm:$0xff] }
 0x268   :  { %v5809_v40 = vmax.f32 %v5807_v29, %v5808_v54  ;;  %v2151_v36 = vadd.f32 %v9737_v24, %v7181_v11  ;;  %v2142_v21 = vpop.f32.mrb[199].mxu0  ;;  %v2576_v44 = vmax.f32 %v2148_v59, 0.0  ;;  %v6691_v60 = vpack.c.bf16 %v6138_v15, %v6138_v15 }
 0x269   :  { %v5815_v32 = vmax.f32 %v5814_v22, %v5510_v13  ;;  %v5511_v48 = vadd.f32 %v10661_v46, %v3207_v55  ;;  %v2143_v1 = vadd.f32 %v9737_v24, %v2142_v21  ;;  %7447 = vmatmul.mubr.bf16.gmra.mrb[188].mxu1 %v2731_v61  ;;  %v2574_v9 = vmax.f32 %v2140_v50, 0.0 }
 0x26a   :  { %v5810_v7 = vrot.slane %v5809_v40, 1  ;;  %v2577_v6 = vmax.f32 %v2151_v36, 0.0  ;;  %v5513_v54 = vadd.f32 %v10663_v12, %v3215_v3  ;;  %v6298_v15 = vunpack.c.l.b16 %v6691_v60 }
 0x26b   :  { %v7344_v5 = vpop.f32.mrb[84].mxu1  ;;  %v5816_v14 = vmax.f32 %v5815_v32, %v5511_v48  ;;  %v2575_v29 = vmax.f32 %v2143_v1, 0.0  ;;  %v9794_v3 = vpop.permute.xlu0 %4968  ;;  %v10665_v48 = vld [vmem:[#allocation56_spill] sm:$0xff] }
 0x26c   :  { %v3219_v8 = vpop.f32.mrb[85].mxu1  ;;  %v5811_v31 = vmax.f32 %v5809_v40, %v5810_v7  ;;  %v2733_v52 = vpack.c.bf16 %v2577_v6, %v2576_v44  ;;  %v3228_v50 = vadd.f32 %v9693_v57, %v7344_v5  ;;  %10664 = vst [vmem:[#allocation14_spill] sm:$0xff] %v9794_v3 }
 0x26d   :  { %v7184_v20 = vpop.f32.mrb[200].mxu0  ;;  %v7345_v49 = vpop.f32.mrb[86].mxu1  ;;  %v5817_v61 = vmax.f32 %v5816_v14, %v5512_v4  ;;  %v2732_v51 = vpack.c.bf16 %v2575_v29, %v2574_v9  ;;  %v3220_v13 = vadd.f32 %v9693_v57, %v3219_v8  ;;  %v10667_v8 = vld [vmem:[#allocation58_spill] sm:$0xff] }
 0x26e   :  { %vm6107_vm4 = vcmp.gt.f32.partialorder %v5811_v31, -1.5e+38  ;;  %v2164_v59 = vadd.f32 %v9737_v24, %v7184_v20  ;;  %v2155_v28 = vpop.f32.mrb[201].mxu0  ;;  %v3222_v41 = vpop.f32.mrb[87].mxu1  ;;  %v3231_v7 = vadd.f32 %v9693_v57, %v7345_v49  ;;  %v5516_v60 = vadd.f32 %v10667_v8, %v3228_v50 }
 0x26f   :  { %v6139_v62 = vsel %vm6107_vm4, %v5811_v31, 0.0  ;;  %v5818_v22 = vmax.f32 %v5817_v61, %v5513_v54  ;;  %v2156_v55 = vadd.f32 %v9737_v24, %v2155_v28  ;;  %v7185_v11 = vpop.f32.mrb[202].mxu0  ;;  %7450 = vmatprep.mubr.bf16.mxu1 %v2732_v51  ;;  %v3223_v36 = vadd.f32 %v9693_v57, %v3222_v41  ;;  %v10668_v41 = vld [vmem:[#allocation57_spill] sm:$0xff] }
 0x270   :  { %v6692_v40 = vpack.c.bf16 %v6139_v62, %v6139_v62  ;;  %v2167_v21 = vadd.f32 %v9737_v24, %v7185_v11  ;;  %v2158_v32 = vpop.f32.mrb[203].mxu0  ;;  %v5514_v1 = vadd.f32 %v10665_v48, %v3220_v13  ;;  %v2580_v5 = vmax.f32 %v2164_v59, 0.0 }
 0x271   :  { %v5819_v46 = vrot.slane %v5818_v22, 4  ;;  %v2159_v44 = vadd.f32 %v9737_v24, %v2158_v32  ;;  %7451 = vmatmul.mubr.bf16.gmra.mrb[192].mxu1 %v2733_v52  ;;  %v5515_v4 = vadd.f32 %v10666_v47, %v3223_v36  ;;  %v2578_v31 = vmax.f32 %v2156_v55, 0.0 }
 0x272   :  { %v6299_v6 = vunpack.c.l.b16 %v6692_v40  ;;  %v2581_v9 = vmax.f32 %v2167_v21, 0.0  ;;  %v5517_v62 = vadd.f32 %v10668_v41, %v3231_v7  ;;  %v9808_v21 = vpop.permute.xlu0 %4978 }
 0x273   :  { %v7348_v14 = vpop.f32.mrb[88].mxu1  ;;  %v5820_v29 = vmax.f32 %v5818_v22, %v5819_v46  ;;  %v2579_v20 = vmax.f32 %v2159_v44, 0.0  ;;  %v5825_v61 = vmax.f32 %v5514_v1, %v5515_v4  ;;  %v10669_v22 = vld [vmem:[#allocation60_spill] sm:$0xff]  ;;  %10670 = vst [vmem:[#allocation13_spill] sm:$0xff] %v9808_v21  ;;  %v10671_v4 = vld [vmem:[#allocation59_spill] sm:$0xff] }
 0x274   :  { %v3235_v12 = vpop.f32.mrb[89].mxu1  ;;  %v9802_v54 = vsel %vm6322_vm5, %v6299_v6, %v6298_v15  ;;  %v2735_v49 = vpack.c.bf16 %v2581_v9, %v2580_v5  ;;  %v3244_v1 = vadd.f32 %v9693_v57, %v7348_v14 }
 0x275   :  { %v3236_v51 = vadd.f32 %v9693_v57, %v3235_v12  ;;  %v7188_v52 = vpop.f32.mrb[204].mxu0  ;;  %v7349_v13 = vpop.f32.mrb[90].mxu1  ;;  %v5821_v59 = vrot.slane %v5820_v29, 2  ;;  %v2734_v28 = vpack.c.bf16 %v2579_v20, %v2578_v31  ;;  %v5826_v11 = vmax.f32 %v5825_v61, %v5516_v60 }
 0x276   :  { %v2180_v50 = vadd.f32 %v9737_v24, %v7188_v52  ;;  %v2171_v55 = vpop.f32.mrb[205].mxu0  ;;  %v3238_v36 = vpop.f32.mrb[91].mxu1  ;;  %v3247_v47 = vadd.f32 %v9693_v57, %v7349_v13 }
 0x277   :  { %v5518_v40 = vadd.f32 %v10669_v22, %v3236_v51  ;;  %v5822_v15 = vmax.f32 %v5820_v29, %v5821_v59  ;;  %v2172_v32 = vadd.f32 %v9737_v24, %v2171_v55  ;;  %v3239_v46 = vadd.f32 %v9693_v57, %v3238_v36  ;;  %v7189_v48 = vpop.f32.mrb[206].mxu0  ;;  %7454 = vmatprep.mubr.bf16.mxu1 %v2734_v28  ;;  %v9817_v12 = vpop.permute.xlu1 %4943  ;;  %v10672_v59 = vld [vmem:[#allocation62_spill] sm:$0xff] }
 0x278   :  { %v5827_v44 = vmax.f32 %v5826_v11, %v5517_v62  ;;  %v2183_v7 = vadd.f32 %v9737_v24, %v7189_v48  ;;  %v2174_v6 = vpop.f32.mrb[207].mxu0  ;;  %v2584_v60 = vmax.f32 %v2180_v50, 0.0  ;;  %v5520_v28 = vadd.f32 %v10672_v59, %v3244_v1  ;;  %v9821_v55 = vpop.permute.xlu0 %4988  ;;  %v10677_v59 = vld [vmem:[#allocation66_spill] sm:$0xff] }
 0x279   :  { %v5823_v5 = vrot.slane %v5822_v15, 1  ;;  %v5519_v9 = vadd.f32 %v10671_v4, %v3239_v46  ;;  %v2175_v8 = vadd.f32 %v9737_v24, %v2174_v6  ;;  %7455 = vmatmul.mubr.bf16.gmra.mrb[196].mxu1 %v2735_v49  ;;  %v2582_v14 = vmax.f32 %v2172_v32, 0.0  ;;  %10673 = vst [vmem:[#allocation16_spill] sm:$0xff] %v9821_v55  ;;  %v10674_v49 = vld [vmem:[#allocation61_spill] sm:$0xff] }
 0x27a   :  { %v5828_v29 = vmax.f32 %v5827_v44, %v5518_v40  ;;  %v2585_v31 = vmax.f32 %v2183_v7, 0.0  ;;  %v5521_v40 = vadd.f32 %v10674_v49, %v3247_v47 }
 0x27b   :  { %v7352_v20 = vpop.f32.mrb[92].mxu1  ;;  %v5824_v61 = vmax.f32 %v5822_v15, %v5823_v5  ;;  %v2583_v51 = vmax.f32 %v2175_v8, 0.0 }
 0x27c   :  { %v3251_v52 = vpop.f32.mrb[93].mxu1  ;;  %v5829_v41 = vmax.f32 %v5828_v29, %v5519_v9  ;;  %v2737_v62 = vpack.c.bf16 %v2585_v31, %v2584_v60  ;;  %v3260_v15 = vadd.f32 %v9693_v57, %v7352_v20  ;;  %v10675_v9 = vld [vmem:[#allocation64_spill] sm:$0xff]  ;;  %v10676_v20 = vld [vmem:[#allocation63_spill] sm:$0xff] }
 0x27d   :  { %v3252_v13 = vadd.f32 %v9693_v57, %v3251_v52  ;;  %v7192_v11 = vpop.f32.mrb[208].mxu0  ;;  %v7353_v22 = vpop.f32.mrb[94].mxu1  ;;  %vm6108_vm6 = vcmp.gt.f32.partialorder %v5824_v61, -1.5e+38  ;;  %v2736_v50 = vpack.c.bf16 %v2583_v51, %v2582_v14 }
 0x27e   :  { %v6140_v36 = vsel %vm6108_vm6, %v5824_v61, 0.0  ;;  %v5830_v46 = vmax.f32 %v5829_v41, %v5520_v28  ;;  %v2196_v32 = vadd.f32 %v9737_v24, %v7192_v11  ;;  %v2187_v48 = vpop.f32.mrb[209].mxu0  ;;  %v3254_v1 = vpop.f32.mrb[95].mxu1  ;;  %v3263_v31 = vadd.f32 %v9693_v57, %v7353_v22 }
 0x27f   :  { %v6693_v44 = vpack.c.bf16 %v6140_v36, %v6140_v36  ;;  %v2188_v7 = vadd.f32 %v9737_v24, %v2187_v48  ;;  %v3255_v6 = vadd.f32 %v9693_v57, %v3254_v1  ;;  %v7193_v5 = vpop.f32.mrb[210].mxu0  ;;  %7458 = vmatprep.mubr.bf16.mxu1 %v2736_v50  ;;  %v5522_v47 = vadd.f32 %v10675_v9, %v3252_v13  ;;  %v9833_v51 = vpop.permute.xlu1 %4953 }
 0x280   :  { %v5831_v4 = vmax.f32 %v5830_v46, %v5521_v40  ;;  %v2199_v8 = vadd.f32 %v9737_v24, %v7193_v5  ;;  %v2190_v29 = vpop.f32.mrb[211].mxu0  ;;  %v5524_v28 = vadd.f32 %v10677_v59, %v3260_v15  ;;  %v2588_v41 = vmax.f32 %v2196_v32, 0.0  ;;  %v9836_v13 = vpop.permute.xlu0 %4998  ;;  %v10679_v15 = vld [vmem:[#allocation65_spill] sm:$0xff] }
 0x281   :  { %v6300_v60 = vunpack.c.l.b16 %v6693_v44  ;;  %v5523_v61 = vadd.f32 %v10676_v20, %v3255_v6  ;;  %v2191_v14 = vadd.f32 %v9737_v24, %v2190_v29  ;;  %7459 = vmatmul.mubr.bf16.gmra.mrb[200].mxu1 %v2737_v62  ;;  %10678 = vst [vmem:[#allocation15_spill] sm:$0xff] %v9836_v13  ;;  %v2586_v22 = vmax.f32 %v2188_v7, 0.0 }
 0x282   :  { %v5832_v52 = vrot.slane %v5831_v4, 4  ;;  %v2589_v11 = vmax.f32 %v2199_v8, 0.0  ;;  %v5525_v32 = vadd.f32 %v10679_v15, %v3263_v31 }
 0x283   :  { %v7356_v49 = vpop.f32.mrb[96].mxu1  ;;  %v9840_v40 = vsel %vm6324_vm7, %v6300_v60, %v9802_v54  ;;  %v5838_v50 = vmax.f32 %v5522_v47, %v5523_v61  ;;  %v2587_v36 = vmax.f32 %v2191_v14, 0.0  ;;  %v10680_v60 = vld [vmem:[#allocation68_spill] sm:$0xff] }
 0x284   :  { %v3267_v46 = vpop.f32.mrb[97].mxu1  ;;  %v5833_v48 = vmax.f32 %v5831_v4, %v5832_v52  ;;  %v2739_v62 = vpack.c.bf16 %v2589_v11, %v2588_v41  ;;  %v3276_v4 = vadd.f32 %v9693_v57, %v7356_v49 }
 0x285   :  { %v3268_v1 = vadd.f32 %v9693_v57, %v3267_v46  ;;  %v7196_v44 = vpop.f32.mrb[212].mxu0  ;;  %v7357_v6 = vpop.f32.mrb[98].mxu1  ;;  %v5839_v5 = vmax.f32 %v5838_v50, %v5524_v28  ;;  %v2738_v9 = vpack.c.bf16 %v2587_v36, %v2586_v22  ;;  %v10681_v36 = vld [vmem:[#allocation67_spill] sm:$0xff] }
 0x286   :  { %v2212_v8 = vadd.f32 %v9737_v24, %v7196_v44  ;;  %v2203_v29 = vpop.f32.mrb[213].mxu0  ;;  %v3270_v20 = vpop.f32.mrb[99].mxu1  ;;  %v5834_v54 = vrot.slane %v5833_v48, 2  ;;  %v3279_v41 = vadd.f32 %v9693_v57, %v7357_v6 }
 0x287   :  { %v5526_v7 = vadd.f32 %v10680_v60, %v3268_v1  ;;  %v2204_v47 = vadd.f32 %v9737_v24, %v2203_v29  ;;  %v7197_v61 = vpop.f32.mrb[214].mxu0  ;;  %v5840_v14 = vmax.f32 %v5839_v5, %v5525_v32  ;;  %v3271_v52 = vadd.f32 %v9693_v57, %v3270_v20  ;;  %7462 = vmatprep.mubr.bf16.mxu1 %v2738_v9  ;;  %v9853_v44 = vpop.permute.xlu1 %4963  ;;  %v10683_v9 = vld [vmem:[#allocation70_spill] sm:$0xff] }
 0x288   :  { %v2215_v59 = vadd.f32 %v9737_v24, %v7197_v61  ;;  %v2206_v31 = vpop.f32.mrb[215].mxu0  ;;  %v5835_v28 = vmax.f32 %v5833_v48, %v5834_v54  ;;  %v2592_v50 = vmax.f32 %v2212_v8, 0.0  ;;  %v9855_v29 = vpop.permute.xlu0 %5008  ;;  %v5528_v48 = vadd.f32 %v10683_v9, %v3276_v4 }
 0x289   :  { %v2207_v11 = vadd.f32 %v9737_v24, %v2206_v31  ;;  %v5841_v22 = vmax.f32 %v5840_v14, %v5526_v7  ;;  %v5527_v46 = vadd.f32 %v10681_v36, %v3271_v52  ;;  %7463 = vmatmul.mubr.bf16.gmra.mrb[204].mxu1 %v2739_v62  ;;  %v2590_v15 = vmax.f32 %v2204_v47, 0.0  ;;  %10682 = vst [vmem:[#allocation18_spill] sm:$0xff] %v9855_v29  ;;  %v10684_v62 = vld [vmem:[#allocation69_spill] sm:$0xff] }
 0x28a   :  { %v2593_v1 = vmax.f32 %v2215_v59, 0.0  ;;  %v5836_v49 = vrot.slane %v5835_v28, 1  ;;  %v5529_v52 = vadd.f32 %v10684_v62, %v3279_v41 }
 0x28b   :  { %v2591_v32 = vmax.f32 %v2207_v11, 0.0  ;;  %v7360_v5 = vpop.f32.mrb[100].mxu1  ;;  %v5842_v20 = vmax.f32 %v5841_v22, %v5527_v46 }
 0x28c   :  { %v2741_v6 = vpack.c.bf16 %v2593_v1, %v2592_v50  ;;  %v3283_v54 = vpop.f32.mrb[101].mxu1  ;;  %v5837_v60 = vmax.f32 %v5835_v28, %v5836_v49  ;;  %v3292_v47 = vadd.f32 %v9693_v57, %v7360_v5  ;;  %v10686_v5 = vld [vmem:[#allocation71_spill] sm:$0xff] }
 0x28d   :  { %v2740_v7 = vpack.c.bf16 %v2591_v32, %v2590_v15  ;;  %v3284_v8 = vadd.f32 %v9693_v57, %v3283_v54  ;;  %v7200_v61 = vpop.f32.mrb[216].mxu0  ;;  %v7361_v14 = vpop.f32.mrb[102].mxu1  ;;  %v5843_v59 = vmax.f32 %v5842_v20, %v5528_v48  ;;  %v10685_v15 = vld [vmem:[#allocation72_spill] sm:$0xff]  ;;  %v10687_v54 = vld [vmem:[#allocation74_spill] sm:$0xff] }
 0x28e   :  { %v2219_v31 = vpop.f32.mrb[217].mxu0  ;;  %v3286_v11 = vpop.f32.mrb[103].mxu1  ;;  %vm6109_vm8 = vcmp.gt.f32.partialorder %v5837_v60, -1.5e+38  ;;  %v2228_v36 = vadd.f32 %v9737_v24, %v7200_v61  ;;  %v3295_v46 = vadd.f32 %v9693_v57, %v7361_v14  ;;  %v5532_v61 = vadd.f32 %v10687_v54, %v3292_v47 }
 0x28f   :  { %v3287_v4 = vadd.f32 %v9693_v57, %v3286_v11  ;;  %v7201_v22 = vpop.f32.mrb[218].mxu0  ;;  %7466 = vmatprep.mubr.bf16.mxu1 %v2740_v7  ;;  %v6141_v28 = vsel %vm6109_vm8, %v5837_v60, 0.0  ;;  %v5844_v50 = vmax.f32 %v5843_v59, %v5529_v52  ;;  %v2220_v1 = vadd.f32 %v9737_v24, %v2219_v31  ;;  %v9870_v60 = vpop.permute.xlu1 %4973 }
 0x290   :  { %v2222_v49 = vpop.f32.mrb[219].mxu0  ;;  %v6694_v41 = vpack.c.bf16 %v6141_v28, %v6141_v28  ;;  %v5530_v32 = vadd.f32 %v10685_v15, %v3284_v8  ;;  %v2231_v48 = vadd.f32 %v9737_v24, %v7201_v22  ;;  %10688 = vst [vmem:[#allocation17_spill] sm:$0xff] %v9870_v60  ;;  %v2596_v62 = vmax.f32 %v2228_v36, 0.0  ;;  %v9872_v11 = vpop.permute.xlu0 %5018 }
 0x291   :  { %v5531_v9 = vadd.f32 %v10686_v5, %v3287_v4  ;;  %v5845_v20 = vrot.slane %v5844_v50, 4  ;;  %v2223_v7 = vadd.f32 %v9737_v24, %v2222_v49  ;;  %7467 = vmatmul.mubr.bf16.gmra.mrb[208].mxu1 %v2741_v6  ;;  %10689 = vst [vmem:[#allocation20_spill] sm:$0xff] %v9872_v11  ;;  %v10690_v4 = vld [vmem:[#allocation73_spill] sm:$0xff]  ;;  %v2594_v22 = vmax.f32 %v2220_v1, 0.0 }
 0x292   :  { %v6301_v14 = vunpack.c.l.b16 %v6694_v41  ;;  %v2597_v59 = vmax.f32 %v2231_v48, 0.0  ;;  %v5533_v28 = vadd.f32 %v10690_v4, %v3295_v46  ;;  %v10691_v46 = vld [vmem:[#allocation76_spill] sm:$0xff] }
 0x293   :  { %v5851_v52 = vmax.f32 %v5530_v32, %v5531_v9  ;;  %v7364_v31 = vpop.f32.mrb[104].mxu1  ;;  %v5846_v8 = vmax.f32 %v5844_v50, %v5845_v20  ;;  %v2595_v15 = vmax.f32 %v2223_v7, 0.0 }
 0x294   :  { %v3299_v5 = vpop.f32.mrb[105].mxu1  ;;  %v9877_v47 = vsel %vm6326_vm9, %v6301_v14, %v9840_v40  ;;  %v2743_v49 = vpack.c.bf16 %v2597_v59, %v2596_v62 }
 0x295   :  { %v5852_v6 = vmax.f32 %v5851_v52, %v5532_v61  ;;  %v3300_v41 = vadd.f32 %v9693_v57, %v3299_v5  ;;  %v7204_v36 = vpop.f32.mrb[220].mxu0  ;;  %v7365_v32 = vpop.f32.mrb[106].mxu1  ;;  %v5847_v9 = vrot.slane %v5846_v8, 2  ;;  %v2742_v48 = vpack.c.bf16 %v2595_v15, %v2594_v22 }
 0x296   :  { %v2244_v54 = vadd.f32 %v9737_v24, %v7204_v36  ;;  %v2235_v50 = vpop.f32.mrb[221].mxu0  ;;  %v3302_v20 = vpop.f32.mrb[107].mxu1  ;;  %v3308_v61 = vadd.f32 %v9693_v57, %v7364_v31  ;;  %v3311_v22 = vadd.f32 %v9693_v57, %v7365_v32 }
 0x297   :  { %v5534_v1 = vadd.f32 %v10691_v46, %v3300_v41  ;;  %v5853_v7 = vmax.f32 %v5852_v6, %v5533_v28  ;;  %v2236_v4 = vadd.f32 %v9737_v24, %v2235_v50  ;;  %v7205_v11 = vpop.f32.mrb[222].mxu0  ;;  %v5848_v40 = vmax.f32 %v5846_v8, %v5847_v9  ;;  %7470 = vmatprep.mubr.bf16.mxu1 %v2742_v48  ;;  %v10692_v28 = vld [vmem:[#allocation75_spill] sm:$0xff]  ;;  %v9889_v8 = vpop.permute.xlu1 %4983  ;;  %v10695_v48 = vld [vmem:[#allocation78_spill] sm:$0xff] }
 0x298   :  { %v3303_v14 = vadd.f32 %v9693_v57, %v3302_v20  ;;  %v2247_v62 = vadd.f32 %v9737_v24, %v7205_v11  ;;  %v2238_v52 = vpop.f32.mrb[223].mxu0  ;;  %v2600_v41 = vmax.f32 %v2244_v54, 0.0  ;;  %10693 = vst [vmem:[#allocation19_spill] sm:$0xff] %v9889_v8  ;;  %v9891_v20 = vpop.permute.xlu0 %5028  ;;  %v5536_v46 = vadd.f32 %v10695_v48, %v3308_v61 }
 0x299   :  { %v5854_v59 = vmax.f32 %v5853_v7, %v5534_v1  ;;  %v2239_v15 = vadd.f32 %v9737_v24, %v2238_v52  ;;  %v5849_v5 = vrot.slane %v5848_v40, 1  ;;  %7471 = vmatmul.mubr.bf16.gmra.mrb[212].mxu1 %v2743_v49  ;;  %v2598_v31 = vmax.f32 %v2236_v4, 0.0  ;;  %10694 = vst [vmem:[#allocation22_spill] sm:$0xff] %v9891_v20  ;;  %v10696_v49 = vld [vmem:[#allocation77_spill] sm:$0xff] }
 0x29a   :  { %v5535_v6 = vadd.f32 %v10692_v28, %v3303_v14  ;;  %v2601_v36 = vmax.f32 %v2247_v62, 0.0  ;;  %v5537_v62 = vadd.f32 %v10696_v49, %v3311_v22 }
 0x29b   :  { %v2599_v9 = vmax.f32 %v2239_v15, 0.0  ;;  %v7368_v50 = vpop.f32.mrb[108].mxu1  ;;  %v5850_v11 = vmax.f32 %v5848_v40, %v5849_v5 }
 0x29c   :  { %v5855_v1 = vmax.f32 %v5854_v59, %v5535_v6  ;;  %v2745_v32 = vpack.c.bf16 %v2601_v36, %v2600_v41  ;;  %v3315_v7 = vpop.f32.mrb[109].mxu1  ;;  %v3324_v41 = vadd.f32 %v9693_v57, %v7368_v50 }
 0x29d   :  { %v2744_v52 = vpack.c.bf16 %v2599_v9, %v2598_v31  ;;  %v3316_v54 = vadd.f32 %v9693_v57, %v3315_v7  ;;  %v7208_v29 = vpop.f32.mrb[224].mxu0  ;;  %v7369_v14 = vpop.f32.mrb[110].mxu1  ;;  %vm6110_vm10 = vcmp.gt.f32.partialorder %v5850_v11, -1.5e+38  ;;  %v10697_v31 = vld [vmem:[#allocation80_spill] sm:$0xff] }
 0x29e   :  { %v5856_v28 = vmax.f32 %v5855_v1, %v5536_v46  ;;  %v2251_v4 = vpop.f32.mrb[225].mxu0  ;;  %v3318_v15 = vpop.f32.mrb[111].mxu1  ;;  %v6142_v13 = vsel %vm6110_vm10, %v5850_v11, 0.0  ;;  %v2260_v20 = vadd.f32 %v9737_v24, %v7208_v29  ;;  %v3327_v46 = vadd.f32 %v9693_v57, %v7369_v14  ;;  %v10698_v1 = vld [vmem:[#allocation79_spill] sm:$0xff] }
 0x29f   :  { %v2252_v40 = vadd.f32 %v9737_v24, %v2251_v4  ;;  %v7209_v61 = vpop.f32.mrb[226].mxu0  ;;  %7474 = vmatprep.mubr.bf16.mxu1 %v2744_v52  ;;  %v6695_v59 = vpack.c.bf16 %v6142_v13, %v6142_v13  ;;  %v3319_v6 = vadd.f32 %v9693_v57, %v3318_v15  ;;  %v5538_v22 = vadd.f32 %v10697_v31, %v3316_v54  ;;  %v9905_v13 = vpop.permute.xlu1 %4993  ;;  %v10701_v15 = vld [vmem:[#allocation82_spill] sm:$0xff] }
 0x2a0   :  { %v5857_v5 = vmax.f32 %v5856_v28, %v5537_v62  ;;  %v2254_v36 = vpop.f32.mrb[227].mxu0  ;;  %v2263_v9 = vadd.f32 %v9737_v24, %v7209_v61  ;;  %10699 = vst [vmem:[#allocation21_spill] sm:$0xff] %v9905_v13  ;;  %v2604_v50 = vmax.f32 %v2260_v20, 0.0  ;;  %v9907_v28 = vpop.permute.xlu0 %5038  ;;  %v5540_v61 = vadd.f32 %v10701_v15, %v3324_v41  ;;  %v10702_v20 = vld [vmem:[#allocation81_spill] sm:$0xff] }
 0x2a1   :  { %v2255_v11 = vadd.f32 %v9737_v24, %v2254_v36  ;;  %v6302_v48 = vunpack.c.l.b16 %v6695_v59  ;;  %v5539_v7 = vadd.f32 %v10698_v1, %v3319_v6  ;;  %7475 = vmatmul.mubr.bf16.gmra.mrb[216].mxu1 %v2745_v32  ;;  %v2602_v52 = vmax.f32 %v2252_v40, 0.0  ;;  %10700 = vst [vmem:[#allocation24_spill] sm:$0xff] %v9907_v28  ;;  %v10708_v13 = vld [vmem:[#allocation85_spill] sm:$0xff] }
 0x2a2   :  { %v5858_v29 = vrot.slane %v5857_v5, 4  ;;  %v2605_v49 = vmax.f32 %v2263_v9, 0.0  ;;  %v5541_v40 = vadd.f32 %v10702_v20, %v3327_v46 }
 0x2a3   :  { %v2603_v62 = vmax.f32 %v2255_v11, 0.0  ;;  %v9911_v54 = vsel %vm6328_vm11, %v6302_v48, %v9877_v47  ;;  %v5864_v59 = vmax.f32 %v5538_v22, %v5539_v7  ;;  %v7372_v57 = vpop.f32.mrb[112].mxu1  ;;  %v9918_v11 = vld [vmem:[%s10511_s5] ss:$0 sm:$0xff]  ;;  %v10703_v7 = vld [vmem:[#allocation84_spill] sm:$0xff]  ;;  %v9928_v20 = vpop.permute.xlu1 %5003 }
 0x2a4   :  { %v5859_v4 = vmax.f32 %v5857_v5, %v5858_v29  ;;  %v2747_v14 = vpack.c.bf16 %v2605_v49, %v2604_v50  ;;  %v3331_v32 = vpop.f32.mrb[113].mxu1  ;;  %10704 = vst [vmem:[#allocation23_spill] sm:$0xff] %v9928_v20 }
 0x2a5   :  { %v2746_v6 = vpack.c.bf16 %v2603_v62, %v2602_v52  ;;  %v7212_v36 = vpop.f32.mrb[228].mxu0  ;;  %v5865_v9 = vmax.f32 %v5864_v59, %v5540_v61  ;;  %v3332_v47 = vadd.f32 %v9918_v11, %v3331_v32  ;;  %v7373_v5 = vpop.f32.mrb[114].mxu1  ;;  %v3340_v62 = vadd.f32 %v9918_v11, %v7372_v57 }
 0x2a6   :  { %v5860_v31 = vrot.slane %v5859_v4, 2  ;;  %v2267_v48 = vpop.f32.mrb[229].mxu0  ;;  %v2276_v41 = vadd.f32 %v9737_v24, %v7212_v36  ;;  %v3334_v22 = vpop.f32.mrb[115].mxu1 }
 0x2a7   :  { %v7213_v29 = vpop.f32.mrb[230].mxu0  ;;  %7478 = vmatprep.mubr.bf16.mxu1 %v2746_v6  ;;  %v5542_v50 = vadd.f32 %v10703_v7, %v3332_v47  ;;  %v5866_v52 = vmax.f32 %v5865_v9, %v5541_v40  ;;  %v2268_v46 = vadd.f32 %v9737_v24, %v2267_v48  ;;  %v3335_v15 = vadd.f32 %v9918_v11, %v3334_v22  ;;  %v9933_v57 = vpop.permute.xlu0 %5048 }
 0x2a8   :  { %v5861_v1 = vmax.f32 %v5859_v4, %v5860_v31  ;;  %v2270_v49 = vpop.f32.mrb[231].mxu0  ;;  %v2279_v61 = vadd.f32 %v9737_v24, %v7213_v29  ;;  %v2608_v4 = vmax.f32 %v2276_v41, 0.0  ;;  %v3343_v6 = vadd.f32 %v9918_v11, %v7373_v5  ;;  %v10705_v31 = vld [vmem:[#allocation83_spill] sm:$0xff]  ;;  %10706 = vst [vmem:[#allocation26_spill] sm:$0xff] %v9933_v57 }
 0x2a9   :  { %v5867_v32 = vmax.f32 %v5866_v52, %v5542_v50  ;;  %v2271_v36 = vadd.f32 %v9737_v24, %v2270_v49  ;;  %7479 = vmatmul.mubr.bf16.gmra.mrb[220].mxu1 %v2747_v14  ;;  %v5543_v40 = vadd.f32 %v10705_v31, %v3335_v15  ;;  %v5702_v47 = vrot.slane %v9447_v56, 4  ;;  %v10707_v50 = vld [vmem:[#allocation86_spill] sm:$0xff] }
 0x2aa   :  { %v5862_v59 = vrot.slane %v5861_v1, 1  ;;  %v2609_v9 = vmax.f32 %v2279_v61, 0.0  ;;  %v2606_v22 = vmax.f32 %v2268_v46, 0.0  ;;  %v5544_v52 = vadd.f32 %v10707_v50, %v3340_v62 }
 0x2ab   :  { %v2607_v29 = vmax.f32 %v2271_v36, 0.0  ;;  %v5868_v49 = vmax.f32 %v5867_v32, %v5543_v40  ;;  %v5545_v55 = vadd.f32 %v10708_v13, %v3343_v6  ;;  %v5703_v62 = vmax.f32 %v9447_v56, %v5702_v47  ;;  %v9947_v47 = vpop.permute.xlu1 %5013 }
 0x2ac   :  { %v5863_v48 = vmax.f32 %v5861_v1, %v5862_v59  ;;  %v7376_v7 = vpop.f32.mrb[116].mxu1  ;;  %v2749_v14 = vpack.c.bf16 %v2609_v9, %v2608_v4  ;;  %10710 = vst [vmem:[#allocation25_spill] sm:$0xff] %v9947_v47 }
 0x2ad   :  { %v3347_v28 = vpop.f32.mrb[117].mxu1  ;;  %v7216_v20 = vpop.f32.mrb[232].mxu0  ;;  %v2748_v41 = vpack.c.bf16 %v2607_v29, %v2606_v22  ;;  %v5869_v57 = vmax.f32 %v5868_v49, %v5544_v52  ;;  %v10711_v52 = vld [vmem:[#allocation87_spill] sm:$0xff] }
 0x2ae   :  { %vm6111_vm12 = vcmp.gt.f32.partialorder %v5863_v48, -1.5e+38  ;;  %v3348_v5 = vadd.f32 %v9918_v11, %v3347_v28  ;;  %v7377_v15 = vpop.f32.mrb[118].mxu1  ;;  %v2283_v61 = vpop.f32.mrb[233].mxu0  ;;  %v2292_v1 = vadd.f32 %v9737_v24, %v7216_v20  ;;  %v3356_v28 = vadd.f32 %v9918_v11, %v7376_v7 }
 0x2af   :  { %v6143_v31 = vsel %vm6111_vm12, %v5863_v48, 0.0  ;;  %v3350_v46 = vpop.f32.mrb[119].mxu1  ;;  %v7217_v59 = vpop.f32.mrb[234].mxu0  ;;  %v2284_v36 = vadd.f32 %v9737_v24, %v2283_v61  ;;  %7482 = vmatprep.mubr.bf16.mxu1 %v2748_v41  ;;  %v5870_v40 = vmax.f32 %v5869_v57, %v5545_v55  ;;  %v10709_v48 = vld [vmem:[#allocation88_spill] sm:$0xff]  ;;  %v3359_v22 = vadd.f32 %v9918_v11, %v7377_v15 }
 0x2b0   :  { %v6696_v32 = vpack.c.bf16 %v6143_v31, %v6143_v31  ;;  %v2286_v4 = vpop.f32.mrb[235].mxu0  ;;  %v3351_v9 = vadd.f32 %v9918_v11, %v3350_v46  ;;  %v2295_v13 = vadd.f32 %v9737_v24, %v7217_v59  ;;  %v5546_v20 = vadd.f32 %v10709_v48, %v3348_v5  ;;  %v9950_v7 = vpop.permute.xlu0 %5058  ;;  %v10713_v31 = vld [vmem:[#allocation90_spill] sm:$0xff] }
 0x2b1   :  { %v2287_v56 = vadd.f32 %v9737_v24, %v2286_v4  ;;  %7483 = vmatmul.mubr.bf16.gmra.mrb[224].mxu1 %v2749_v14  ;;  %v5871_v29 = vrot.slane %v5870_v40, 4  ;;  %v2612_v50 = vmax.f32 %v2292_v1, 0.0  ;;  %10712 = vst [vmem:[#allocation28_spill] sm:$0xff] %v9950_v7  ;;  %v2610_v49 = vmax.f32 %v2284_v36, 0.0 }
 0x2b2   :  { %v6303_v6 = vunpack.c.l.b16 %v6696_v32  ;;  %v5547_v55 = vadd.f32 %v10711_v52, %v3351_v9  ;;  %v2613_v57 = vmax.f32 %v2295_v13, 0.0  ;;  %v5548_v46 = vadd.f32 %v10713_v31, %v3356_v28 }
 0x2b3   :  { %v2611_v41 = vmax.f32 %v2287_v56, 0.0  ;;  %v5872_v15 = vmax.f32 %v5870_v40, %v5871_v29  ;;  %v5704_v1 = vrot.slane %v5703_v62, 2  ;;  %v10714_v56 = vld [vmem:[#allocation89_spill] sm:$0xff]  ;;  %v10715_v29 = vld [vmem:[#allocation92_spill] sm:$0xff] }
 0x2b4   :  { %v7380_v61 = vpop.f32.mrb[120].mxu1  ;;  %v9954_v5 = vsel %vm6330_vm13, %v6303_v6, %v9911_v54  ;;  %v5877_v14 = vmax.f32 %v5546_v20, %v5547_v55  ;;  %v2751_v59 = vpack.c.bf16 %v2613_v57, %v2612_v50  ;;  %v5549_v7 = vadd.f32 %v10714_v56, %v3359_v22  ;;  %v10719_v56 = vld [vmem:[#allocation94_spill] sm:$0xff] }
 0x2b5   :  { %v3363_v32 = vpop.f32.mrb[121].mxu1  ;;  %v7220_v4 = vpop.f32.mrb[236].mxu0  ;;  %v2750_v48 = vpack.c.bf16 %v2611_v41, %v2610_v49  ;;  %v5873_v36 = vrot.slane %v5872_v15, 2  ;;  %v3372_v49 = vadd.f32 %v9918_v11, %v7380_v61  ;;  %v9965_v22 = vmax.f32 %v5703_v62, %v5704_v1 }
 0x2b6   :  { %v3364_v9 = vadd.f32 %v9918_v11, %v3363_v32  ;;  %v7381_v13 = vpop.f32.mrb[122].mxu1  ;;  %v2299_v52 = vpop.f32.mrb[237].mxu0  ;;  %v5878_v47 = vmax.f32 %v5877_v14, %v5548_v46  ;;  %v2308_v54 = vadd.f32 %v9737_v24, %v7220_v4  ;;  %v10716_v14 = vld [vmem:[#allocation91_spill] sm:$0xff]  ;;  %v5715_v62 = vrot.slane %v9517_v25, 4 }
 0x2b7   :  { %v3366_v6 = vpop.f32.mrb[123].mxu1  ;;  %v7221_v40 = vpop.f32.mrb[238].mxu0  ;;  %v2300_v20 = vadd.f32 %v9737_v24, %v2299_v52  ;;  %7486 = vmatprep.mubr.bf16.mxu1 %v2750_v48  ;;  %v5874_v57 = vmax.f32 %v5872_v15, %v5873_v36  ;;  %v3375_v46 = vadd.f32 %v9918_v11, %v7381_v13  ;;  %v9972_v4 = vld [vmem:[%s10509_s3] ss:$0 sm:$0xff] }
 0x2b8   :  { %v5550_v28 = vadd.f32 %v10715_v29, %v3364_v9  ;;  %v3367_v50 = vadd.f32 %v9918_v11, %v3366_v6  ;;  %v2302_v55 = vpop.f32.mrb[239].mxu0  ;;  %v5879_v41 = vmax.f32 %v5878_v47, %v5549_v7  ;;  %v2311_v31 = vadd.f32 %v9737_v24, %v7221_v40  ;;  %v9975_v15 = vpop.permute.xlu1 %5023 }
 0x2b9   :  { %v2303_v48 = vadd.f32 %v9972_v4, %v2302_v55  ;;  %7487 = vmatmul.mubr.bf16.gmra.mrb[228].mxu1 %v2751_v59  ;;  %10717 = vst [vmem:[#allocation27_spill] sm:$0xff] %v9975_v15  ;;  %v5875_v61 = vrot.slane %v5874_v57, 1  ;;  %v2616_v7 = vmax.f32 %v2308_v54, 0.0  ;;  %v9978_v1 = vpop.permute.xlu0 %5068  ;;  %v2614_v9 = vmax.f32 %v2300_v20, 0.0  ;;  %v10720_v55 = vld [vmem:[#allocation105_spill] sm:$0xff]  ;;  %v10721_v54 = vld [vmem:[#allocation106_spill] sm:$0xff] }
 0x2ba   :  { %v5551_v32 = vadd.f32 %v10716_v14, %v3367_v50  ;;  %v5880_v47 = vmax.f32 %v5879_v41, %v5550_v28  ;;  %v2617_v24 = vmax.f32 %v2311_v31, 0.0  ;;  %10718 = vst [vmem:[#allocation30_spill] sm:$0xff] %v9978_v1  ;;  %v5552_v6 = vadd.f32 %v10719_v56, %v3372_v49 }
 0x2bb   :  { %v2615_v13 = vmax.f32 %v2303_v48, 0.0  ;;  %v5876_v36 = vmax.f32 %v5874_v57, %v5875_v61  ;;  %v9983_v14 = vadd.f32 %v9918_v11, %v10720_v55  ;;  %v9987_v28 = vadd.f32 %v9918_v11, %v10721_v54  ;;  %v10722_v57 = vld [vmem:[#allocation93_spill] sm:$0xff] }
 0x2bc   :  { %v7384_v52 = vpop.f32.mrb[124].mxu1  ;;  %v5881_v40 = vmax.f32 %v5880_v47, %v5551_v32  ;;  %v2753_v29 = vpack.c.bf16 %v2617_v24, %v2616_v7  ;;  %v5706_v41 = vrot.slane %v9965_v22, 1  ;;  %v5553_v49 = vadd.f32 %v10722_v57, %v3375_v46  ;;  %v10004_v57 = vpop.permute.xlu1 %5033 }
 0x2bd   :  { %v3379_v50 = vpop.f32.mrb[125].mxu1  ;;  %v7224_v59 = vpop.f32.mrb[240].mxu0  ;;  %v2752_v20 = vpack.c.bf16 %v2615_v13, %v2614_v9  ;;  %vm6112_vm14 = vcmp.gt.f32.partialorder %v5876_v36, -1.5e+38  ;;  %v9993_v24 = vmax.f32 %v9517_v25, %v5715_v62  ;;  %v3388_v15 = vadd.f32 %v9918_v11, %v7384_v52  ;;  %10725 = vst [vmem:[#allocation29_spill] sm:$0xff] %v10004_v57 }
 0x2be   :  { %v7385_v31 = vpop.f32.mrb[126].mxu1  ;;  %v2315_v48 = vpop.f32.mrb[241].mxu0  ;;  %v5882_v32 = vmax.f32 %v5881_v40, %v5552_v6  ;;  %v3380_v61 = vadd.f32 %v9918_v11, %v3379_v50  ;;  %v6144_v56 = vsel %vm6112_vm14, %v5876_v36, 0.0  ;;  %v2324_v55 = vadd.f32 %v9972_v4, %v7224_v59  ;;  %v10723_v50 = vld [vmem:[#allocation96_spill] sm:$0xff] }
 0x2bf   :  { %v3382_v47 = vpop.f32.mrb[127].mxu1  ;;  %v7225_v7 = vpop.f32.mrb[242].mxu0  ;;  %v2316_v54 = vadd.f32 %v9972_v4, %v2315_v48  ;;  %7490 = vmatprep.mubr.bf16.mxu1 %v2752_v20  ;;  %v6697_v13 = vpack.c.bf16 %v6144_v56, %v6144_v56  ;;  %v3391_v6 = vadd.f32 %v9918_v11, %v7385_v31  ;;  %v10724_v20 = vld [vmem:[#allocation95_spill] sm:$0xff] }
 0x2c0   :  { %v2318_v9 = vpop.f32.mrb[243].mxu0  ;;  %v5883_v1 = vmax.f32 %v5882_v32, %v5553_v49  ;;  %v3383_v46 = vadd.f32 %v9918_v11, %v3382_v47  ;;  %v2327_v40 = vadd.f32 %v9972_v4, %v7225_v7  ;;  %v5554_v59 = vadd.f32 %v10723_v50, %v3380_v61  ;;  %v10006_v49 = vpop.permute.xlu0 %5078  ;;  %v10727_v7 = vld [vmem:[#allocation98_spill] sm:$0xff] }
 0x2c1   :  { %v2319_v25 = vadd.f32 %v9972_v4, %v2318_v9  ;;  %7491 = vmatmul.mubr.bf16.gmra.mrb[232].mxu1 %v2753_v29  ;;  %v6304_v62 = vunpack.c.l.b16 %v6697_v13  ;;  %10726 = vst [vmem:[#allocation32_spill] sm:$0xff] %v10006_v49  ;;  %v2620_v52 = vmax.f32 %v2324_v55, 0.0  ;;  %v2618_v32 = vmax.f32 %v2316_v54, 0.0 }
 0x2c2   :  { %v5884_v36 = vrot.slane %v5883_v1, 4  ;;  %v5555_v48 = vadd.f32 %v10724_v20, %v3383_v46  ;;  %v2621_v47 = vmax.f32 %v2327_v40, 0.0  ;;  %v5556_v8 = vadd.f32 %v10727_v7, %v3388_v15 }
 0x2c3   :  { %v2619_v31 = vmax.f32 %v2319_v25, 0.0  ;;  %v10011_v13 = vsel %vm6332_vm15, %v6304_v62, %v9954_v5  ;;  %v5728_v61 = vrot.slane %v9596_v42, 4  ;;  %v10728_v25 = vld [vmem:[#allocation97_spill] sm:$0xff]  ;;  %v10018_v7 = vmax.f32 %v9965_v22, %v5706_v41 }
 0x2c4   :  { %v5885_v56 = vmax.f32 %v5883_v1, %v5884_v36  ;;  %v5890_v9 = vmax.f32 %v5554_v59, %v5555_v48  ;;  %v7388_v29 = vpop.f32.mrb[128].mxu1  ;;  %v2755_v46 = vpack.c.bf16 %v2621_v47, %v2620_v52  ;;  %v5557_v1 = vadd.f32 %v10728_v25, %v3391_v6 }
 0x2c5   :  { %v7228_v21 = vpop.f32.mrb[244].mxu0  ;;  %v2754_v50 = vpack.c.bf16 %v2619_v31, %v2618_v32  ;;  %v3395_v20 = vpop.f32.mrb[129].mxu1  ;;  %v5717_v5 = vrot.slane %v9993_v24, 2  ;;  %v3404_v6 = vadd.f32 %v9918_v11, %v7388_v29  ;;  %vm6099_vm0 = vcmp.gt.f32.partialorder %v10018_v7, -1.5e+38 }
 0x2c6   :  { %v2340_v55 = vadd.f32 %v9972_v4, %v7228_v21  ;;  %v2331_v54 = vpop.f32.mrb[245].mxu0  ;;  %v5886_v40 = vrot.slane %v5885_v56, 2  ;;  %v5891_v36 = vmax.f32 %v5890_v9, %v5556_v8  ;;  %v3396_v15 = vadd.f32 %v9918_v11, %v3395_v20  ;;  %v7389_v59 = vpop.f32.mrb[130].mxu1  ;;  %v10729_v8 = vld [vmem:[#allocation100_spill] sm:$0xff] }
 0x2c7   :  { %v7229_v48 = vpop.f32.mrb[246].mxu0  ;;  %v2332_v62 = vadd.f32 %v9972_v4, %v2331_v54  ;;  %v3398_v52 = vpop.f32.mrb[131].mxu1  ;;  %7494 = vmatprep.mubr.bf16.mxu1 %v2754_v50  ;;  %v10028_v54 = vmax.f32 %v9596_v42, %v5728_v61  ;;  %v3407_v50 = vadd.f32 %v9918_v11, %v7389_v59 }
 0x2c8   :  { %v2343_v32 = vadd.f32 %v9972_v4, %v7229_v48  ;;  %v2334_v21 = vpop.f32.mrb[247].mxu0  ;;  %v5887_v47 = vmax.f32 %v5885_v56, %v5886_v40  ;;  %v5558_v31 = vadd.f32 %v10729_v8, %v3396_v15  ;;  %v5892_v9 = vmax.f32 %v5891_v36, %v5557_v1  ;;  %v10031_v56 = vpop.permute.xlu1 %5043  ;;  %v10732_v1 = vld [vmem:[#allocation99_spill] sm:$0xff]  ;;  %v10735_v8 = vld [vmem:[#allocation102_spill] sm:$0xff] }
 0x2c9   :  { %v2624_v20 = vmax.f32 %v2340_v55, 0.0  ;;  %v3399_v25 = vadd.f32 %v9918_v11, %v3398_v52  ;;  %v2335_v41 = vadd.f32 %v9972_v4, %v2334_v21  ;;  %7495 = vmatmul.mubr.bf16.gmra.mrb[236].mxu1 %v2755_v46  ;;  %10730 = vst [vmem:[#allocation31_spill] sm:$0xff] %v10031_v56  ;;  %v10033_v29 = vpop.permute.xlu0 %5088  ;;  %v2622_v40 = vmax.f32 %v2332_v62, 0.0  ;;  %v10733_v52 = vld [vmem:[#allocation12_spill] sm:$0xff]  ;;  %v10734_v46 = vld [vmem:[#allocation107_spill] sm:$0xff] }
 0x2ca   :  { %v2625_v22 = vmax.f32 %v2343_v32, 0.0  ;;  %v5888_v49 = vrot.slane %v5887_v47, 1  ;;  %v5893_v48 = vmax.f32 %v5892_v9, %v5558_v31  ;;  %10731 = vst [vmem:[#allocation34_spill] sm:$0xff] %v10033_v29  ;;  %v10038_v32 = vadd.f32 %v10733_v52, %v9983_v14  ;;  %v10736_v29 = vld [vmem:[#allocation101_spill] sm:$0xff]  ;;  %v10737_v56 = vld [vmem:[#allocation104_spill] sm:$0xff] }
 0x2cb   :  { %v5559_v55 = vadd.f32 %v10732_v1, %v3399_v25  ;;  %v2623_v15 = vmax.f32 %v2335_v41, 0.0  ;;  %v10042_v42 = vadd.f32 %v9918_v11, %v10734_v46  ;;  %v5560_v31 = vadd.f32 %v10735_v8, %v3404_v6 }
 0x2cc   :  { %v2757_v36 = vpack.c.bf16 %v2625_v22, %v2624_v20  ;;  %v5889_v61 = vmax.f32 %v5887_v47, %v5888_v49  ;;  %v7392_v59 = vpop.f32.mrb[132].mxu1  ;;  %v5718_v14 = vmax.f32 %v9993_v24, %v5717_v5  ;;  %v5730_v49 = vrot.slane %v10028_v54, 2 }
 0x2cd   :  { %v7232_v21 = vpop.f32.mrb[248].mxu0  ;;  %v5894_v62 = vmax.f32 %v5893_v48, %v5559_v55  ;;  %v2756_v9 = vpack.c.bf16 %v2623_v15, %v2622_v40  ;;  %v3411_v25 = vpop.f32.mrb[133].mxu1  ;;  %v5561_v6 = vadd.f32 %v10736_v29, %v3407_v50 }
 0x2ce   :  { %v2356_v20 = vadd.f32 %v9972_v4, %v7232_v21  ;;  %v2347_v22 = vpop.f32.mrb[249].mxu0  ;;  %vm6113_vm1 = vcmp.gt.f32.partialorder %v5889_v61, -1.5e+38  ;;  %v3412_v41 = vadd.f32 %v9918_v11, %v3411_v25  ;;  %v7393_v1 = vpop.f32.mrb[134].mxu1  ;;  %v3420_v21 = vadd.f32 %v9918_v11, %v7392_v59 }
 0x2cf   :  { %v2348_v52 = vadd.f32 %v9972_v4, %v2347_v22  ;;  %v7233_v46 = vpop.f32.mrb[250].mxu0  ;;  %v6145_v47 = vsel %vm6113_vm1, %v5889_v61, 0.0  ;;  %v5895_v48 = vmax.f32 %v5894_v62, %v5560_v31  ;;  %v3414_v40 = vpop.f32.mrb[135].mxu1  ;;  %7498 = vmatprep.mubr.bf16.mxu1 %v2756_v9  ;;  %v3423_v29 = vadd.f32 %v9918_v11, %v7393_v1 }
 0x2d0   :  { %v2350_v55 = vpop.f32.mrb[251].mxu0  ;;  %v6698_v15 = vpack.c.bf16 %v6145_v47, %v6145_v47  ;;  %v2628_v24 = vmax.f32 %v2356_v20, 0.0  ;;  %v3415_v8 = vadd.f32 %v9918_v11, %v3414_v40  ;;  %v2359_v25 = vadd.f32 %v9972_v4, %v7233_v46  ;;  %v10058_v62 = vpop.permute.xlu1 %5053  ;;  %v10740_v20 = vld [vmem:[#allocation103_spill] sm:$0xff]  ;;  %v10741_v46 = vld [vmem:[#allocation10_spill] sm:$0xff] }
 0x2d1   :  { %v5896_v5 = vmax.f32 %v5895_v48, %v5561_v6  ;;  %v2351_v22 = vadd.f32 %v9972_v4, %v2350_v55  ;;  %7499 = vmatmul.mubr.bf16.gmra.mrb[240].mxu1 %v2757_v36  ;;  %v5562_v50 = vadd.f32 %v10737_v56, %v3412_v41  ;;  %v2626_v31 = vmax.f32 %v2348_v52, 0.0  ;;  %10738 = vst [vmem:[#allocation33_spill] sm:$0xff] %v10058_v62  ;;  %v10060_v9 = vpop.permute.xlu0 %5098  ;;  %v10742_v55 = vld [vmem:[#allocation110_spill] sm:$0xff] }
 0x2d2   :  { %v6305_v61 = vunpack.c.l.b16 %v6698_v15  ;;  %10739 = vst [vmem:[#allocation36_spill] sm:$0xff] %v10060_v9  ;;  %v5563_v47 = vadd.f32 %v10740_v20, %v3415_v8  ;;  %v2629_v6 = vmax.f32 %v2359_v25, 0.0  ;;  %v10065_v40 = vadd.f32 %v10741_v46, %v9987_v28  ;;  %v10743_v25 = vld [vmem:[#allocation109_spill] sm:$0xff] }
 0x2d3   :  { %v5897_v59 = vrot.slane %v5896_v5, 4  ;;  %v2627_v48 = vmax.f32 %v2351_v22, 0.0  ;;  %v5719_v36 = vrot.slane %v5718_v14, 1  ;;  %v5564_v15 = vadd.f32 %v10742_v55, %v3420_v21 }
 0x2d4   :  { %v7396_v56 = vpop.f32.mrb[136].mxu1  ;;  %v6342_v1 = vsel %vm6334_vm2, %v6305_v61, %v10011_v13  ;;  %v5903_v62 = vmax.f32 %v5562_v50, %v5563_v47  ;;  %v2759_v9 = vpack.c.bf16 %v2629_v6, %v2628_v24  ;;  %v2887_v22 = vadd.f32 %v9918_v11, %v10743_v25  ;;  %v10744_v24 = vld [vmem:[#allocation108_spill] sm:$0xff] }
 0x2d5   :  { %v7236_v41 = vpop.f32.mrb[252].mxu0  ;;  %v5898_v52 = vmax.f32 %v5896_v5, %v5897_v59  ;;  %v2758_v57 = vpack.c.bf16 %v2627_v48, %v2626_v31  ;;  %v3427_v60 = vpop.f32.mrb[137].mxu1  ;;  %v10075_v28 = vsel %vm6099_vm0, %v10018_v7, 0.0  ;;  %v5731_v5 = vmax.f32 %v10028_v54, %v5730_v49  ;;  %v10745_v48 = vld [vmem:[#allocation112_spill] sm:$0xff] }
 0x2d6   :  { %v2363_v8 = vpop.f32.mrb[253].mxu0  ;;  %v3428_v21 = vadd.f32 %v9918_v11, %v3427_v60  ;;  %v2372_v20 = vadd.f32 %v9972_v4, %v7236_v41  ;;  %v7397_v46 = vpop.f32.mrb[138].mxu1  ;;  %v5565_v61 = vadd.f32 %v10744_v24, %v3423_v29  ;;  %v5904_v50 = vmax.f32 %v5903_v62, %v5564_v15 }
 0x2d7   :  { %v7237_v13 = vpop.f32.mrb[254].mxu0  ;;  %v3430_v31 = vpop.f32.mrb[139].mxu1  ;;  %7502 = vmatprep.mubr.bf16.mxu1 %v2758_v57  ;;  %v5720_v6 = vmax.f32 %v5718_v14, %v5719_v36  ;;  %v5741_v7 = vrot.slane %v9622_v19, 4  ;;  %v2364_v60 = vadd.f32 %v9972_v4, %v2363_v8  ;;  %v5899_v41 = vrot.slane %v5898_v52, 2 }
 0x2d8   :  { %v2375_v59 = vadd.f32 %v9972_v4, %v7237_v13  ;;  %v2366_v47 = vpop.f32.mrb[255].mxu0  ;;  %v5566_v55 = vadd.f32 %v10745_v48, %v3428_v21  ;;  %v3436_v25 = vadd.f32 %v9918_v11, %v7396_v56  ;;  %v5905_v3 = vmax.f32 %v5904_v50, %v5565_v61  ;;  %v10088_v15 = vpop.permute.xlu1 %5063  ;;  %v10746_v13 = vld [vmem:[#allocation111_spill] sm:$0xff] }
 0x2d9   :  { %v3431_v54 = vadd.f32 %v9918_v11, %v3430_v31  ;;  %7503 = vmatmul.mubr.bf16.gmra.mrb[244].mxu1 %v2759_v9  ;;  %v2632_v49 = vmax.f32 %v2372_v20, 0.0  ;;  %v2367_v62 = vadd.f32 %v9972_v4, %v2366_v47  ;;  %v6358_v57 = vpack.c.b16 %v6342_v1, %v6342_v1  ;;  %v10090_v36 = vpop.permute.xlu0 %5108 }
 0x2da   :  { %v2633_v29 = vmax.f32 %v2375_v59, 0.0  ;;  %v5732_v14 = vrot.slane %v5731_v5, 1  ;;  %v5906_v21 = vmax.f32 %v5905_v3, %v5566_v55  ;;  %v3439_v8 = vadd.f32 %v9918_v11, %v7397_v46  ;;  %v10747_v3 = vld [vmem:[#allocation11_spill] sm:$0xff]  ;;  %v10748_v55 = vld [vmem:[#allocation9_spill] sm:$0xff] }
 0x2db   :  { %v5567_v24 = vadd.f32 %v10746_v13, %v3431_v54  ;;  %v5754_v56 = vrot.slane %v9651_v45, 4  ;;  %v2630_v61 = vmax.f32 %v2364_v60, 0.0  ;;  %v2631_v9 = vmax.f32 %v2367_v62, 0.0  ;;  %6366 = vst [vmem:[#allocation2 + $0x4] sm:$0xf] %v6358_v57 }
 0x2dc   :  { %v2761_v50 = vpack.c.bf16 %v2633_v29, %v2632_v49  ;;  %v7400_v20 = vpop.f32.mrb[140].mxu1  ;;  %vm6100_vm3 = vcmp.gt.f32.partialorder %v5720_v6, -1.5e+38  ;;  %v5900_v4 = vmax.f32 %v5898_v52, %v5899_v41  ;;  %v5568_v1 = vadd.f32 %v9384_v0, %v3436_v25  ;;  %v10749_v41 = vld [vmem:[#allocation113_spill] sm:$0xff] }
 0x2dd   :  { %v7256_v31 = vpop.f32.mrb[0].mxu0  ;;  %v5907_v59 = vmax.f32 %v5906_v21, %v5567_v24  ;;  %v3443_v47 = vpop.f32.mrb[141].mxu1  ;;  %v10098_v46 = vadd.f32 %v10747_v3, %v10042_v42  ;;  %v10101_v54 = vadd.f32 %v10748_v55, %v2887_v22  ;;  %v5742_v60 = vmax.f32 %v9622_v19, %v5741_v7  ;;  %v10750_v3 = vld [vmem:[#allocation6_spill] sm:$0xff] }
 0x2de   :  { %v2867_v48 = vpop.f32.mrb[1].mxu0  ;;  %v2760_v49 = vpack.c.bf16 %v2631_v9, %v2630_v61  ;;  %v7401_v29 = vpop.f32.mrb[142].mxu1  ;;  %v5569_v0 = vadd.f32 %v10749_v41, %v3439_v8  ;;  %v3444_v57 = vadd.f32 %v9918_v11, %v3443_v47  ;;  %v10109_v42 = vsel %vm6100_vm3, %v5720_v6, 0.0 }
 0x2df   :  { %v7257_v62 = vpop.f32.mrb[2].mxu0  ;;  %v5908_v25 = vmax.f32 %v5907_v59, %v5568_v1  ;;  %v3446_v21 = vpop.f32.mrb[143].mxu1  ;;  %v10111_v22 = vmax.f32 %v5731_v5, %v5732_v14  ;;  %v5755_v19 = vmax.f32 %v9651_v45, %v5754_v56  ;;  %v2868_v7 = vadd.f32 %v9918_v11, %v2867_v48 }
 0x2e0   :  { %v2870_v13 = vpop.f32.mrb[3].mxu0  ;;  %7506 = vmatprep.mubr.bf16.mxu1 %v2760_v49  ;;  %v5901_v24 = vrot.slane %v5900_v4, 1  ;;  %v3452_v9 = vadd.f32 %v9918_v11, %v7400_v20  ;;  %v3447_v8 = vadd.f32 %v9918_v11, %v3446_v21  ;;  %v5743_v1 = vrot.slane %v5742_v60, 2  ;;  %v10123_v48 = vpop.permute.xlu1 %5073  ;;  %v10751_v49 = vld [vmem:[#allocation8_spill] sm:$0xff] }
 0x2e1   :  { %v5909_v61 = vmax.f32 %v5908_v25, %v5569_v0  ;;  %7507 = vmatmul.mubr.bf16.gmra.mrb[248].mxu1 %v2761_v50  ;;  %v5767_v59 = vrot.slane %v9674_v38, 4  ;;  %v2876_v6 = vadd.f32 %v9918_v11, %v7256_v31  ;;  %v2871_v5 = vadd.f32 %v9918_v11, %v2870_v13  ;;  %v10128_v31 = vpop.permute.xlu0 %5118  ;;  %v10753_v13 = vld [vmem:[#allocation5_spill] sm:$0xff] }
 0x2e2   :  { %v5570_v45 = vadd.f32 %v9413_v63, %v3444_v57  ;;  %v3455_v56 = vadd.f32 %v9918_v11, %v7401_v29  ;;  %v5571_v47 = vadd.f32 %v9403_v23, %v3447_v8  ;;  %v5756_v20 = vrot.slane %v5755_v19, 2  ;;  %10752 = vst [vmem:[#allocation35_spill] sm:$0xff] %v10128_v31 }
 0x2e3   :  { %v5910_v14 = vrot.slane %v5909_v61, 4  ;;  %v5426_v55 = vadd.f32 %v10750_v3, %v2868_v7  ;;  %v2879_v50 = vadd.f32 %v9918_v11, %v7257_v62  ;;  %v5427_v41 = vadd.f32 %v10751_v49, %v2871_v5 }
 0x2e4   :  { %v7404_v0 = vpop.f32.mrb[144].mxu1  ;;  %v5902_v25 = vmax.f32 %v5900_v4, %v5901_v24  ;;  %v5572_v63 = vadd.f32 %v9445_v33, %v3452_v9  ;;  %v5916_v57 = vmax.f32 %v5570_v45, %v5571_v47  ;;  %v5780_v23 = vrot.slane %v9708_v58, 4  ;;  %v10754_v24 = vld [vmem:[#allocation7_spill] sm:$0xff] }
 0x2e5   :  { %v5911_v21 = vmax.f32 %v5909_v61, %v5910_v14  ;;  %v3459_v29 = vpop.f32.mrb[145].mxu1  ;;  %v5428_v8 = vadd.f32 %v10753_v13, %v2876_v6  ;;  %v5682_v52 = vmax.f32 %v5426_v55, %v5427_v41  ;;  %v5768_v62 = vmax.f32 %v9674_v38, %v5767_v59  ;;  %v10140_v55 = vpop.permute.xlu1 %5083 }
 0x2e6   :  { %v3460_v7 = vadd.f32 %v9918_v11, %v3459_v29  ;;  %v7405_v3 = vpop.f32.mrb[146].mxu1  ;;  %v5573_v49 = vadd.f32 %v9427_v43, %v3455_v56  ;;  %v5917_v31 = vmax.f32 %v5916_v57, %v5572_v63  ;;  %v5429_v61 = vadd.f32 %v10754_v24, %v2879_v50  ;;  %v10146_v50 = vpop.permute.xlu0 %5128 }
 0x2e7   :  { %v5912_v5 = vrot.slane %v5911_v21, 2  ;;  %v3462_v4 = vpop.f32.mrb[147].mxu1  ;;  %v5683_v33 = vmax.f32 %v5682_v52, %v5428_v8  ;;  %vm6114_vm4 = vcmp.gt.f32.partialorder %v5902_v25, -1.5e+38  ;;  %v3468_v45 = vadd.f32 %v9918_v11, %v7404_v0 }
 0x2e8   :  { %v5574_v9 = vadd.f32 %v9472_v34, %v3460_v7  ;;  %v3463_v14 = vadd.f32 %v9918_v11, %v3462_v4  ;;  %v5918_v47 = vmax.f32 %v5917_v31, %v5573_v49  ;;  %v5744_v38 = vmax.f32 %v5742_v60, %v5743_v1 }
 0x2e9   :  { %v5913_v6 = vmax.f32 %v5911_v21, %v5912_v5  ;;  %v5781_v59 = vmax.f32 %v9708_v58, %v5780_v23  ;;  %v5684_v43 = vmax.f32 %v5683_v33, %v5429_v61  ;;  %v6685_v52 = vpack.c.bf16 %v10109_v42, %v10109_v42 }
 0x2ea   :  { %v5575_v56 = vadd.f32 %v9465_v10, %v3463_v14  ;;  %v5919_v41 = vmax.f32 %v5918_v47, %v5574_v9  ;;  %v3471_v21 = vadd.f32 %v9918_v11, %v7405_v3  ;;  %vm6101_vm6 = vcmp.gt.f32.partialorder %v10111_v22, -1.5e+38  ;;  %v10161_v61 = vpop.permute.xlu0 %5138 }
 0x2eb   :  { %v5914_v34 = vrot.slane %v5913_v6, 1  ;;  %v5757_v0 = vmax.f32 %v5755_v19, %v5756_v20  ;;  %v6146_v31 = vsel %vm6114_vm4, %v5902_v25, 0.0  ;;  %v5685_v60 = vmax.f32 %v5684_v43, %v10065_v40  ;;  %v10156_v25 = vpop.permute.xlu1 %5093 }
 0x2ec   :  { %v7408_v58 = vpop.f32.mrb[148].mxu1  ;;  %v5769_v1 = vrot.slane %v5768_v62, 2  ;;  %v5576_v10 = vadd.f32 %v9503_v2, %v3468_v45  ;;  %v5920_v57 = vmax.f32 %v5919_v41, %v5575_v56  ;;  %v5745_v23 = vrot.slane %v5744_v38, 1 }
 0x2ed   :  { %v5915_v63 = vmax.f32 %v5913_v6, %v5914_v34  ;;  %v3475_v29 = vpop.f32.mrb[149].mxu1  ;;  %v5782_v13 = vrot.slane %v5781_v59, 2  ;;  %v5686_v8 = vmax.f32 %v5685_v60, %v10101_v54  ;;  %v6699_v5 = vpack.c.bf16 %v6146_v31, %v6146_v31 }
 0x2ee   :  { %v3476_v7 = vadd.f32 %v9918_v11, %v3475_v29  ;;  %v7409_v3 = vpop.f32.mrb[150].mxu1  ;;  %v5577_v19 = vadd.f32 %v9493_v17, %v3471_v21  ;;  %v5921_v20 = vmax.f32 %v5920_v57, %v5576_v10  ;;  %v3484_v4 = vadd.f32 %v9918_v11, %v7408_v58 }
 0x2ef   :  { %vm6115_vm8 = vcmp.gt.f32.partialorder %v5915_v63, -1.5e+38  ;;  %v3478_v40 = vpop.f32.mrb[151].mxu1  ;;  %v5687_v2 = vmax.f32 %v5686_v8, %v10038_v32  ;;  %v5758_v54 = vrot.slane %v5757_v0, 1  ;;  %v5770_v33 = vmax.f32 %v5768_v62, %v5769_v1  ;;  %v10171_v10 = vpop.permute.xlu1 %5103 }
 0x2f0   :  { %v6147_v49 = vsel %vm6115_vm8, %v5915_v63, 0.0  ;;  %v3479_v24 = vadd.f32 %v9918_v11, %v3478_v40  ;;  %v5922_v14 = vmax.f32 %v5921_v20, %v5577_v19  ;;  %v5578_v17 = vadd.f32 %v9532_v35, %v3476_v7 }
 0x2f1   :  { %v6700_v9 = vpack.c.bf16 %v6147_v49, %v6147_v49  ;;  %v5688_v6 = vmax.f32 %v5687_v2, %v10098_v46  ;;  %v3487_v45 = vadd.f32 %v9918_v11, %v7409_v3  ;;  %v5783_v43 = vmax.f32 %v5781_v59, %v5782_v13 }
 0x2f2   :  { %v5579_v47 = vadd.f32 %v9515_v26, %v3479_v24  ;;  %v6306_v32 = vunpack.c.l.b16 %v6699_v5  ;;  %v5923_v34 = vrot.slane %v5922_v14, 4  ;;  %v5746_v41 = vmax.f32 %v5744_v38, %v5745_v23 }
 0x2f3   :  { %v6307_v56 = vunpack.c.l.b16 %v6700_v9  ;;  %v5689_v21 = vrot.slane %v5688_v6, 4  ;;  %v5580_v31 = vadd.f32 %v9556_v53, %v3484_v4  ;;  %v5759_v58 = vmax.f32 %v5757_v0, %v5758_v54  ;;  %v10178_v0 = vpop.permute.xlu0 %5148 }
 0x2f4   :  { %v5929_v60 = vmax.f32 %v5578_v17, %v5579_v47  ;;  %v7412_v62 = vpop.f32.mrb[152].mxu1  ;;  %v5771_v1 = vrot.slane %v5770_v33, 1  ;;  %v5924_v35 = vmax.f32 %v5922_v14, %v5923_v34  ;;  %v5581_v59 = vadd.f32 %v9548_v39, %v3487_v45 }
 0x2f5   :  { %v10169_v46 = vsel %vm6322_vm5, %v6307_v56, %v6306_v32  ;;  %v3491_v63 = vpop.f32.mrb[153].mxu1  ;;  %v5690_v26 = vmax.f32 %v5688_v6, %v5689_v21  ;;  %v6133_v53 = vsel %vm6101_vm6, %v10111_v22, 0.0  ;;  %v5784_v23 = vrot.slane %v5783_v43, 1 }
 0x2f6   :  { %v5930_v57 = vmax.f32 %v5929_v60, %v5580_v31  ;;  %v3492_v38 = vadd.f32 %v9918_v11, %v3491_v63  ;;  %v7413_v29 = vpop.f32.mrb[154].mxu1  ;;  %v5925_v13 = vrot.slane %v5924_v35, 2  ;;  %v3500_v8 = vadd.f32 %v9918_v11, %v7412_v62 }
 0x2f7   :  { %v3494_v7 = vpop.f32.mrb[155].mxu1  ;;  %v5691_v3 = vrot.slane %v5690_v26, 2  ;;  %vm6102_vm10 = vcmp.gt.f32.partialorder %v5746_v41, -1.5e+38  ;;  %vm6103_vm12 = vcmp.gt.f32.partialorder %v5759_v58, -1.5e+38  ;;  %v5772_v20 = vmax.f32 %v5770_v33, %v5771_v1 }
 0x2f8   :  { %v5582_v5 = vadd.f32 %v9586_v30, %v3492_v38  ;;  %v5931_v19 = vmax.f32 %v5930_v57, %v5581_v59  ;;  %v3495_v39 = vadd.f32 %v9918_v11, %v3494_v7  ;;  %v5926_v40 = vmax.f32 %v5924_v35, %v5925_v13  ;;  %v10188_v30 = vpop.permute.xlu1 %5113 }
 0x2f9   :  { %v5692_v49 = vmax.f32 %v5690_v26, %v5691_v3  ;;  %v3503_v22 = vadd.f32 %v9918_v11, %v7413_v29  ;;  %v10755_v24 = vpack.c.bf16 %v10075_v28, %v10075_v28  ;;  %v5785_v9 = vmax.f32 %v5783_v43, %v5784_v23 }
 0x2fa   :  { %v5932_v2 = vmax.f32 %v5931_v19, %v5582_v5  ;;  %v5583_v4 = vadd.f32 %v9584_v16, %v3495_v39  ;;  %v5927_v14 = vrot.slane %v5926_v40, 1  ;;  %v6134_v6 = vsel %vm6102_vm10, %v5746_v41, 0.0  ;;  %v10194_v16 = vpop.permute.xlu0 %5158 }
 0x2fb   :  { %v6291_v54 = vunpack.c.l.b16 %v10755_v24  ;;  %v5693_v17 = vrot.slane %v5692_v49, 1  ;;  %v5584_v45 = vadd.f32 %v9760_v37, %v3500_v8  ;;  %v6292_v32 = vunpack.c.l.b16 %v6685_v52 }
 0x2fc   :  { %v5933_v33 = vmax.f32 %v5932_v2, %v5583_v4  ;;  %v7416_v47 = vpop.f32.mrb[156].mxu1  ;;  %v6686_v56 = vpack.c.bf16 %v6133_v53, %v6133_v53  ;;  %v6135_v28 = vsel %vm6103_vm12, %v5759_v58, 0.0  ;;  %v5928_v34 = vmax.f32 %v5926_v40, %v5927_v14  ;;  %v10201_v57 = vpop.permute.xlu1 %5123 }
 0x2fd   :  { %v3507_v43 = vpop.f32.mrb[157].mxu1  ;;  %vm6104_vm14 = vcmp.gt.f32.partialorder %v5772_v20, -1.5e+38  ;;  %v5694_v21 = vmax.f32 %v5692_v49, %v5693_v17  ;;  %v5585_v41 = vadd.f32 %v9817_v12, %v3503_v22  ;;  %v6687_v37 = vpack.c.bf16 %v6134_v6, %v6134_v6 }
 0x2fe   :  { %v5934_v31 = vmax.f32 %v5933_v33, %v5584_v45  ;;  %v7417_v60 = vpop.f32.mrb[158].mxu1  ;;  %vm6105_vm0 = vcmp.gt.f32.partialorder %v5785_v9, -1.5e+38  ;;  %vm6116_vm1 = vcmp.gt.f32.partialorder %v5928_v34, -1.5e+38  ;;  %v3508_v62 = vadd.f32 %v9918_v11, %v3507_v43  ;;  %v10204_v23 = vpop.permute.xlu0 %5168 }
 0x2ff   :  { %v3510_v42 = vpop.f32.mrb[159].mxu1  ;;  %v6688_v52 = vpack.c.bf16 %v6135_v28, %v6135_v28  ;;  %vm6098_vm3 = vcmp.gt.f32.partialorder %v5694_v21, -1.5e+38  ;;  %v6148_v1 = vsel %vm6116_vm1, %v5928_v34, 0.0  ;;  %v3516_v26 = vadd.f32 %v9918_v11, %v7416_v47 }
 0x300   :  { %v5935_v35 = vmax.f32 %v5934_v31, %v5585_v41  ;;  %v6130_v63 = vsel %vm6098_vm3, %v5694_v21, 0.0  ;;  %v6701_v58 = vpack.c.bf16 %v6148_v1, %v6148_v1  ;;  %v3511_v59 = vadd.f32 %v9918_v11, %v3510_v42  ;;  %v10216_v28 = vpop.permute.xlu1 %5133  ;;  %v10757_v42 = vld [vmem:[#allocation17_spill] sm:$0xff] }
 0x301   :  { %v6136_v12 = vsel %vm6104_vm14, %v5772_v20, 0.0  ;;  %v6137_v38 = vsel %vm6105_vm0, %v5785_v9, 0.0  ;;  %v6683_v29 = vpack.c.bf16 %v6130_v63, %v6130_v63  ;;  %v5586_v8 = vadd.f32 %v9772_v18, %v3508_v62 }
 0x302   :  { %v5936_v53 = vrot.slane %v5935_v35, 4  ;;  %v6308_v13 = vunpack.c.l.b16 %v6701_v58  ;;  %v3519_v7 = vadd.f32 %v9918_v11, %v7417_v60  ;;  %v5587_v3 = vadd.f32 %v9833_v51, %v3511_v59  ;;  %v10221_v41 = vpop.permute.xlu0 %5178 }
 0x303   :  { %v6293_v5 = vunpack.c.l.b16 %v6686_v56  ;;  %v6294_v19 = vunpack.c.l.b16 %v6687_v37  ;;  %v6290_v39 = vunpack.c.l.b16 %v6683_v29  ;;  %v6689_v2 = vpack.c.bf16 %v6136_v12, %v6136_v12  ;;  %v10758_v12 = vld [vmem:[#allocation13_spill] sm:$0xff] }
 0x304   :  { %v5937_v40 = vmax.f32 %v5935_v35, %v5936_v53  ;;  %v7420_v49 = vpop.f32.mrb[160].mxu1  ;;  %v6344_v20 = vsel %vm6324_vm7, %v6308_v13, %v10169_v46  ;;  %v5588_v22 = vadd.f32 %v9784_v27, %v3516_v26  ;;  %v5942_v4 = vmax.f32 %v5586_v8, %v5587_v3  ;;  %v10756_v27 = vld [vmem:[#allocation14_spill] sm:$0xff]  ;;  %v10236_v8 = vpop.permute.xlu1 %5143 }
 0x305   :  { %v3523_v24 = vpop.f32.mrb[161].mxu1  ;;  %v6690_v9 = vpack.c.bf16 %v6137_v38, %v6137_v38  ;;  %v6323_v51 = vsel %vm6322_vm5, %v6291_v54, %v6290_v39  ;;  %v6295_v17 = vunpack.c.l.b16 %v6688_v52  ;;  %v5589_v45 = vadd.f32 %v9853_v44, %v3519_v7  ;;  %v10226_v44 = vld [vmem:[%s10511_s5] ss:$0 sm:$0xff] }
 0x306   :  { %v5938_v14 = vrot.slane %v5937_v40, 2  ;;  %v3524_v18 = vadd.f32 %v9918_v11, %v3523_v24  ;;  %v7421_v6 = vpop.f32.mrb[162].mxu1  ;;  %v5943_v33 = vmax.f32 %v5942_v4, %v5588_v22  ;;  %v6325_v56 = vsel %vm6324_vm7, %v6292_v32, %v6323_v51  ;;  %v10759_v39 = vld [vmem:[#allocation19_spill] sm:$0xff] }
 0x307   :  { %v3526_v47 = vpop.f32.mrb[163].mxu1  ;;  %v6327_v21 = vsel %vm6326_vm9, %v6293_v5, %v6325_v56  ;;  %v6296_v31 = vunpack.c.l.b16 %v6689_v2  ;;  %v3532_v54 = vadd.f32 %v10226_v44, %v7420_v49  ;;  %v6297_v37 = vunpack.c.l.b16 %v6690_v9  ;;  %v10239_v5 = vpop.permute.xlu0 %5188 }
 0x308   :  { %v5939_v46 = vmax.f32 %v5937_v40, %v5938_v14  ;;  %v5590_v34 = vadd.f32 %v10756_v27, %v3524_v18  ;;  %v3527_v43 = vadd.f32 %v9918_v11, %v3526_v47  ;;  %v5944_v32 = vmax.f32 %v5943_v33, %v5589_v45  ;;  %v10760_v18 = vld [vmem:[#allocation16_spill] sm:$0xff]  ;;  %v10247_v47 = vpop.permute.xlu1 %5153 }
 0x309   :  { %v6329_v60 = vsel %vm6328_vm11, %v6294_v19, %v6327_v21  ;;  %v3535_v35 = vadd.f32 %v10226_v44, %v7421_v6  ;;  %v5592_v38 = vadd.f32 %v10758_v12, %v3532_v54 }
 0x30a   :  { %v5940_v62 = vrot.slane %v5939_v46, 1  ;;  %v5591_v52 = vadd.f32 %v10757_v42, %v3527_v43  ;;  %v6331_v11 = vsel %vm6330_vm13, %v6295_v17, %v6329_v60  ;;  %v5945_v1 = vmax.f32 %v5944_v32, %v5590_v34  ;;  %v10761_v17 = vld [vmem:[#allocation21_spill] sm:$0xff]  ;;  %v10763_v32 = vld [vmem:[#allocation23_spill] sm:$0xff] }
 0x30b   :  { %v6333_v63 = vsel %vm6332_vm15, %v6296_v31, %v6331_v11  ;;  %v5593_v40 = vadd.f32 %v10759_v39, %v3535_v35  ;;  %v10251_v21 = vpop.permute.xlu0 %5198  ;;  %v10764_v35 = vld [vmem:[#allocation18_spill] sm:$0xff] }
 0x30c   :  { %v5941_v58 = vmax.f32 %v5939_v46, %v5940_v62  ;;  %v7424_v26 = vpop.f32.mrb[164].mxu1  ;;  %v6335_v59 = vsel %vm6334_vm2, %v6297_v37, %v6333_v63  ;;  %v5946_v29 = vmax.f32 %v5945_v1, %v5591_v52  ;;  %v10762_v46 = vld [vmem:[#allocation15_spill] sm:$0xff] }
 0x30d   :  { %v3539_v53 = vpop.f32.mrb[165].mxu1  ;;  %v6357_v13 = vpack.c.b16 %v6335_v59, %v6335_v59  ;;  %v3548_v4 = vadd.f32 %v10226_v44, %v7424_v26  ;;  %v10258_v59 = vpop.permute.xlu1 %5163 }
 0x30e   :  { %vm6117_vm4 = vcmp.gt.f32.partialorder %v5941_v58, -1.5e+38  ;;  %v3540_v7 = vadd.f32 %v10226_v44, %v3539_v53  ;;  %v7425_v3 = vpop.f32.mrb[166].mxu1  ;;  %v5947_v49 = vmax.f32 %v5946_v29, %v5592_v38  ;;  %v10765_v29 = vld [vmem:[#allocation25_spill] sm:$0xff] }
 0x30f   :  { %v6149_v19 = vsel %vm6117_vm4, %v5941_v58, 0.0  ;;  %v3542_v2 = vpop.f32.mrb[167].mxu1  ;;  %6365 = vst [vmem:[#allocation2] sm:$0xf] %v6357_v13  ;;  %v3551_v51 = vadd.f32 %v10226_v44, %v7425_v3  ;;  %v5596_v27 = vadd.f32 %v10762_v46, %v3548_v4  ;;  %v10262_v13 = vpop.permute.xlu0 %5208  ;;  %v10766_v3 = vld [vmem:[#allocation20_spill] sm:$0xff] }
 0x310   :  { %v6702_v22 = vpack.c.bf16 %v6149_v19, %v6149_v19  ;;  %v3543_v24 = vadd.f32 %v10226_v44, %v3542_v2  ;;  %v5948_v9 = vmax.f32 %v5947_v49, %v5593_v40  ;;  %v5594_v6 = vadd.f32 %v10760_v18, %v3540_v7 }
 0x311   :  { %v5597_v60 = vadd.f32 %v10763_v32, %v3551_v51  ;;  %v10769_v32 = vld [vmem:[#allocation29_spill] sm:$0xff] }
 0x312   :  { %v6309_v14 = vunpack.c.l.b16 %v6702_v22  ;;  %v5595_v45 = vadd.f32 %v10761_v17, %v3543_v24  ;;  %v5949_v33 = vrot.slane %v5948_v9, 4  ;;  %v10767_v22 = vld [vmem:[#allocation27_spill] sm:$0xff] }
 0x313   :  { %v10271_v46 = vpop.permute.xlu0 %5218 }
 0x314   :  { %v6345_v56 = vsel %vm6326_vm9, %v6309_v14, %v6344_v20  ;;  %v5955_v34 = vmax.f32 %v5594_v6, %v5595_v45  ;;  %v7428_v43 = vpop.f32.mrb[168].mxu1  ;;  %v5950_v31 = vmax.f32 %v5948_v9, %v5949_v33  ;;  %v10267_v6 = vpop.permute.xlu1 %5173 }
 0x315   :  { %v3555_v54 = vpop.f32.mrb[169].mxu1  ;;  %v3564_v1 = vadd.f32 %v10226_v44, %v7428_v43  ;;  %v10768_v43 = vld [vmem:[#allocation22_spill] sm:$0xff] }
 0x316   :  { %v5956_v37 = vmax.f32 %v5955_v34, %v5596_v27  ;;  %v3556_v62 = vadd.f32 %v10226_v44, %v3555_v54  ;;  %v7429_v42 = vpop.f32.mrb[170].mxu1  ;;  %v5951_v52 = vrot.slane %v5950_v31, 2 }
 0x317   :  { %v3558_v11 = vpop.f32.mrb[171].mxu1  ;;  %v3567_v38 = vadd.f32 %v10226_v44, %v7429_v42  ;;  %v5600_v19 = vadd.f32 %v10766_v3, %v3564_v1  ;;  %v10770_v42 = vld [vmem:[#allocation24_spill] sm:$0xff] }
 0x318   :  { %v5598_v20 = vadd.f32 %v10764_v35, %v3556_v62  ;;  %v5957_v63 = vmax.f32 %v5956_v37, %v5597_v60  ;;  %v3559_v58 = vadd.f32 %v10226_v44, %v3558_v11  ;;  %v5952_v26 = vmax.f32 %v5950_v31, %v5951_v52 }
 0x319   :  { %v5601_v4 = vadd.f32 %v10767_v22, %v3567_v38 }
 0x31a   :  { %v5958_v12 = vmax.f32 %v5957_v63, %v5598_v20  ;;  %v5599_v53 = vadd.f32 %v10765_v29, %v3559_v58  ;;  %v5953_v7 = vrot.slane %v5952_v26, 1  ;;  %v10278_v63 = vpop.permute.xlu1 %5183 }
 0x31c   :  { %v5959_v39 = vmax.f32 %v5958_v12, %v5599_v53  ;;  %v7432_v40 = vpop.f32.mrb[172].mxu1  ;;  %v5954_v49 = vmax.f32 %v5952_v26, %v5953_v7  ;;  %v10771_v26 = vld [vmem:[#allocation31_spill] sm:$0xff]  ;;  %v10282_v7 = vpop.permute.xlu0 %5228 }
 0x31d   :  { %v3571_v2 = vpop.f32.mrb[173].mxu1  ;;  %v3580_v45 = vadd.f32 %v10226_v44, %v7432_v40  ;;  %v10772_v40 = vld [vmem:[#allocation26_spill] sm:$0xff] }
 0x31e   :  { %v5960_v24 = vmax.f32 %v5959_v39, %v5600_v19  ;;  %v3572_v9 = vadd.f32 %v10226_v44, %v3571_v2  ;;  %v7433_v14 = vpop.f32.mrb[174].mxu1  ;;  %vm6118_vm6 = vcmp.gt.f32.partialorder %v5954_v49, -1.5e+38 }
 0x31f   :  { %v3574_v18 = vpop.f32.mrb[175].mxu1  ;;  %v6150_v51 = vsel %vm6118_vm6, %v5954_v49, 0.0  ;;  %v3583_v54 = vadd.f32 %v10226_v44, %v7433_v14  ;;  %v5604_v52 = vadd.f32 %v10770_v42, %v3580_v45 }
 0x320   :  { %v5961_v17 = vmax.f32 %v5960_v24, %v5601_v4  ;;  %v3575_v33 = vadd.f32 %v10226_v44, %v3574_v18  ;;  %v6703_v27 = vpack.c.bf16 %v6150_v51, %v6150_v51  ;;  %v5602_v31 = vadd.f32 %v10768_v43, %v3572_v9  ;;  %v10773_v9 = vld [vmem:[#allocation33_spill] sm:$0xff]  ;;  %v10289_v18 = vpop.permute.xlu1 %5193 }
 0x321   :  { %v5605_v12 = vadd.f32 %v10771_v26, %v3583_v54 }
 0x322   :  { %v5962_v34 = vrot.slane %v5961_v17, 4  ;;  %v5603_v60 = vadd.f32 %v10769_v32, %v3575_v33  ;;  %v6310_v37 = vunpack.c.l.b16 %v6703_v27 }
 0x324   :  { %v5963_v62 = vmax.f32 %v5961_v17, %v5962_v34  ;;  %v5968_v11 = vmax.f32 %v5602_v31, %v5603_v60  ;;  %v7436_v1 = vpop.f32.mrb[176].mxu1  ;;  %v6346_v35 = vsel %vm6328_vm11, %v6310_v37, %v6345_v56  ;;  %v10774_v17 = vld [vmem:[#allocation28_spill] sm:$0xff]  ;;  %v10292_v34 = vpop.permute.xlu0 %5238 }
 0x325   :  { %v3587_v20 = vpop.f32.mrb[177].mxu1  ;;  %v3596_v3 = vadd.f32 %v10226_v44, %v7436_v1 }
 0x326   :  { %v5964_v58 = vrot.slane %v5963_v62, 2  ;;  %v5969_v38 = vmax.f32 %v5968_v11, %v5604_v52  ;;  %v3588_v29 = vadd.f32 %v10226_v44, %v3587_v20  ;;  %v7437_v53 = vpop.f32.mrb[178].mxu1 }
 0x327   :  { %v3590_v19 = vpop.f32.mrb[179].mxu1  ;;  %v3599_v24 = vadd.f32 %v10226_v44, %v7437_v53  ;;  %v5608_v45 = vadd.f32 %v10774_v17, %v3596_v3 }
 0x328   :  { %v5965_v39 = vmax.f32 %v5963_v62, %v5964_v58  ;;  %v5606_v49 = vadd.f32 %v10772_v40, %v3588_v29  ;;  %v5970_v2 = vmax.f32 %v5969_v38, %v5605_v12  ;;  %v3591_v56 = vadd.f32 %v10226_v44, %v3590_v19  ;;  %v10299_v58 = vpop.permute.xlu1 %5203  ;;  %v10775_v38 = vld [vmem:[#allocation30_spill] sm:$0xff]  ;;  %v10303_v53 = vpop.permute.xlu0 %5248  ;;  %v10776_v19 = vld [vmem:[#allocation32_spill] sm:$0xff] }
 0x329   :  { %v5609_v31 = vadd.f32 %v10088_v15, %v3599_v24 }
 0x32a   :  { %v5966_v22 = vrot.slane %v5965_v39, 1  ;;  %v5971_v4 = vmax.f32 %v5970_v2, %v5606_v49  ;;  %v5607_v14 = vadd.f32 %v10773_v9, %v3591_v56 }
 0x32c   :  { %v5967_v51 = vmax.f32 %v5965_v39, %v5966_v22  ;;  %v5972_v33 = vmax.f32 %v5971_v4, %v5607_v14  ;;  %v7440_v27 = vpop.f32.mrb[180].mxu1  ;;  %v10310_v17 = vpop.permute.xlu1 %5213 }
 0x32d   :  { %v3603_v43 = vpop.f32.mrb[181].mxu1  ;;  %v3612_v11 = vadd.f32 %v10226_v44, %v7440_v27 }
 0x32e   :  { %vm6119_vm8 = vcmp.gt.f32.partialorder %v5967_v51, -1.5e+38  ;;  %v5973_v54 = vmax.f32 %v5972_v33, %v5608_v45  ;;  %v3604_v32 = vadd.f32 %v10226_v44, %v3603_v43  ;;  %v7441_v60 = vpop.f32.mrb[182].mxu1  ;;  %v10777_v33 = vld [vmem:[#allocation34_spill] sm:$0xff] }
 0x32f   :  { %v6151_v37 = vsel %vm6119_vm8, %v5967_v51, 0.0  ;;  %v3606_v62 = vpop.f32.mrb[183].mxu1  ;;  %v3615_v20 = vadd.f32 %v10226_v44, %v7441_v60  ;;  %v5612_v39 = vadd.f32 %v10776_v19, %v3612_v11 }
 0x330   :  { %v6704_v42 = vpack.c.bf16 %v6151_v37, %v6151_v37  ;;  %v5974_v52 = vmax.f32 %v5973_v54, %v5609_v31  ;;  %v3607_v1 = vadd.f32 %v10226_v44, %v3606_v62  ;;  %v5610_v15 = vadd.f32 %v10775_v38, %v3604_v32  ;;  %v10778_v62 = vld [vmem:[#allocation36_spill] sm:$0xff] }
 0x331   :  { %v5613_v4 = vadd.f32 %v10140_v55, %v3615_v20  ;;  %v10319_v20 = vpop.permute.xlu1 %5223 }
 0x332   :  { %v6311_v26 = vunpack.c.l.b16 %v6704_v42  ;;  %v5975_v12 = vrot.slane %v5974_v52, 4  ;;  %v5611_v29 = vadd.f32 %v10123_v48, %v3607_v1 }
 0x334   :  { %v5976_v3 = vmax.f32 %v5974_v52, %v5975_v12  ;;  %v5981_v40 = vmax.f32 %v5610_v15, %v5611_v29  ;;  %v7444_v49 = vpop.f32.mrb[184].mxu1  ;;  %v6347_v2 = vsel %vm6330_vm13, %v6311_v26, %v6346_v35  ;;  %v10314_v35 = vpop.permute.xlu0 %5258 }
 0x335   :  { %v3619_v56 = vpop.f32.mrb[185].mxu1  ;;  %v3628_v51 = vadd.f32 %v10226_v44, %v7444_v49 }
 0x336   :  { %v5977_v22 = vrot.slane %v5976_v3, 2  ;;  %v5982_v24 = vmax.f32 %v5981_v40, %v5612_v39  ;;  %v3620_v9 = vadd.f32 %v10226_v44, %v3619_v56  ;;  %v7445_v14 = vpop.f32.mrb[186].mxu1 }
 0x337   :  { %v3622_v48 = vpop.f32.mrb[187].mxu1  ;;  %v3631_v55 = vadd.f32 %v10226_v44, %v7445_v14  ;;  %v5616_v42 = vadd.f32 %v10778_v62, %v3628_v51  ;;  %v10779_v51 = vld [vmem:[#allocation35_spill] sm:$0xff] }
 0x338   :  { %v5978_v45 = vmax.f32 %v5976_v3, %v5977_v22  ;;  %v5614_v27 = vadd.f32 %v10777_v33, %v3620_v9  ;;  %v5983_v43 = vmax.f32 %v5982_v24, %v5613_v4  ;;  %v3623_v31 = vadd.f32 %v10226_v44, %v3622_v48  ;;  %v10323_v29 = vpop.permute.xlu0 %5268  ;;  %v10330_v9 = vpop.permute.xlu1 %5233 }
 0x339   :  { %v5617_v26 = vadd.f32 %v10171_v10, %v3631_v55 }
 0x33a   :  { %v5979_v54 = vrot.slane %v5978_v45, 1  ;;  %v5984_v32 = vmax.f32 %v5983_v43, %v5614_v27  ;;  %v5615_v60 = vadd.f32 %v10156_v25, %v3623_v31 }
 0x33c   :  { %v5980_v37 = vmax.f32 %v5978_v45, %v5979_v54  ;;  %v5985_v52 = vmax.f32 %v5984_v32, %v5615_v60  ;;  %v7448_v11 = vpop.f32.mrb[188].mxu1  ;;  %v10334_v43 = vpop.permute.xlu0 %5278 }
 0x33d   :  { %v3635_v1 = vpop.f32.mrb[189].mxu1  ;;  %v3644_v40 = vadd.f32 %v10226_v44, %v7448_v11 }
 0x33e   :  { %vm6120_vm10 = vcmp.gt.f32.partialorder %v5980_v37, -1.5e+38  ;;  %v5986_v12 = vmax.f32 %v5985_v52, %v5616_v42  ;;  %v3636_v38 = vadd.f32 %v10226_v44, %v3635_v1  ;;  %v7449_v15 = vpop.f32.mrb[190].mxu1 }
 0x33f   :  { %v6152_v3 = vsel %vm6120_vm10, %v5980_v37, 0.0  ;;  %v3638_v19 = vpop.f32.mrb[191].mxu1  ;;  %v3647_v56 = vadd.f32 %v10226_v44, %v7449_v15  ;;  %v5620_v48 = vadd.f32 %v10779_v51, %v3644_v40 }
 0x340   :  { %v6705_v25 = vpack.c.bf16 %v6152_v3, %v6152_v3  ;;  %v5987_v39 = vmax.f32 %v5986_v12, %v5617_v26  ;;  %v3639_v49 = vadd.f32 %v10226_v44, %v3638_v19  ;;  %v5618_v10 = vadd.f32 %v10090_v36, %v3636_v38  ;;  %v10345_v38 = vpop.permute.xlu0 %5288 }
 0x341   :  { %v5621_v32 = vadd.f32 %v10201_v57, %v3647_v56 }
 0x342   :  { %v6312_v22 = vunpack.c.l.b16 %v6705_v25  ;;  %v5988_v4 = vrot.slane %v5987_v39, 4  ;;  %v5619_v24 = vadd.f32 %v10188_v30, %v3639_v49 }
 0x344   :  { %v5989_v14 = vmax.f32 %v5987_v39, %v5988_v4  ;;  %v5994_v45 = vmax.f32 %v5618_v10, %v5619_v24  ;;  %v7452_v33 = vpop.f32.mrb[192].mxu1  ;;  %v6348_v27 = vsel %vm6332_vm15, %v6312_v22, %v6347_v2  ;;  %v10341_v2 = vpop.permute.xlu1 %5243 }
 0x345   :  { %v3651_v31 = vpop.f32.mrb[193].mxu1  ;;  %v3660_v30 = vadd.f32 %v10226_v44, %v7452_v33  ;;  %v10354_v51 = vpop.permute.xlu0 %5308 }
 0x346   :  { %v5990_v54 = vrot.slane %v5989_v14, 2  ;;  %v5995_v55 = vmax.f32 %v5994_v45, %v5620_v48  ;;  %v3652_v36 = vadd.f32 %v10226_v44, %v3651_v31  ;;  %v7453_v60 = vpop.f32.mrb[194].mxu1 }
 0x347   :  { %v3654_v37 = vpop.f32.mrb[195].mxu1  ;;  %v3663_v12 = vadd.f32 %v10226_v44, %v7453_v60  ;;  %v5624_v3 = vadd.f32 %v10161_v61, %v3660_v30 }
 0x348   :  { %v5991_v62 = vmax.f32 %v5989_v14, %v5990_v54  ;;  %v5622_v42 = vadd.f32 %v10146_v50, %v3652_v36  ;;  %v5996_v52 = vmax.f32 %v5995_v55, %v5621_v32  ;;  %v3655_v11 = vadd.f32 %v10226_v44, %v3654_v37  ;;  %v10350_v10 = vpop.permute.xlu1 %5253 }
 0x349   :  { %v5625_v50 = vadd.f32 %v10236_v8, %v3663_v12 }
 0x34a   :  { %v5992_v1 = vrot.slane %v5991_v62, 1  ;;  %v5997_v26 = vmax.f32 %v5996_v52, %v5622_v42  ;;  %v5623_v57 = vadd.f32 %v10216_v28, %v3655_v11 }
 0x34c   :  { %v5993_v15 = vmax.f32 %v5991_v62, %v5992_v1  ;;  %v5998_v19 = vmax.f32 %v5997_v26, %v5623_v57  ;;  %v7456_v25 = vpop.f32.mrb[196].mxu1  ;;  %v10361_v62 = vpop.permute.xlu1 %5263 }
 0x34d   :  { %v3667_v39 = vpop.f32.mrb[197].mxu1  ;;  %v3676_v14 = vadd.f32 %v10226_v44, %v7456_v25  ;;  %v10365_v26 = vpop.permute.xlu0 %5348 }
 0x34e   :  { %vm6121_vm12 = vcmp.gt.f32.partialorder %v5993_v15, -1.5e+38  ;;  %v5999_v40 = vmax.f32 %v5998_v19, %v5624_v3  ;;  %v3668_v49 = vadd.f32 %v10226_v44, %v3667_v39  ;;  %v7457_v56 = vpop.f32.mrb[198].mxu1 }
 0x34f   :  { %v6153_v22 = vsel %vm6121_vm12, %v5993_v15, 0.0  ;;  %v3670_v4 = vpop.f32.mrb[199].mxu1  ;;  %v3679_v48 = vadd.f32 %v10226_v44, %v7457_v56  ;;  %v5628_v32 = vadd.f32 %v10194_v16, %v3676_v14 }
 0x350   :  { %v6706_v28 = vpack.c.bf16 %v6153_v22, %v6153_v22  ;;  %v6000_v24 = vmax.f32 %v5999_v40, %v5625_v50  ;;  %v3671_v61 = vadd.f32 %v10226_v44, %v3670_v4  ;;  %v5626_v33 = vadd.f32 %v10178_v0, %v3668_v49  ;;  %v10372_v25 = vpop.permute.xlu1 %5273 }
 0x351   :  { %v5629_v52 = vadd.f32 %v10258_v59, %v3679_v48  ;;  %v10375_v49 = vpop.permute.xlu0 %5318 }
 0x352   :  { %v6313_v45 = vunpack.c.l.b16 %v6706_v28  ;;  %v6001_v8 = vrot.slane %v6000_v24, 4  ;;  %v5627_v31 = vadd.f32 %v10247_v47, %v3671_v61 }
 0x354   :  { %v6002_v54 = vmax.f32 %v6000_v24, %v6001_v8  ;;  %v6007_v55 = vmax.f32 %v5626_v33, %v5627_v31  ;;  %v7460_v36 = vpop.f32.mrb[200].mxu1  ;;  %v6349_v60 = vsel %vm6334_vm2, %v6313_v45, %v6348_v27 }
 0x355   :  { %v3683_v30 = vpop.f32.mrb[201].mxu1  ;;  %v6359_v37 = vpack.c.b16 %v6349_v60, %v6349_v60  ;;  %v3692_v16 = vadd.f32 %v10226_v44, %v7460_v36 }
 0x356   :  { %v6003_v42 = vrot.slane %v6002_v54, 2  ;;  %v6008_v11 = vmax.f32 %v6007_v55, %v5628_v32  ;;  %v3684_v1 = vadd.f32 %v10226_v44, %v3683_v30  ;;  %v7461_v0 = vpop.f32.mrb[202].mxu1 }
 0x357   :  { %v3686_v47 = vpop.f32.mrb[203].mxu1  ;;  %6367 = vst [vmem:[#allocation2 + $0x8] sm:$0xf] %v6359_v37  ;;  %v3695_v19 = vadd.f32 %v10226_v44, %v7461_v0  ;;  %v5632_v39 = vadd.f32 %v10221_v41, %v3692_v16  ;;  %v10381_v41 = vpop.permute.xlu1 %5283 }
 0x358   :  { %v5630_v12 = vadd.f32 %v10204_v23, %v3684_v1  ;;  %v6009_v27 = vmax.f32 %v6008_v11, %v5629_v52  ;;  %v3687_v57 = vadd.f32 %v10226_v44, %v3686_v47  ;;  %v6004_v15 = vmax.f32 %v6002_v54, %v6003_v42  ;;  %v10386_v54 = vpop.permute.xlu0 %5393 }
 0x359   :  { %v5633_v23 = vadd.f32 %v10278_v63, %v3695_v19 }
 0x35a   :  { %v6010_v3 = vmax.f32 %v6009_v27, %v5630_v12  ;;  %v5631_v59 = vadd.f32 %v10267_v6, %v3687_v57  ;;  %v6005_v56 = vrot.slane %v6004_v15, 1 }
 0x35c   :  { %v6011_v50 = vmax.f32 %v6010_v3, %v5631_v59  ;;  %v7464_v40 = vpop.f32.mrb[204].mxu1  ;;  %v6006_v45 = vmax.f32 %v6004_v15, %v6005_v56  ;;  %v10396_v27 = vpop.permute.xlu0 %5323 }
 0x35d   :  { %v3699_v22 = vpop.f32.mrb[205].mxu1  ;;  %v3708_v6 = vadd.f32 %v10226_v44, %v7464_v40 }
 0x35e   :  { %v6012_v4 = vmax.f32 %v6011_v50, %v5632_v39  ;;  %v3700_v28 = vadd.f32 %v10226_v44, %v3699_v22  ;;  %v7465_v24 = vpop.f32.mrb[206].mxu1  ;;  %vm6122_vm14 = vcmp.gt.f32.partialorder %v6006_v45, -1.5e+38 }
 0x35f   :  { %v3702_v14 = vpop.f32.mrb[207].mxu1  ;;  %v3711_v31 = vadd.f32 %v10226_v44, %v7465_v24  ;;  %v5636_v55 = vadd.f32 %v10251_v21, %v3708_v6  ;;  %v6154_v57 = vsel %vm6122_vm14, %v6006_v45, 0.0 }
 0x360   :  { %v6013_v61 = vmax.f32 %v6012_v4, %v5633_v23  ;;  %v3703_v48 = vadd.f32 %v10226_v44, %v3702_v14  ;;  %v5634_v33 = vadd.f32 %v10239_v5, %v3700_v28  ;;  %v6707_v56 = vpack.c.bf16 %v6154_v57, %v6154_v57  ;;  %v10405_v14 = vpop.permute.xlu0 %5363 }
 0x361   :  { %v5637_v42 = vadd.f32 %v10299_v58, %v3711_v31 }
 0x362   :  { %v6014_v8 = vrot.slane %v6013_v61, 4  ;;  %v5635_v63 = vadd.f32 %v10289_v18, %v3703_v48  ;;  %v10392_v18 = vpop.permute.xlu1 %5293 }
 0x364   :  { %v6015_v32 = vmax.f32 %v6013_v61, %v6014_v8  ;;  %v6020_v36 = vmax.f32 %v5634_v33, %v5635_v63  ;;  %v7468_v60 = vpop.f32.mrb[208].mxu1  ;;  %v6314_v8 = vunpack.c.l.b16 %v6707_v56 }
 0x365   :  { %v3715_v30 = vpop.f32.mrb[209].mxu1  ;;  %v3724_v1 = vadd.f32 %v10226_v44, %v7468_v60 }
 0x366   :  { %v6016_v37 = vrot.slane %v6015_v32, 2  ;;  %v6021_v52 = vmax.f32 %v6020_v36, %v5636_v55  ;;  %v3716_v11 = vadd.f32 %v10226_v44, %v3715_v30  ;;  %v7469_v5 = vpop.f32.mrb[210].mxu1 }
 0x367   :  { %v3718_v0 = vpop.f32.mrb[211].mxu1  ;;  %v3727_v3 = vadd.f32 %v10226_v44, %v7469_v5  ;;  %v5640_v39 = vadd.f32 %v10271_v46, %v3724_v1 }
 0x368   :  { %v6017_v47 = vmax.f32 %v6015_v32, %v6016_v37  ;;  %v5638_v16 = vadd.f32 %v10262_v13, %v3716_v11  ;;  %v6022_v21 = vmax.f32 %v6021_v52, %v5637_v42  ;;  %v3719_v12 = vadd.f32 %v10226_v44, %v3718_v0  ;;  %v10401_v13 = vpop.permute.xlu1 %5313  ;;  %v10416_v52 = vpop.permute.xlu0 %5403 }
 0x369   :  { %v5641_v23 = vadd.f32 %v10319_v20, %v3727_v3 }
 0x36a   :  { %v6018_v15 = vrot.slane %v6017_v47, 1  ;;  %v6023_v58 = vmax.f32 %v6022_v21, %v5638_v16  ;;  %v5639_v19 = vadd.f32 %v10310_v17, %v3719_v12 }
 0x36c   :  { %v6019_v59 = vmax.f32 %v6017_v47, %v6018_v15  ;;  %v6024_v50 = vmax.f32 %v6023_v58, %v5639_v19  ;;  %v7472_v40 = vpop.f32.mrb[212].mxu1  ;;  %v10412_v55 = vpop.permute.xlu1 %5353 }
 0x36d   :  { %v3731_v22 = vpop.f32.mrb[213].mxu1  ;;  %v3740_v46 = vadd.f32 %v10226_v44, %v7472_v40 }
 0x36e   :  { %vm6123_vm0 = vcmp.gt.f32.partialorder %v6019_v59, -1.5e+38  ;;  %v6025_v4 = vmax.f32 %v6024_v50, %v5640_v39  ;;  %v3732_v28 = vadd.f32 %v10226_v44, %v3731_v22  ;;  %v7473_v24 = vpop.f32.mrb[214].mxu1 }
 0x36f   :  { %v6155_v61 = vsel %vm6123_vm0, %v6019_v59, 0.0  ;;  %v3734_v17 = vpop.f32.mrb[215].mxu1  ;;  %v3743_v33 = vadd.f32 %v10226_v44, %v7473_v24  ;;  %v5644_v30 = vadd.f32 %v10292_v34, %v3740_v46  ;;  %v10427_v59 = vpop.permute.xlu0 %5333 }
 0x370   :  { %v6708_v6 = vpack.c.bf16 %v6155_v61, %v6155_v61  ;;  %v6026_v48 = vmax.f32 %v6025_v4, %v5641_v23  ;;  %v3735_v45 = vadd.f32 %v10226_v44, %v3734_v17  ;;  %v5642_v20 = vadd.f32 %v10282_v7, %v3732_v28  ;;  %v10423_v15 = vpop.permute.xlu1 %5388 }
 0x371   :  { %v5645_v1 = vadd.f32 %v10341_v2, %v3743_v33 }
 0x372   :  { %v6315_v31 = vunpack.c.l.b16 %v6708_v6  ;;  %v6027_v63 = vrot.slane %v6026_v48, 4  ;;  %v5643_v32 = vadd.f32 %v10330_v9, %v3735_v45 }
 0x373   :  { %v5299_v46 = vpop.permute.xlu0 %5298 }
 0x374   :  { %v6350_v36 = vsel %vm6322_vm5, %v6315_v31, %v6314_v8  ;;  %v6028_v60 = vmax.f32 %v6026_v48, %v6027_v63  ;;  %v6033_v37 = vmax.f32 %v5642_v20, %v5643_v32  ;;  %v7476_v42 = vpop.f32.mrb[216].mxu1  ;;  %v10432_v17 = vpop.permute.xlu1 %5358 }
 0x375   :  { %v3747_v11 = vpop.f32.mrb[217].mxu1  ;;  %v3756_v9 = vadd.f32 %v10226_v44, %v7476_v42 }
 0x376   :  { %v6029_v5 = vrot.slane %v6028_v60, 2  ;;  %v6034_v0 = vmax.f32 %v6033_v37, %v5644_v30  ;;  %v3748_v7 = vadd.f32 %v10226_v44, %v3747_v11  ;;  %v7477_v47 = vpop.f32.mrb[218].mxu1 }
 0x377   :  { %v3750_v16 = vpop.f32.mrb[219].mxu1  ;;  %v3759_v19 = vadd.f32 %v10226_v44, %v7477_v47  ;;  %v5648_v50 = vadd.f32 %v10314_v35, %v3756_v9 }
 0x378   :  { %v6030_v21 = vmax.f32 %v6028_v60, %v6029_v5  ;;  %v5646_v12 = vadd.f32 %v10303_v53, %v3748_v7  ;;  %v6035_v57 = vmax.f32 %v6034_v0, %v5645_v1  ;;  %v3751_v34 = vadd.f32 %v10226_v44, %v3750_v16  ;;  %v10441_v42 = vpop.permute.xlu1 %5398 }
 0x379   :  { %v5649_v53 = vadd.f32 %v10361_v62, %v3759_v19 }
 0x37a   :  { %v6031_v58 = vrot.slane %v6030_v21, 1  ;;  %v6036_v3 = vmax.f32 %v6035_v57, %v5646_v12  ;;  %v5647_v2 = vadd.f32 %v10350_v10, %v3751_v34 }
 0x37c   :  { %v6032_v39 = vmax.f32 %v6030_v21, %v6031_v58  ;;  %v6037_v40 = vmax.f32 %v6036_v3, %v5647_v2  ;;  %v7480_v56 = vpop.f32.mrb[220].mxu1  ;;  %v5329_v34 = vpop.permute.xlu1 %5328 }
 0x37d   :  { %v3763_v22 = vpop.f32.mrb[221].mxu1  ;;  %v3772_v48 = vadd.f32 %v10226_v44, %v7480_v56 }
 0x37e   :  { %vm6124_vm5 = vcmp.gt.f32.partialorder %v6032_v39, -1.5e+38  ;;  %v6038_v23 = vmax.f32 %v6037_v40, %v5648_v50  ;;  %v3764_v4 = vadd.f32 %v10226_v44, %v3763_v22  ;;  %v7481_v28 = vpop.f32.mrb[222].mxu1 }
 0x37f   :  { %v6156_v24 = vsel %vm6124_vm5, %v6032_v39, 0.0  ;;  %v3766_v61 = vpop.f32.mrb[223].mxu1  ;;  %v3775_v45 = vadd.f32 %v10226_v44, %v7481_v28  ;;  %v5652_v32 = vadd.f32 %v10334_v43, %v3772_v48 }
 0x380   :  { %v6709_v10 = vpack.c.bf16 %v6156_v24, %v6156_v24  ;;  %v6039_v6 = vmax.f32 %v6038_v23, %v5649_v53  ;;  %v3767_v35 = vadd.f32 %v10226_v44, %v3766_v61  ;;  %v5650_v62 = vadd.f32 %v10323_v29, %v3764_v4  ;;  %v5339_v29 = vpop.permute.xlu0 %5338 }
 0x381   :  { %v5653_v5 = vadd.f32 %v10381_v41, %v3775_v45 }
 0x382   :  { %v6316_v8 = vunpack.c.l.b16 %v6709_v10  ;;  %v6040_v33 = vrot.slane %v6039_v6, 4  ;;  %v5651_v31 = vadd.f32 %v10372_v25, %v3767_v35 }
 0x384   :  { %v6351_v63 = vsel %vm6324_vm7, %v6316_v8, %v6350_v36  ;;  %v6041_v20 = vmax.f32 %v6039_v6, %v6040_v33  ;;  %v6046_v60 = vmax.f32 %v5650_v62, %v5651_v31  ;;  %v7484_v30 = vpop.f32.mrb[224].mxu1  ;;  %v5304_v39 = vpop.permute.xlu0 %5303 }
 0x385   :  { %v3779_v37 = vpop.f32.mrb[225].mxu1  ;;  %v3788_v25 = vadd.f32 %v10226_v44, %v7484_v30 }
 0x386   :  { %v6042_v11 = vrot.slane %v6041_v20, 2  ;;  %v6047_v1 = vmax.f32 %v6046_v60, %v5652_v32  ;;  %v3780_v0 = vadd.f32 %v10226_v44, %v3779_v37  ;;  %v7485_v7 = vpop.f32.mrb[226].mxu1 }
 0x387   :  { %v3782_v47 = vpop.f32.mrb[227].mxu1  ;;  %v3791_v57 = vadd.f32 %v10226_v44, %v7485_v7  ;;  %v5656_v3 = vadd.f32 %v5299_v46, %v3788_v25  ;;  %v5369_v46 = vpop.permute.xlu1 %5368 }
 0x388   :  { %v6043_v36 = vmax.f32 %v6041_v20, %v6042_v11  ;;  %v5654_v9 = vadd.f32 %v10345_v38, %v3780_v0  ;;  %v6048_v43 = vmax.f32 %v6047_v1, %v5653_v5  ;;  %v3783_v16 = vadd.f32 %v10226_v44, %v3782_v47 }
 0x389   :  { %v5657_v40 = vadd.f32 %v5304_v39, %v3791_v57 }
 0x38a   :  { %v6044_v21 = vrot.slane %v6043_v36, 1  ;;  %v6049_v12 = vmax.f32 %v6048_v43, %v5654_v9  ;;  %v5655_v41 = vadd.f32 %v10392_v18, %v3783_v16 }
 0x38b   :  { %v10462_v7 = vpop.permute.xlu1 %5408 }
 0x38c   :  { %v6045_v58 = vmax.f32 %v6043_v36, %v6044_v21  ;;  %v6050_v19 = vmax.f32 %v6049_v12, %v5655_v41  ;;  %v7488_v2 = vpop.f32.mrb[228].mxu1  ;;  %v5344_v21 = vpop.permute.xlu0 %5343 }
 0x38d   :  { %v3795_v50 = vpop.f32.mrb[229].mxu1  ;;  %v3804_v24 = vadd.f32 %v10226_v44, %v7488_v2 }
 0x38e   :  { %vm6125_vm7 = vcmp.gt.f32.partialorder %v6045_v58, -1.5e+38  ;;  %v6051_v56 = vmax.f32 %v6050_v19, %v5656_v3  ;;  %v3796_v38 = vadd.f32 %v10226_v44, %v3795_v50  ;;  %v7489_v22 = vpop.f32.mrb[230].mxu1 }
 0x38f   :  { %v6157_v53 = vsel %vm6125_vm7, %v6045_v58, 0.0  ;;  %v3798_v23 = vpop.f32.mrb[231].mxu1  ;;  %v3807_v61 = vadd.f32 %v10226_v44, %v7489_v22  ;;  %v5660_v33 = vadd.f32 %v10375_v49, %v3804_v24  ;;  %v5374_v3 = vpop.permute.xlu1 %5373 }
 0x390   :  { %v6710_v4 = vpack.c.bf16 %v6157_v53, %v6157_v53  ;;  %v6052_v28 = vmax.f32 %v6051_v56, %v5657_v40  ;;  %v3799_v18 = vadd.f32 %v10226_v44, %v3798_v23  ;;  %v5658_v48 = vadd.f32 %v10354_v51, %v3796_v38 }
 0x391   :  { %v5661_v60 = vadd.f32 %v10396_v27, %v3807_v61 }
 0x392   :  { %v6317_v10 = vunpack.c.l.b16 %v6710_v4  ;;  %v6053_v6 = vrot.slane %v6052_v28, 4  ;;  %v5659_v35 = vadd.f32 %v10401_v13, %v3799_v18 }
 0x393   :  { %v5414_v61 = vpop.permute.xlu1 %5413 }
 0x394   :  { %v6352_v45 = vsel %vm6326_vm9, %v6317_v10, %v6351_v63  ;;  %v6054_v8 = vmax.f32 %v6052_v28, %v6053_v6  ;;  %v6059_v62 = vmax.f32 %v5658_v48, %v5659_v35  ;;  %v7492_v31 = vpop.f32.mrb[232].mxu1 }
 0x395   :  { %v3811_v20 = vpop.f32.mrb[233].mxu1  ;;  %v3820_v51 = vadd.f32 %v10226_v44, %v7492_v31 }
 0x396   :  { %v6055_v32 = vrot.slane %v6054_v8, 2  ;;  %v6060_v30 = vmax.f32 %v6059_v62, %v5660_v33  ;;  %v3812_v37 = vadd.f32 %v10226_v44, %v3811_v20  ;;  %v7493_v11 = vpop.f32.mrb[234].mxu1 }
 0x397   :  { %v3814_v5 = vpop.f32.mrb[235].mxu1  ;;  %v3823_v47 = vadd.f32 %v10226_v44, %v7493_v11  ;;  %v5664_v9 = vadd.f32 %v5339_v29, %v3820_v51 }
 0x398   :  { %v6056_v13 = vmax.f32 %v6054_v8, %v6055_v32  ;;  %v5662_v1 = vadd.f32 %v5329_v34, %v3812_v37  ;;  %v6061_v0 = vmax.f32 %v6060_v30, %v5661_v60  ;;  %v3815_v63 = vadd.f32 %v10226_v44, %v3814_v5  ;;  %v5379_v37 = vpop.permute.xlu1 %5378 }
 0x399   :  { %v5665_v57 = vadd.f32 %v5344_v21, %v3823_v47 }
 0x39a   :  { %v6057_v49 = vrot.slane %v6056_v13, 1  ;;  %v6062_v25 = vmax.f32 %v6061_v0, %v5662_v1  ;;  %v5663_v27 = vadd.f32 %v10427_v59, %v3815_v63 }
 0x39c   :  { %v6058_v36 = vmax.f32 %v6056_v13, %v6057_v49  ;;  %v6063_v43 = vmax.f32 %v6062_v25, %v5663_v27  ;;  %v7496_v16 = vpop.f32.mrb[236].mxu1  ;;  %v5384_v13 = vpop.permute.xlu0 %5383 }
 0x39d   :  { %v3827_v12 = vpop.f32.mrb[237].mxu1  ;;  %v3836_v40 = vadd.f32 %v10226_v44, %v7496_v16 }
 0x39e   :  { %vm6126_vm9 = vcmp.gt.f32.partialorder %v6058_v36, -1.5e+38  ;;  %v6064_v41 = vmax.f32 %v6063_v43, %v5664_v9  ;;  %v3828_v34 = vadd.f32 %v10226_v44, %v3827_v12  ;;  %v7497_v58 = vpop.f32.mrb[238].mxu1 }
 0x39f   :  { %v6158_v19 = vsel %vm6126_vm9, %v6058_v36, 0.0  ;;  %v3830_v2 = vpop.f32.mrb[239].mxu1  ;;  %v3839_v29 = vadd.f32 %v10226_v44, %v7497_v58  ;;  %v5668_v28 = vadd.f32 %v10432_v17, %v3836_v40 }
 0x3a0   :  { %v6711_v39 = vpack.c.bf16 %v6158_v19, %v6158_v19  ;;  %v6065_v50 = vmax.f32 %v6064_v41, %v5665_v57  ;;  %v3831_v59 = vadd.f32 %v10226_v44, %v3830_v2  ;;  %v5666_v22 = vadd.f32 %v10365_v26, %v3828_v34 }
 0x3a1   :  { %v5669_v48 = vadd.f32 %v10405_v14, %v3839_v29 }
 0x3a2   :  { %v6318_v56 = vunpack.c.l.b16 %v6711_v39  ;;  %v6066_v38 = vrot.slane %v6065_v50, 4  ;;  %v5667_v53 = vadd.f32 %v10412_v55, %v3831_v59 }
 0x3a4   :  { %v6353_v23 = vsel %vm6328_vm11, %v6318_v56, %v6352_v45  ;;  %v6067_v4 = vmax.f32 %v6065_v50, %v6066_v38  ;;  %v6072_v24 = vmax.f32 %v5666_v22, %v5667_v53  ;;  %v7500_v18 = vpop.f32.mrb[240].mxu1  ;;  %v5419_v56 = vpop.permute.xlu1 %5418 }
 0x3a5   :  { %v3843_v10 = vpop.f32.mrb[241].mxu1  ;;  %v3852_v26 = vadd.f32 %v10226_v44, %v7500_v18 }
 0x3a6   :  { %v6068_v6 = vrot.slane %v6067_v4, 2  ;;  %v6073_v35 = vmax.f32 %v6072_v24, %v5668_v28  ;;  %v3844_v8 = vadd.f32 %v10226_v44, %v3843_v10  ;;  %v7501_v33 = vpop.f32.mrb[242].mxu1 }
 0x3a7   :  { %v3846_v62 = vpop.f32.mrb[243].mxu1  ;;  %v3855_v60 = vadd.f32 %v10226_v44, %v7501_v33  ;;  %v5672_v14 = vadd.f32 %v5379_v37, %v3852_v26 }
 0x3a8   :  { %v6069_v55 = vmax.f32 %v6067_v4, %v6068_v6  ;;  %v5670_v31 = vadd.f32 %v5369_v46, %v3844_v8  ;;  %v6074_v45 = vmax.f32 %v6073_v35, %v5669_v48  ;;  %v3847_v20 = vadd.f32 %v10226_v44, %v3846_v62  ;;  %v5424_v48 = vpop.permute.xlu1 %5423 }
 0x3a9   :  { %v5673_v0 = vadd.f32 %v5384_v13, %v3855_v60 }
 0x3aa   :  { %v6070_v17 = vrot.slane %v6069_v55, 1  ;;  %v6075_v32 = vmax.f32 %v6074_v45, %v5670_v31  ;;  %v5671_v30 = vadd.f32 %v5374_v3, %v3847_v20 }
 0x3ac   :  { %v6071_v11 = vmax.f32 %v6069_v55, %v6070_v17  ;;  %v6076_v51 = vmax.f32 %v6075_v32, %v5671_v30  ;;  %v7504_v5 = vpop.f32.mrb[244].mxu1 }
 0x3ad   :  { %v3859_v1 = vpop.f32.mrb[245].mxu1  ;;  %v3868_v9 = vadd.f32 %v10226_v44, %v7504_v5 }
 0x3ae   :  { %vm6127_vm11 = vcmp.gt.f32.partialorder %v6071_v11, -1.5e+38  ;;  %v6077_v63 = vmax.f32 %v6076_v51, %v5672_v14  ;;  %v3860_v46 = vadd.f32 %v10226_v44, %v3859_v1  ;;  %v7505_v49 = vpop.f32.mrb[246].mxu1 }
 0x3af   :  { %v6159_v25 = vsel %vm6127_vm11, %v6071_v11, 0.0  ;;  %v3862_v47 = vpop.f32.mrb[247].mxu1  ;;  %v3871_v16 = vadd.f32 %v10226_v44, %v7505_v49  ;;  %v5676_v58 = vadd.f32 %v10441_v42, %v3868_v9 }
 0x3b0   :  { %v6712_v27 = vpack.c.bf16 %v6159_v25, %v6159_v25  ;;  %v6078_v36 = vmax.f32 %v6077_v63, %v5673_v0  ;;  %v3863_v43 = vadd.f32 %v10226_v44, %v3862_v47  ;;  %v5674_v57 = vadd.f32 %v10423_v15, %v3860_v46  ;;  %v7676_v44 = vld [vmem:[%s10511_s5] ss:$0 sm:$0xff]  ;;  %s7703_s5 = smov [#allocation2]  }
 0x3b1   :  { %v5677_v40 = vadd.f32 %v10416_v52, %v3871_v16  ;;  %s6374_s25 = sshll.u32 %s7703_s5, 4  ;;  %s6375_s25 = int_to_ptr.vmem [resolvable:$true] %s6374_s25 }
 0x3b2   :  { %v6319_v21 = vunpack.c.l.b16 %v6712_v27  ;;  %v6079_v12 = vrot.slane %v6078_v36, 4  ;;  %v5675_v41 = vadd.f32 %v10386_v54, %v3863_v43  ;;  %s7677_s26 = scalar_lea.vmem %s6375_s25, 256  ;;  %p7682_p1 = scmp.lt.s32.totalorder %s6375_s25, %s6375_s25 }
 0x3b3   :  { %p7678_p0 = scmp.ne.s32.totalorder %s6375_s25, %s7677_s26  ;;  %p7683_p2 = scmp.lt.s32.totalorder %s7677_s26, %s7677_s26 }
 0x3b4   :  { %v6080_v34 = vmax.f32 %v6078_v36, %v6079_v12  ;;  %v6085_v3 = vmax.f32 %v5674_v57, %v5675_v41  ;;  %v7508_v19 = vpop.f32.mrb[248].mxu1  ;;  %v6354_v2 = vsel %vm6330_vm13, %v6319_v21, %v6353_v23 }
 0x3b5   :  { %v3875_v39 = vpop.f32.mrb[249].mxu1  ;;  %v3884_v54 = vadd.f32 %v7676_v44, %v7508_v19  ;;  %p7684_p3 = por %p7683_p2, %p7682_p1 }
 0x3b6   :  { %v6081_v50 = vrot.slane %v6080_v34, 2  ;;  %v6086_v59 = vmax.f32 %v6085_v3, %v5676_v58  ;;  %v3876_v29 = vadd.f32 %v7676_v44, %v3875_v39  ;;  %v7509_v15 = vpop.f32.mrb[250].mxu1 }
 0x3b7   :  { %v3878_v38 = vpop.f32.mrb[251].mxu1  ;;  %v3887_v24 = vadd.f32 %v7676_v44, %v7509_v15  ;;  %v5680_v10 = vadd.f32 %v5419_v56, %v3884_v54  ;;  %p7685_p4 = pnand %p7684_p3, %p7678_p0 }
 0x3b8   :  { %v6082_v22 = vmax.f32 %v6080_v34, %v6081_v50  ;;  %v5678_v42 = vadd.f32 %v10462_v7, %v3876_v29  ;;  %v6087_v53 = vmax.f32 %v6086_v59, %v5677_v40  ;;  %v3879_v4 = vadd.f32 %v7676_v44, %v3878_v38 }
 0x3b9   :  { %v5681_v35 = vadd.f32 %v5424_v48, %v3887_v24 }
 0x3ba   :  { %v6083_v23 = vrot.slane %v6082_v22, 1  ;;  %v6088_v28 = vmax.f32 %v6087_v53, %v5678_v42  ;;  %v5679_v18 = vadd.f32 %v5414_v61, %v3879_v4 }
 0x3bc   :  { %v6084_v52 = vmax.f32 %v6082_v22, %v6083_v23  ;;  %v6089_v6 = vmax.f32 %v6088_v28, %v5679_v18 }
 0x3be   :  { %vm6128_vm13 = vcmp.gt.f32.partialorder %v6084_v52, -1.5e+38  ;;  %v6090_v8 = vmax.f32 %v6089_v6, %v5680_v10 }
 0x3bf   :  { %v6160_v33 = vsel %vm6128_vm13, %v6084_v52, 0.0 }
 0x3c0   :  { %v6713_v26 = vpack.c.bf16 %v6160_v33, %v6160_v33  ;;  %v6091_v62 = vmax.f32 %v6090_v8, %v5681_v35 }
 0x3c2   :  { %v6320_v55 = vunpack.c.l.b16 %v6713_v26  ;;  %v6092_v31 = vrot.slane %v6091_v62, 4 }
 0x3c4   :  { %v6093_v45 = vmax.f32 %v6091_v62, %v6092_v31  ;;  %v6355_v7 = vsel %vm6332_vm15, %v6320_v55, %v6354_v2 }
 0x3c6   :  { %v6094_v20 = vrot.slane %v6093_v45, 2 }
 0x3c8   :  { %v6095_v17 = vmax.f32 %v6093_v45, %v6094_v20 }
 0x3ca   :  { %v6096_v32 = vrot.slane %v6095_v17, 1 }
 0x3cc   :  { %v6097_v60 = vmax.f32 %v6095_v17, %v6096_v32 }
 0x3ce   :  { %vm6129_vm1 = vcmp.gt.f32.partialorder %v6097_v60, -1.5e+38 }
 0x3cf   :  { %v6161_v61 = vsel %vm6129_vm1, %v6097_v60, 0.0 }
 0x3d0   :  { %v6714_v30 = vpack.c.bf16 %v6161_v61, %v6161_v61 }
 0x3d2   :  { %v6321_v37 = vunpack.c.l.b16 %v6714_v30 }
 0x3d4   :  { %v6356_v11 = vsel %vm6334_vm2, %v6321_v37, %v6355_v7 }
 0x3d5   :  { %v6360_v14 = vpack.c.b16 %v6356_v11, %v6356_v11 }
 0x3d7   :  { %6368 = vst [vmem:[#allocation2 + $0xc] sm:$0xf] %v6360_v14 }
 0x3d8   :  { %7688 = shalt.err (!%p7685_p4)
}
 0x3d9   :  { %s7689_s29 = scalar_lea.hbm %s10512_s6, 256 }
 0x3da   :  { %p7690_p5 = scmp.ne.s32.totalorder %s10512_s6, %s7689_s29  ;;  %p7693_p6 = scmp.lt.u32.totalorder %s7689_s29, %s10512_s6 }
 0x3dc   :  { %p7695_p7 = pnand %p7693_p6, %p7690_p5 }
 0x3de   :  { %7698 = shalt.err (!%p7695_p7)
}
 0x3df   :  { %s7704_s9 = smov 64   ;;  %s7705_s10 = smov 4  }
 0x3e0   :  { %6380 = dma.vmem_to_hbm [thread:$0]  %s6375_s25, 256, %s10512_s6, [#allocation3], %s7704_s9, %s7704_s9, %s7705_s10  }
 0x3e1   :  { %7699 = dma.done.wait [#allocation3], 256  }
 0x3e2   :  { %7700 = vsyncadd [#allocation3], 4294967040 }
 0x3e3   :  { %6384 = vsyncpa [#allocation3], 1 }

</bundles_post_ra>
